<compile_context>
chip_gen: v6e
topology: v6e:2x2x1
jax: 0.10.0
libtpu: 0.0.40
codegen_flags: <defaults>
</compile_context>

<pallas_src>
import functools
import numpy as np

import jax
import jax.numpy as jnp
from jax.experimental import pallas as pl
from jax.experimental.pallas import tpu as pltpu


BN_EPS = 1e-5

FIRE_CFG = [
    ("fire1", 64, 16, 64, 64),
    ("fire2", 128, 16, 64, 64),
    ("fire3", 128, 32, 128, 128),
    ("fire4", 256, 32, 128, 128),
    ("fire5", 256, 48, 192, 192),
    ("fire6", 384, 48, 192, 192),
    ("fire7", 384, 64, 256, 256),
    ("fire8", 512, 64, 256, 256),
]


def _round_up(x, m):
    return (x + m - 1) // m * m


# ----------------------------------------------------------------------------
# Pallas kernels
# ----------------------------------------------------------------------------
def _matmul_bias_kernel(x_ref, w_ref, b_ref, o_ref, *, relu):
    # (TILE_M, K) @ (K, N) on the MXU (bf16 in, f32 acc) + folded bias (+ ReLU).
    acc = jnp.dot(x_ref[...], w_ref[...], preferred_element_type=jnp.float32)
    acc = acc + b_ref[...]
    if relu:
        acc = jnp.maximum(acc, 0.0)
    o_ref[...] = acc.astype(o_ref.dtype)


def matmul_bias(x, w, shift, *, relu, out_dtype, tile_m=256):
    """relu((x @ w) + shift); rows (M) tiled over a parallel grid axis."""
    M, K = x.shape
    Kw, N = w.shape
    assert K == Kw
    tm = min(tile_m, _round_up(M, 8))
    Mp = _round_up(M, tm)
    if Mp != M:
        x = jnp.pad(x, ((0, Mp - M), (0, 0)))
    out = pl.pallas_call(
        functools.partial(_matmul_bias_kernel, relu=relu),
        out_shape=jax.ShapeDtypeStruct((Mp, N), out_dtype),
        grid=(Mp // tm,),
        in_specs=[
            pl.BlockSpec((tm, K), lambda i: (i, 0)),
            pl.BlockSpec((K, N), lambda i: (0, 0)),     # weights stay resident
            pl.BlockSpec((1, N), lambda i: (0, 0)),
        ],
        out_specs=pl.BlockSpec((tm, N), lambda i: (i, 0)),
        compiler_params=pltpu.CompilerParams(dimension_semantics=("parallel",)),
    )(x.astype(jnp.bfloat16), w, shift)
    return out[:M] if Mp != M else out


def _fire_kernel(x_ref, wsq_ref, bsq_ref, wex_ref, bex_ref, o_ref, sp_ref):
    """Whole Fire module for one batch element (channels-last).

    squeeze(1x1)+BN+ReLU -> VMEM scratch (zero halo) -> fused
    [expand1x1 | expand3x3] + BN + ReLU as three accumulating matmuls against a
    combined (3, sq, e1+e3) weight (1x1 weights occupy only the center tap).
    """
    L = x_ref.shape[1]
    sq = sp_ref.shape[1]

    # squeeze 1x1 conv (+ folded BN + ReLU)
    s = jnp.dot(x_ref[0], wsq_ref[...], preferred_element_type=jnp.float32)
    s = jnp.maximum(s + bsq_ref[...], 0.0)

    # zero-padded squeeze activation in VMEM (halo rows for the 3-tap expand)
    zero_row = jnp.zeros((1, sq), sp_ref.dtype)
    sp_ref[0:1, :] = zero_row
    sp_ref[L + 1:L + 2, :] = zero_row
    sp_ref[1:L + 1, :] = s.astype(sp_ref.dtype)
    spv = sp_ref[...]                                   # (L + 2, sq)

    # fused expand1x1 + expand3x3 (+ channel concat): 3 accumulating matmuls
    acc = jnp.zeros((L, o_ref.shape[2]), jnp.float32)
    for t in range(3):
        acc = acc + jnp.dot(spv[t:t + L, :], wex_ref[t],
                            preferred_element_type=jnp.float32)
    y = jnp.maximum(acc + bex_ref[...], 0.0)
    o_ref[0] = y.astype(o_ref.dtype)


def fire_block(x, p):
    """x: (B, L, Cin) channels-last bf16 -> (B, L, e1+e3) bf16. One pallas_call."""
    B, L, Cin = x.shape
    sq = p["w_sq"].shape[1]
    E = p["w_ex"].shape[2]
    return pl.pallas_call(
        _fire_kernel,
        out_shape=jax.ShapeDtypeStruct((B, L, E), jnp.bfloat16),
        grid=(B,),
        in_specs=[
            pl.BlockSpec((1, L, Cin), lambda b: (b, 0, 0)),
            pl.BlockSpec((Cin, sq), lambda b: (0, 0)),
            pl.BlockSpec((1, sq), lambda b: (0, 0)),
            pl.BlockSpec((3, sq, E), lambda b: (0, 0, 0)),
            pl.BlockSpec((1, E), lambda b: (0, 0)),
        ],
        out_specs=pl.BlockSpec((1, L, E), lambda b: (b, 0, 0)),
        scratch_shapes=[pltpu.VMEM((L + 2, sq), jnp.bfloat16)],
        compiler_params=pltpu.CompilerParams(dimension_semantics=("parallel",)),
    )(x, p["w_sq"], p["b_sq"], p["w_ex"], p["b_ex"])


def _maxpool_kernel(e_ref, o_ref):
    """MaxPool1d(k=3, s=2, p=1, ceil) for one batch element, channels-last.

    e_ref packs the -inf padded sequence as adjacent row pairs along channels,
    so the three stride-2 window taps are plain contiguous slices (single read,
    no strided HBM gathers).
    """
    lo, c = o_ref.shape[1], o_ref.shape[2]
    ev = e_ref[0]                                       # (lo + 1, 2c)
    p0 = ev[:lo, :c]                                    # x[2l]
    p1 = ev[:lo, c:]                                    # x[2l + 1]
    p2 = ev[1:lo + 1, :c]                               # x[2l + 2]
    o_ref[0] = jnp.maximum(jnp.maximum(p0, p1), p2)


def maxpool1d_k3s2p1_ceil(x):
    """x: (B, L, C) channels-last -> (B, L_out, C)."""
    B, L, C = x.shape
    lo = -(-(L - 1) // 2) + 1                           # ceil((L + 2p - k)/s) + 1
    if (lo - 1) * 2 >= L + 1:                           # drop window starting in right pad
        lo -= 1
    lp = 2 * lo + 2                                     # pair-packed padded length
    xp = jnp.pad(x, ((0, 0), (1, lp - 1 - L), (0, 0)), constant_values=-jnp.inf)
    e = xp.reshape(B, lo + 1, 2 * C)                    # contiguous reshape (pairing)
    return pl.pallas_call(
        _maxpool_kernel,
        out_shape=jax.ShapeDtypeStruct((B, lo, C), x.dtype),
        grid=(B,),
        in_specs=[pl.BlockSpec((1, lo + 1, 2 * C), lambda b: (b, 0, 0))],
        out_specs=pl.BlockSpec((1, lo, C), lambda b: (b, 0, 0)),
        compiler_params=pltpu.CompilerParams(dimension_semantics=("parallel",)),
    )(e)


# ----------------------------------------------------------------------------
# Layer wrappers (channels-last glue in plain JAX)
# ----------------------------------------------------------------------------
def conv1d_strided(x, w_mat, shift, *, k, stride, pad, relu, out_dtype):
    """Conv1d (channels-last) via cheap tap slices + one M-tiled matmul kernel.
    x: (B, L, Cin); w_mat: (k*Cin, Cout) with BN scale already folded in."""
    B, L, Cin = x.shape
    Cout = w_mat.shape[1]
    lo = (L + 2 * pad - k) // stride + 1
    xp = jnp.pad(x, ((0, 0), (pad, pad), (0, 0))) if pad else x
    taps = [xp[:, t:t + (lo - 1) * stride + 1:stride, :] for t in range(k)]
    patches = jnp.concatenate(taps, axis=-1).reshape(B * lo, k * Cin)
    y = matmul_bias(patches, w_mat, shift, relu=relu, out_dtype=out_dtype)
    return y.reshape(B, lo, Cout)


def adaptive_avgpool1d_nlc(x, out_size):
    # Tiny (L <= a few, out=3): plain-JAX reduction per the perf review — a
    # Pallas matmul here would be lane-sparse (N=3) and launch-bound.
    B, L, C = x.shape
    P = np.zeros((L, out_size), np.float32)
    for i in range(out_size):
        s0 = (i * L) // out_size
        e0 = -(-((i + 1) * L) // out_size)
        P[s0:e0, i] = 1.0 / (e0 - s0)
    return jnp.einsum("blc,lo->boc", x.astype(jnp.float32), jnp.asarray(P))


# ----------------------------------------------------------------------------
# Parameters (deterministic, Kaiming-normal like the PyTorch __init__),
# then pre-transformed: BN scale folded into weights, tap-major matmul layouts,
# bf16 weights, f32 shifts pre-broadcast to (1, N).
# ----------------------------------------------------------------------------
def _kaiming_conv(key, cout, cin, k):
    fan_out = cout * k
    gain = np.sqrt(2.0 / (1.0 + 0.01 ** 2))             # leaky_relu, slope 0.01
    std = gain / np.sqrt(fan_out)
    kw, kb = jax.random.split(key)
    w = jax.random.normal(kw, (cout, cin, k), jnp.float32) * std
    bound = 1.0 / np.sqrt(cin * k)
    b = jax.random.uniform(kb, (cout,), jnp.float32, -bound, bound)
    return w, b


def init_raw_params(key):
    params = {}
    keys = iter(jax.random.split(key, 2 + 3 * len(FIRE_CFG) + 2))
    params["conv0"] = _kaiming_conv(next(keys), 64, 12, 3)
    for name, inp, sq, e1, e3 in FIRE_CFG:
        params[f"{name}_squeeze"] = _kaiming_conv(next(keys), sq, inp, 1)
        params[f"{name}_e1"] = _kaiming_conv(next(keys), e1, sq, 1)
        params[f"{name}_e3"] = _kaiming_conv(next(keys), e3, sq, 3)
    params["cls_conv0"] = _kaiming_conv(next(keys), 75, 512, 3)
    params["cls_conv1"] = _kaiming_conv(next(keys), 75, 75, 3)
    return params


def _fold_bn(w, b):
    # eval-mode BatchNorm1d with default stats (gamma=1, beta=0, mean=0, var=1):
    # y = scale * (conv(x) ) + shift with scale = 1/sqrt(var+eps), folded into w/b.
    scale = 1.0 / np.sqrt(1.0 + BN_EPS)
    return w * scale, b * scale


def _taps_matrix(w):
    # (Cout, Cin, k) -> (k*Cin, Cout), tap-major rows (matches wrapper tap concat)
    cout, cin, k = w.shape
    return jnp.concatenate([w[:, :, t].T for t in range(k)], axis=0)


def prepare_params(raw):
    prep = {}

    w, b = _fold_bn(*raw["conv0"])
    prep["conv0_w"] = _taps_matrix(w).astype(jnp.bfloat16)
    prep["conv0_b"] = b.reshape(1, -1).astype(jnp.float32)

    for name, inp, sq, e1, e3 in FIRE_CFG:
        wsq, bsq = _fold_bn(*raw[f"{name}_squeeze"])
        we1, be1 = _fold_bn(*raw[f"{name}_e1"])
        we3, be3 = _fold_bn(*raw[f"{name}_e3"])
        wex = jnp.zeros((3, sq, e1 + e3), jnp.float32)
        wex = wex.at[1, :, :e1].set(we1[:, :, 0].T)      # 1x1 expand -> center tap
        for t in range(3):
            wex = wex.at[t, :, e1:].set(we3[:, :, t].T)  # 3x3 expand -> all taps
        prep[name] = {
            "w_sq": wsq[:, :, 0].T.astype(jnp.bfloat16),               # (Cin, sq)
            "b_sq": bsq.reshape(1, sq).astype(jnp.float32),
            "w_ex": wex.astype(jnp.bfloat16),                          # (3, sq, e1+e3)
            "b_ex": jnp.concatenate([be1, be3]).reshape(1, e1 + e3).astype(jnp.float32),
        }

    w, b = _fold_bn(*raw["cls_conv0"])
    prep["cls0_w"] = _taps_matrix(w).astype(jnp.bfloat16)
    prep["cls0_b"] = b.reshape(1, -1).astype(jnp.float32)

    w, b = raw["cls_conv1"]                               # no BN after this conv
    prep["cls1_w"] = _taps_matrix(w).astype(jnp.bfloat16)
    prep["cls1_b"] = b.reshape(1, -1).astype(jnp.float32)
    return prep


# ----------------------------------------------------------------------------
# Forward pass (channels-last bf16 between layers)
# ----------------------------------------------------------------------------
def squeezenet1d_forward(prep, x_ncl):
    x = jnp.transpose(x_ncl, (0, 2, 1)).astype(jnp.bfloat16)   # NCL -> NLC, once

    # features
    x = conv1d_strided(x, prep["conv0_w"], prep["conv0_b"], k=3, stride=2, pad=1,
                       relu=True, out_dtype=jnp.bfloat16)
    x = maxpool1d_k3s2p1_ceil(x)
    x = fire_block(x, prep["fire1"])
    x = fire_block(x, prep["fire2"])
    x = maxpool1d_k3s2p1_ceil(x)
    x = fire_block(x, prep["fire3"])
    x = fire_block(x, prep["fire4"])
    x = maxpool1d_k3s2p1_ceil(x)
    x = fire_block(x, prep["fire5"])
    x = fire_block(x, prep["fire6"])
    x = fire_block(x, prep["fire7"])
    x = fire_block(x, prep["fire8"])
    # Dropout(p=0.1): identity in eval mode.

    # classifier
    x = conv1d_strided(x, prep["cls0_w"], prep["cls0_b"], k=3, stride=2, pad=0,
                       relu=True, out_dtype=jnp.bfloat16)
    x = adaptive_avgpool1d_nlc(x, 3)
    x = conv1d_strided(x.astype(jnp.bfloat16), prep["cls1_w"], prep["cls1_b"],
                       k=3, stride=2, pad=0, relu=False, out_dtype=jnp.float32)
    return jnp.transpose(x, (0, 2, 1))                    # NLC -> NCL: (B, 75, 1)


# ----------------------------------------------------------------------------
if __name__ == "__main__":
    key = jax.random.PRNGKey(0)
    k_param, k_x = jax.random.split(key)
    prep = prepare_params(init_raw_params(k_param))

    # small but valid input: (batch=2, channels=12, length=64) -> output (2, 75, 1)
    x = jax.random.normal(k_x, (2, 12, 64), jnp.float32)

    fwd = jax.jit(lambda inp: squeezenet1d_forward(prep, inp))
    out = jax.block_until_ready(fwd(x))
    assert out.shape == (2, 75, 1), out.shape
    assert bool(jnp.all(jnp.isfinite(out)))
    print("KERNEL_OK")
</pallas_src>

<mosaic_0001>
module attributes {stable_mosaic.version = 11 : i64} {
  func.func @_matmul_bias_kernel(%arg0: i32, %arg1: memref<64x36xbf16, #tpu.memory_space<vmem>>, %arg2: memref<36x64xbf16, #tpu.memory_space<vmem>>, %arg3: memref<1x64xf32, #tpu.memory_space<vmem>>, %arg4: memref<64x64xbf16, #tpu.memory_space<vmem>>) attributes {dimension_semantics = [#tpu.dimension_semantics<parallel>], iteration_bounds = array<i64: 1>, scalar_prefetch = 0 : i64, scratch_operands = 0 : i64, tpu.core_type = #tpu.core_type<tc>, window_params = [{transform_indices = @transform_0, window_bounds = array<i64: 64, 36>}, {pipeline_mode = #tpu.pipeline_mode<synchronous>, transform_indices = @transform_1, window_bounds = array<i64: 36, 64>}, {pipeline_mode = #tpu.pipeline_mode<synchronous>, transform_indices = @transform_2, window_bounds = array<i64: 1, 64>}, {transform_indices = @transform_3, window_bounds = array<i64: 64, 64>}]} {
    %c0 = arith.constant 0 : index
    %c0_0 = arith.constant 0 : index
    %0 = vector.load %arg1[%c0, %c0_0] : memref<64x36xbf16, #tpu.memory_space<vmem>>, vector<64x36xbf16>
    %c0_1 = arith.constant 0 : index
    %c0_2 = arith.constant 0 : index
    %1 = vector.load %arg2[%c0_1, %c0_2] : memref<36x64xbf16, #tpu.memory_space<vmem>>, vector<36x64xbf16>
    %cst = arith.constant dense<0.000000e+00> : vector<64x64xf32>
    %2 = tpu.matmul %0, %1, %cst {dimension_numbers = #tpu.dot_dimension_numbers<[1], [0], [0], [1], [0, 0, 1, 1], [], []>} : vector<64x36xbf16>, vector<36x64xbf16>, vector<64x64xf32> -> vector<64x64xf32>
    %c0_3 = arith.constant 0 : index
    %c0_4 = arith.constant 0 : index
    %3 = vector.load %arg3[%c0_3, %c0_4] : memref<1x64xf32, #tpu.memory_space<vmem>>, vector<1x64xf32>
    %4 = vector.broadcast %3 : vector<1x64xf32> to vector<64x64xf32>
    %5 = arith.addf %2, %4 : vector<64x64xf32>
    %cst_5 = arith.constant 0.000000e+00 : f32
    %6 = vector.broadcast %cst_5 : f32 to vector<64x64xf32>
    %7 = arith.maximumf %5, %6 : vector<64x64xf32>
    %8 = arith.truncf %7 : vector<64x64xf32> to vector<64x64xbf16>
    %c0_6 = arith.constant 0 : index
    %c0_7 = arith.constant 0 : index
    %9 = vector.load %arg4[%c0_6, %c0_7] : memref<64x64xbf16, #tpu.memory_space<vmem>>, vector<64x64xbf16>
    tpu.vector_store %arg4[%c0_6, %c0_7], %8 {strides = array<i32>} : memref<64x64xbf16, #tpu.memory_space<vmem>>, vector<64x64xbf16>,
    return
  }
  func.func @transform_0(%arg0: i32) -> (i32, i32) {
    %c0_i32 = arith.constant 0 : i32
    %c0_i32_0 = arith.constant 0 : i32
    return %arg0, %c0_i32 : i32, i32
  }
  func.func @transform_1(%arg0: i32) -> (i32, i32) {
    %c0_i32 = arith.constant 0 : i32
    %c0_i32_0 = arith.constant 0 : i32
    %c0_i32_1 = arith.constant 0 : i32
    return %c0_i32, %c0_i32_0 : i32, i32
  }
  func.func @transform_2(%arg0: i32) -> (i32, i32) {
    %c0_i32 = arith.constant 0 : i32
    %c0_i32_0 = arith.constant 0 : i32
    %c0_i32_1 = arith.constant 0 : i32
    return %c0_i32, %c0_i32_0 : i32, i32
  }
  func.func @transform_3(%arg0: i32) -> (i32, i32) {
    %c0_i32 = arith.constant 0 : i32
    %c0_i32_0 = arith.constant 0 : i32
    return %arg0, %c0_i32 : i32, i32
  }
}

module attributes {stable_mosaic.version = 11 : i64} {
  func.func @_maxpool_kernel(%arg0: i32, %arg1: memref<1x18x128xbf16, #tpu.memory_space<vmem>>, %arg2: memref<1x17x64xbf16, #tpu.memory_space<vmem>>) attributes {dimension_semantics = [#tpu.dimension_semantics<parallel>], iteration_bounds = array<i64: 2>, scalar_prefetch = 0 : i64, scratch_operands = 0 : i64, tpu.core_type = #tpu.core_type<tc>, window_params = [{transform_indices = @transform_0, window_bounds = array<i64: 1, 18, 128>}, {transform_indices = @transform_1, window_bounds = array<i64: 1, 17, 64>}]} {
    %c0 = arith.constant 0 : index
    %c0_0 = arith.constant 0 : index
    %c0_1 = arith.constant 0 : index
    %0 = vector.load %arg1[%c0, %c0_0, %c0_1] : memref<1x18x128xbf16, #tpu.memory_space<vmem>>, vector<1x18x128xbf16>
    %1 = vector.shape_cast %0 : vector<1x18x128xbf16> to vector<18x128xbf16>
    %2 = vector.extract_strided_slice %1 {offsets = [0, 0], sizes = [17, 64], strides = [1, 1]} : vector<18x128xbf16> to vector<17x64xbf16>
    %3 = vector.extract_strided_slice %1 {offsets = [0, 64], sizes = [17, 64], strides = [1, 1]} : vector<18x128xbf16> to vector<17x64xbf16>
    %4 = vector.extract_strided_slice %1 {offsets = [1, 0], sizes = [17, 64], strides = [1, 1]} : vector<18x128xbf16> to vector<17x64xbf16>
    %5 = arith.maximumf %2, %3 : vector<17x64xbf16>
    %6 = arith.maximumf %5, %4 : vector<17x64xbf16>
    %c0_2 = arith.constant 0 : index
    %c0_3 = arith.constant 0 : index
    %c0_4 = arith.constant 0 : index
    %7 = vector.load %arg2[%c0_2, %c0_3, %c0_4] : memref<1x17x64xbf16, #tpu.memory_space<vmem>>, vector<1x17x64xbf16>
    %8 = vector.shape_cast %7 : vector<1x17x64xbf16> to vector<17x64xbf16>
    %9 = vector.shape_cast %6 : vector<17x64xbf16> to vector<1x17x64xbf16>
    tpu.vector_store %arg2[%c0_2, %c0_3, %c0_4], %9 {strides = array<i32>} : memref<1x17x64xbf16, #tpu.memory_space<vmem>>, vector<1x17x64xbf16>,
    return
  }
  func.func @transform_0(%arg0: i32) -> (i32, i32, i32) {
    %c0_i32 = arith.constant 0 : i32
    %c0_i32_0 = arith.constant 0 : i32
    %c0_i32_1 = arith.constant 0 : i32
    return %arg0, %c0_i32, %c0_i32_0 : i32, i32, i32
  }
  func.func @transform_1(%arg0: i32) -> (i32, i32, i32) {
    %c0_i32 = arith.constant 0 : i32
    %c0_i32_0 = arith.constant 0 : i32
    %c0_i32_1 = arith.constant 0 : i32
    return %arg0, %c0_i32, %c0_i32_0 : i32, i32, i32
  }
}

module attributes {stable_mosaic.version = 11 : i64} {
  func.func @_fire_kernel(%arg0: i32, %arg1: memref<1x17x64xbf16, #tpu.memory_space<vmem>>, %arg2: memref<64x16xbf16, #tpu.memory_space<vmem>>, %arg3: memref<1x16xf32, #tpu.memory_space<vmem>>, %arg4: memref<3x16x128xbf16, #tpu.memory_space<vmem>>, %arg5: memref<1x128xf32, #tpu.memory_space<vmem>>, %arg6: memref<1x17x128xbf16, #tpu.memory_space<vmem>>, %arg7: memref<19x16xbf16, #tpu.memory_space<vmem>>) attributes {dimension_semantics = [#tpu.dimension_semantics<parallel>], iteration_bounds = array<i64: 2>, scalar_prefetch = 0 : i64, scratch_operands = 1 : i64, tpu.core_type = #tpu.core_type<tc>, window_params = [{transform_indices = @transform_0, window_bounds = array<i64: 1, 17, 64>}, {pipeline_mode = #tpu.pipeline_mode<synchronous>, transform_indices = @transform_1, window_bounds = array<i64: 64, 16>}, {pipeline_mode = #tpu.pipeline_mode<synchronous>, transform_indices = @transform_2, window_bounds = array<i64: 1, 16>}, {pipeline_mode = #tpu.pipeline_mode<synchronous>, transform_indices = @transform_3, window_bounds = array<i64: 3, 16, 128>}, {pipeline_mode = #tpu.pipeline_mode<synchronous>, transform_indices = @transform_4, window_bounds = array<i64: 1, 128>}, {transform_indices = @transform_5, window_bounds = array<i64: 1, 17, 128>}]} {
    %c0 = arith.constant 0 : index
    %c0_0 = arith.constant 0 : index
    %c0_1 = arith.constant 0 : index
    %0 = vector.load %arg1[%c0, %c0_0, %c0_1] : memref<1x17x64xbf16, #tpu.memory_space<vmem>>, vector<1x17x64xbf16>
    %1 = vector.shape_cast %0 : vector<1x17x64xbf16> to vector<17x64xbf16>
    %c0_2 = arith.constant 0 : index
    %c0_3 = arith.constant 0 : index
    %2 = vector.load %arg2[%c0_2, %c0_3] : memref<64x16xbf16, #tpu.memory_space<vmem>>, vector<64x16xbf16>
    %cst = arith.constant dense<0.000000e+00> : vector<17x16xf32>
    %3 = tpu.matmul %1, %2, %cst {dimension_numbers = #tpu.dot_dimension_numbers<[1], [0], [0], [1], [0, 0, 1, 1], [], []>} : vector<17x64xbf16>, vector<64x16xbf16>, vector<17x16xf32> -> vector<17x16xf32>
    %c0_4 = arith.constant 0 : index
    %c0_5 = arith.constant 0 : index
    %4 = vector.load %arg3[%c0_4, %c0_5] : memref<1x16xf32, #tpu.memory_space<vmem>>, vector<1x16xf32>
    %5 = vector.broadcast %4 : vector<1x16xf32> to vector<17x16xf32>
    %6 = arith.addf %3, %5 : vector<17x16xf32>
    %cst_6 = arith.constant 0.000000e+00 : f32
    %7 = vector.broadcast %cst_6 : f32 to vector<17x16xf32>
    %8 = arith.maximumf %6, %7 : vector<17x16xf32>
    %cst_7 = arith.constant 0.000000e+00 : bf16
    %9 = vector.broadcast %cst_7 : bf16 to vector<1x16xbf16>
    %c0_8 = arith.constant 0 : index
    %c0_9 = arith.constant 0 : index
    %10 = vector.load %arg7[%c0_8, %c0_9] : memref<19x16xbf16, #tpu.memory_space<vmem>>, vector<1x16xbf16>
    tpu.vector_store %arg7[%c0_8, %c0_9], %9 {strides = array<i32>} : memref<19x16xbf16, #tpu.memory_space<vmem>>, vector<1x16xbf16>,
    %c18 = arith.constant 18 : index
    %c0_10 = arith.constant 0 : index
    %11 = vector.load %arg7[%c18, %c0_10] : memref<19x16xbf16, #tpu.memory_space<vmem>>, vector<1x16xbf16>
    tpu.vector_store %arg7[%c18, %c0_10], %9 {strides = array<i32>} : memref<19x16xbf16, #tpu.memory_space<vmem>>, vector<1x16xbf16>,
    %12 = arith.truncf %8 : vector<17x16xf32> to vector<17x16xbf16>
    %c1 = arith.constant 1 : index
    %c0_11 = arith.constant 0 : index
    %13 = vector.load %arg7[%c1, %c0_11] : memref<19x16xbf16, #tpu.memory_space<vmem>>, vector<17x16xbf16>
    tpu.vector_store %arg7[%c1, %c0_11], %12 {strides = array<i32>} : memref<19x16xbf16, #tpu.memory_space<vmem>>, vector<17x16xbf16>,
    %c0_12 = arith.constant 0 : index
    %c0_13 = arith.constant 0 : index
    %14 = vector.load %arg7[%c0_12, %c0_13] : memref<19x16xbf16, #tpu.memory_space<vmem>>, vector<19x16xbf16>
    %cst_14 = arith.constant 0.000000e+00 : f32
    %15 = vector.broadcast %cst_14 : f32 to vector<17x128xf32>
    %16 = vector.extract_strided_slice %14 {offsets = [0, 0], sizes = [17, 16], strides = [1, 1]} : vector<19x16xbf16> to vector<17x16xbf16>
    %c0_15 = arith.constant 0 : index
    %c0_16 = arith.constant 0 : index
    %c0_17 = arith.constant 0 : index
    %17 = vector.load %arg4[%c0_15, %c0_16, %c0_17] : memref<3x16x128xbf16, #tpu.memory_space<vmem>>, vector<1x16x128xbf16>
    %18 = vector.shape_cast %17 : vector<1x16x128xbf16> to vector<16x128xbf16>
    %cst_18 = arith.constant dense<0.000000e+00> : vector<17x128xf32>
    %19 = tpu.matmul %16, %18, %cst_18 {dimension_numbers = #tpu.dot_dimension_numbers<[1], [0], [0], [1], [0, 0, 1, 1], [], []>} : vector<17x16xbf16>, vector<16x128xbf16>, vector<17x128xf32> -> vector<17x128xf32>
    %20 = arith.addf %15, %19 : vector<17x128xf32>
    %21 = vector.extract_strided_slice %14 {offsets = [1, 0], sizes = [17, 16], strides = [1, 1]} : vector<19x16xbf16> to vector<17x16xbf16>
    %c1_19 = arith.constant 1 : index
    %c0_20 = arith.constant 0 : index
    %c0_21 = arith.constant 0 : index
    %22 = vector.load %arg4[%c1_19, %c0_20, %c0_21] : memref<3x16x128xbf16, #tpu.memory_space<vmem>>, vector<1x16x128xbf16>
    %23 = vector.shape_cast %22 : vector<1x16x128xbf16> to vector<16x128xbf16>
    %cst_22 = arith.constant dense<0.000000e+00> : vector<17x128xf32>
    %24 = tpu.matmul %21, %23, %cst_22 {dimension_numbers = #tpu.dot_dimension_numbers<[1], [0], [0], [1], [0, 0, 1, 1], [], []>} : vector<17x16xbf16>, vector<16x128xbf16>, vector<17x128xf32> -> vector<17x128xf32>
    %25 = arith.addf %20, %24 : vector<17x128xf32>
    %26 = vector.extract_strided_slice %14 {offsets = [2, 0], sizes = [17, 16], strides = [1, 1]} : vector<19x16xbf16> to vector<17x16xbf16>
    %c2 = arith.constant 2 : index
    %c0_23 = arith.constant 0 : index
    %c0_24 = arith.constant 0 : index
    %27 = vector.load %arg4[%c2, %c0_23, %c0_24] : memref<3x16x128xbf16, #tpu.memory_space<vmem>>, vector<1x16x128xbf16>
    %28 = vector.shape_cast %27 : vector<1x16x128xbf16> to vector<16x128xbf16>
    %cst_25 = arith.constant dense<0.000000e+00> : vector<17x128xf32>
    %29 = tpu.matmul %26, %28, %cst_25 {dimension_numbers = #tpu.dot_dimension_numbers<[1], [0], [0], [1], [0, 0, 1, 1], [], []>} : vector<17x16xbf16>, vector<16x128xbf16>, vector<17x128xf32> -> vector<17x128xf32>
    %30 = arith.addf %25, %29 : vector<17x128xf32>
    %c0_26 = arith.constant 0 : index
    %c0_27 = arith.constant 0 : index
    %31 = vector.load %arg5[%c0_26, %c0_27] : memref<1x128xf32, #tpu.memory_space<vmem>>, vector<1x128xf32>
    %32 = vector.broadcast %31 : vector<1x128xf32> to vector<17x128xf32>
    %33 = arith.addf %30, %32 : vector<17x128xf32>
    %cst_28 = arith.constant 0.000000e+00 : f32
    %34 = vector.broadcast %cst_28 : f32 to vector<17x128xf32>
    %35 = arith.maximumf %33, %34 : vector<17x128xf32>
    %36 = arith.truncf %35 : vector<17x128xf32> to vector<17x128xbf16>
    %c0_29 = arith.constant 0 : index
    %c0_30 = arith.constant 0 : index
    %c0_31 = arith.constant 0 : index
    %37 = vector.load %arg6[%c0_29, %c0_30, %c0_31] : memref<1x17x128xbf16, #tpu.memory_space<vmem>>, vector<1x17x128xbf16>
    %38 = vector.shape_cast %37 : vector<1x17x128xbf16> to vector<17x128xbf16>
    %39 = vector.shape_cast %36 : vector<17x128xbf16> to vector<1x17x128xbf16>
    tpu.vector_store %arg6[%c0_29, %c0_30, %c0_31], %39 {strides = array<i32>} : memref<1x17x128xbf16, #tpu.memory_space<vmem>>, vector<1x17x128xbf16>,
    return
  }
  func.func @transform_0(%arg0: i32) -> (i32, i32, i32) {
    %c0_i32 = arith.constant 0 : i32
    %c0_i32_0 = arith.constant 0 : i32
    %c0_i32_1 = arith.constant 0 : i32
    return %arg0, %c0_i32, %c0_i32_0 : i32, i32, i32
  }
  func.func @transform_1(%arg0: i32) -> (i32, i32) {
    %c0_i32 = arith.constant 0 : i32
    %c0_i32_0 = arith.constant 0 : i32
    %c0_i32_1 = arith.constant 0 : i32
    return %c0_i32, %c0_i32_0 : i32, i32
  }
  func.func @transform_2(%arg0: i32) -> (i32, i32) {
    %c0_i32 = arith.constant 0 : i32
    %c0_i32_0 = arith.constant 0 : i32
    %c0_i32_1 = arith.constant 0 : i32
    return %c0_i32, %c0_i32_0 : i32, i32
  }
  func.func @transform_3(%arg0: i32) -> (i32, i32, i32) {
    %c0_i32 = arith.constant 0 : i32
    %c0_i32_0 = arith.constant 0 : i32
    %c0_i32_1 = arith.constant 0 : i32
    %c0_i32_2 = arith.constant 0 : i32
    return %c0_i32, %c0_i32_0, %c0_i32_1 : i32, i32, i32
  }
  func.func @transform_4(%arg0: i32) -> (i32, i32) {
    %c0_i32 = arith.constant 0 : i32
    %c0_i32_0 = arith.constant 0 : i32
    %c0_i32_1 = arith.constant 0 : i32
    return %c0_i32, %c0_i32_0 : i32, i32
  }
  func.func @transform_5(%arg0: i32) -> (i32, i32, i32) {
    %c0_i32 = arith.constant 0 : i32
    %c0_i32_0 = arith.constant 0 : i32
    %c0_i32_1 = arith.constant 0 : i32
    return %arg0, %c0_i32, %c0_i32_0 : i32, i32, i32
  }
}

module attributes {stable_mosaic.version = 11 : i64} {
  func.func @_fire_kernel(%arg0: i32, %arg1: memref<1x17x128xbf16, #tpu.memory_space<vmem>>, %arg2: memref<128x16xbf16, #tpu.memory_space<vmem>>, %arg3: memref<1x16xf32, #tpu.memory_space<vmem>>, %arg4: memref<3x16x128xbf16, #tpu.memory_space<vmem>>, %arg5: memref<1x128xf32, #tpu.memory_space<vmem>>, %arg6: memref<1x17x128xbf16, #tpu.memory_space<vmem>>, %arg7: memref<19x16xbf16, #tpu.memory_space<vmem>>) attributes {dimension_semantics = [#tpu.dimension_semantics<parallel>], iteration_bounds = array<i64: 2>, scalar_prefetch = 0 : i64, scratch_operands = 1 : i64, tpu.core_type = #tpu.core_type<tc>, window_params = [{transform_indices = @transform_0, window_bounds = array<i64: 1, 17, 128>}, {pipeline_mode = #tpu.pipeline_mode<synchronous>, transform_indices = @transform_1, window_bounds = array<i64: 128, 16>}, {pipeline_mode = #tpu.pipeline_mode<synchronous>, transform_indices = @transform_2, window_bounds = array<i64: 1, 16>}, {pipeline_mode = #tpu.pipeline_mode<synchronous>, transform_indices = @transform_3, window_bounds = array<i64: 3, 16, 128>}, {pipeline_mode = #tpu.pipeline_mode<synchronous>, transform_indices = @transform_4, window_bounds = array<i64: 1, 128>}, {transform_indices = @transform_5, window_bounds = array<i64: 1, 17, 128>}]} {
    %c0 = arith.constant 0 : index
    %c0_0 = arith.constant 0 : index
    %c0_1 = arith.constant 0 : index
    %0 = vector.load %arg1[%c0, %c0_0, %c0_1] : memref<1x17x128xbf16, #tpu.memory_space<vmem>>, vector<1x17x128xbf16>
    %1 = vector.shape_cast %0 : vector<1x17x128xbf16> to vector<17x128xbf16>
    %c0_2 = arith.constant 0 : index
    %c0_3 = arith.constant 0 : index
    %2 = vector.load %arg2[%c0_2, %c0_3] : memref<128x16xbf16, #tpu.memory_space<vmem>>, vector<128x16xbf16>
    %cst = arith.constant dense<0.000000e+00> : vector<17x16xf32>
    %3 = tpu.matmul %1, %2, %cst {dimension_numbers = #tpu.dot_dimension_numbers<[1], [0], [0], [1], [0, 0, 1, 1], [], []>} : vector<17x128xbf16>, vector<128x16xbf16>, vector<17x16xf32> -> vector<17x16xf32>
    %c0_4 = arith.constant 0 : index
    %c0_5 = arith.constant 0 : index
    %4 = vector.load %arg3[%c0_4, %c0_5] : memref<1x16xf32, #tpu.memory_space<vmem>>, vector<1x16xf32>
    %5 = vector.broadcast %4 : vector<1x16xf32> to vector<17x16xf32>
    %6 = arith.addf %3, %5 : vector<17x16xf32>
    %cst_6 = arith.constant 0.000000e+00 : f32
    %7 = vector.broadcast %cst_6 : f32 to vector<17x16xf32>
    %8 = arith.maximumf %6, %7 : vector<17x16xf32>
    %cst_7 = arith.constant 0.000000e+00 : bf16
    %9 = vector.broadcast %cst_7 : bf16 to vector<1x16xbf16>
    %c0_8 = arith.constant 0 : index
    %c0_9 = arith.constant 0 : index
    %10 = vector.load %arg7[%c0_8, %c0_9] : memref<19x16xbf16, #tpu.memory_space<vmem>>, vector<1x16xbf16>
    tpu.vector_store %arg7[%c0_8, %c0_9], %9 {strides = array<i32>} : memref<19x16xbf16, #tpu.memory_space<vmem>>, vector<1x16xbf16>,
    %c18 = arith.constant 18 : index
    %c0_10 = arith.constant 0 : index
    %11 = vector.load %arg7[%c18, %c0_10] : memref<19x16xbf16, #tpu.memory_space<vmem>>, vector<1x16xbf16>
    tpu.vector_store %arg7[%c18, %c0_10], %9 {strides = array<i32>} : memref<19x16xbf16, #tpu.memory_space<vmem>>, vector<1x16xbf16>,
    %12 = arith.truncf %8 : vector<17x16xf32> to vector<17x16xbf16>
    %c1 = arith.constant 1 : index
    %c0_11 = arith.constant 0 : index
    %13 = vector.load %arg7[%c1, %c0_11] : memref<19x16xbf16, #tpu.memory_space<vmem>>, vector<17x16xbf16>
    tpu.vector_store %arg7[%c1, %c0_11], %12 {strides = array<i32>} : memref<19x16xbf16, #tpu.memory_space<vmem>>, vector<17x16xbf16>,
    %c0_12 = arith.constant 0 : index
    %c0_13 = arith.constant 0 : index
    %14 = vector.load %arg7[%c0_12, %c0_13] : memref<19x16xbf16, #tpu.memory_space<vmem>>, vector<19x16xbf16>
    %cst_14 = arith.constant 0.000000e+00 : f32
    %15 = vector.broadcast %cst_14 : f32 to vector<17x128xf32>
    %16 = vector.extract_strided_slice %14 {offsets = [0, 0], sizes = [17, 16], strides = [1, 1]} : vector<19x16xbf16> to vector<17x16xbf16>
    %c0_15 = arith.constant 0 : index
    %c0_16 = arith.constant 0 : index
    %c0_17 = arith.constant 0 : index
    %17 = vector.load %arg4[%c0_15, %c0_16, %c0_17] : memref<3x16x128xbf16, #tpu.memory_space<vmem>>, vector<1x16x128xbf16>
    %18 = vector.shape_cast %17 : vector<1x16x128xbf16> to vector<16x128xbf16>
    %cst_18 = arith.constant dense<0.000000e+00> : vector<17x128xf32>
    %19 = tpu.matmul %16, %18, %cst_18 {dimension_numbers = #tpu.dot_dimension_numbers<[1], [0], [0], [1], [0, 0, 1, 1], [], []>} : vector<17x16xbf16>, vector<16x128xbf16>, vector<17x128xf32> -> vector<17x128xf32>
    %20 = arith.addf %15, %19 : vector<17x128xf32>
    %21 = vector.extract_strided_slice %14 {offsets = [1, 0], sizes = [17, 16], strides = [1, 1]} : vector<19x16xbf16> to vector<17x16xbf16>
    %c1_19 = arith.constant 1 : index
    %c0_20 = arith.constant 0 : index
    %c0_21 = arith.constant 0 : index
    %22 = vector.load %arg4[%c1_19, %c0_20, %c0_21] : memref<3x16x128xbf16, #tpu.memory_space<vmem>>, vector<1x16x128xbf16>
    %23 = vector.shape_cast %22 : vector<1x16x128xbf16> to vector<16x128xbf16>
    %cst_22 = arith.constant dense<0.000000e+00> : vector<17x128xf32>
    %24 = tpu.matmul %21, %23, %cst_22 {dimension_numbers = #tpu.dot_dimension_numbers<[1], [0], [0], [1], [0, 0, 1, 1], [], []>} : vector<17x16xbf16>, vector<16x128xbf16>, vector<17x128xf32> -> vector<17x128xf32>
    %25 = arith.addf %20, %24 : vector<17x128xf32>
    %26 = vector.extract_strided_slice %14 {offsets = [2, 0], sizes = [17, 16], strides = [1, 1]} : vector<19x16xbf16> to vector<17x16xbf16>
    %c2 = arith.constant 2 : index
    %c0_23 = arith.constant 0 : index
    %c0_24 = arith.constant 0 : index
    %27 = vector.load %arg4[%c2, %c0_23, %c0_24] : memref<3x16x128xbf16, #tpu.memory_space<vmem>>, vector<1x16x128xbf16>
    %28 = vector.shape_cast %27 : vector<1x16x128xbf16> to vector<16x128xbf16>
    %cst_25 = arith.constant dense<0.000000e+00> : vector<17x128xf32>
    %29 = tpu.matmul %26, %28, %cst_25 {dimension_numbers = #tpu.dot_dimension_numbers<[1], [0], [0], [1], [0, 0, 1, 1], [], []>} : vector<17x16xbf16>, vector<16x128xbf16>, vector<17x128xf32> -> vector<17x128xf32>
    %30 = arith.addf %25, %29 : vector<17x128xf32>
    %c0_26 = arith.constant 0 : index
    %c0_27 = arith.constant 0 : index
    %31 = vector.load %arg5[%c0_26, %c0_27] : memref<1x128xf32, #tpu.memory_space<vmem>>, vector<1x128xf32>
    %32 = vector.broadcast %31 : vector<1x128xf32> to vector<17x128xf32>
    %33 = arith.addf %30, %32 : vector<17x128xf32>
    %cst_28 = arith.constant 0.000000e+00 : f32
    %34 = vector.broadcast %cst_28 : f32 to vector<17x128xf32>
    %35 = arith.maximumf %33, %34 : vector<17x128xf32>
    %36 = arith.truncf %35 : vector<17x128xf32> to vector<17x128xbf16>
    %c0_29 = arith.constant 0 : index
    %c0_30 = arith.constant 0 : index
    %c0_31 = arith.constant 0 : index
    %37 = vector.load %arg6[%c0_29, %c0_30, %c0_31] : memref<1x17x128xbf16, #tpu.memory_space<vmem>>, vector<1x17x128xbf16>
    %38 = vector.shape_cast %37 : vector<1x17x128xbf16> to vector<17x128xbf16>
    %39 = vector.shape_cast %36 : vector<17x128xbf16> to vector<1x17x128xbf16>
    tpu.vector_store %arg6[%c0_29, %c0_30, %c0_31], %39 {strides = array<i32>} : memref<1x17x128xbf16, #tpu.memory_space<vmem>>, vector<1x17x128xbf16>,
    return
  }
  func.func @transform_0(%arg0: i32) -> (i32, i32, i32) {
    %c0_i32 = arith.constant 0 : i32
    %c0_i32_0 = arith.constant 0 : i32
    %c0_i32_1 = arith.constant 0 : i32
    return %arg0, %c0_i32, %c0_i32_0 : i32, i32, i32
  }
  func.func @transform_1(%arg0: i32) -> (i32, i32) {
    %c0_i32 = arith.constant 0 : i32
    %c0_i32_0 = arith.constant 0 : i32
    %c0_i32_1 = arith.constant 0 : i32
    return %c0_i32, %c0_i32_0 : i32, i32
  }
  func.func @transform_2(%arg0: i32) -> (i32, i32) {
    %c0_i32 = arith.constant 0 : i32
    %c0_i32_0 = arith.constant 0 : i32
    %c0_i32_1 = arith.constant 0 : i32
    return %c0_i32, %c0_i32_0 : i32, i32
  }
  func.func @transform_3(%arg0: i32) -> (i32, i32, i32) {
    %c0_i32 = arith.constant 0 : i32
    %c0_i32_0 = arith.constant 0 : i32
    %c0_i32_1 = arith.constant 0 : i32
    %c0_i32_2 = arith.constant 0 : i32
    return %c0_i32, %c0_i32_0, %c0_i32_1 : i32, i32, i32
  }
  func.func @transform_4(%arg0: i32) -> (i32, i32) {
    %c0_i32 = arith.constant 0 : i32
    %c0_i32_0 = arith.constant 0 : i32
    %c0_i32_1 = arith.constant 0 : i32
    return %c0_i32, %c0_i32_0 : i32, i32
  }
  func.func @transform_5(%arg0: i32) -> (i32, i32, i32) {
    %c0_i32 = arith.constant 0 : i32
    %c0_i32_0 = arith.constant 0 : i32
    %c0_i32_1 = arith.constant 0 : i32
    return %arg0, %c0_i32, %c0_i32_0 : i32, i32, i32
  }
}

module attributes {stable_mosaic.version = 11 : i64} {
  func.func @_fire_kernel(%arg0: i32, %arg1: memref<1x9x128xbf16, #tpu.memory_space<vmem>>, %arg2: memref<128x32xbf16, #tpu.memory_space<vmem>>, %arg3: memref<1x32xf32, #tpu.memory_space<vmem>>, %arg4: memref<3x32x256xbf16, #tpu.memory_space<vmem>>, %arg5: memref<1x256xf32, #tpu.memory_space<vmem>>, %arg6: memref<1x9x256xbf16, #tpu.memory_space<vmem>>, %arg7: memref<11x32xbf16, #tpu.memory_space<vmem>>) attributes {dimension_semantics = [#tpu.dimension_semantics<parallel>], iteration_bounds = array<i64: 2>, scalar_prefetch = 0 : i64, scratch_operands = 1 : i64, tpu.core_type = #tpu.core_type<tc>, window_params = [{transform_indices = @transform_0, window_bounds = array<i64: 1, 9, 128>}, {pipeline_mode = #tpu.pipeline_mode<synchronous>, transform_indices = @transform_1, window_bounds = array<i64: 128, 32>}, {pipeline_mode = #tpu.pipeline_mode<synchronous>, transform_indices = @transform_2, window_bounds = array<i64: 1, 32>}, {pipeline_mode = #tpu.pipeline_mode<synchronous>, transform_indices = @transform_3, window_bounds = array<i64: 3, 32, 256>}, {pipeline_mode = #tpu.pipeline_mode<synchronous>, transform_indices = @transform_4, window_bounds = array<i64: 1, 256>}, {transform_indices = @transform_5, window_bounds = array<i64: 1, 9, 256>}]} {
    %c0 = arith.constant 0 : index
    %c0_0 = arith.constant 0 : index
    %c0_1 = arith.constant 0 : index
    %0 = vector.load %arg1[%c0, %c0_0, %c0_1] : memref<1x9x128xbf16, #tpu.memory_space<vmem>>, vector<1x9x128xbf16>
    %1 = vector.shape_cast %0 : vector<1x9x128xbf16> to vector<9x128xbf16>
    %c0_2 = arith.constant 0 : index
    %c0_3 = arith.constant 0 : index
    %2 = vector.load %arg2[%c0_2, %c0_3] : memref<128x32xbf16, #tpu.memory_space<vmem>>, vector<128x32xbf16>
    %cst = arith.constant dense<0.000000e+00> : vector<9x32xf32>
    %3 = tpu.matmul %1, %2, %cst {dimension_numbers = #tpu.dot_dimension_numbers<[1], [0], [0], [1], [0, 0, 1, 1], [], []>} : vector<9x128xbf16>, vector<128x32xbf16>, vector<9x32xf32> -> vector<9x32xf32>
    %c0_4 = arith.constant 0 : index
    %c0_5 = arith.constant 0 : index
    %4 = vector.load %arg3[%c0_4, %c0_5] : memref<1x32xf32, #tpu.memory_space<vmem>>, vector<1x32xf32>
    %5 = vector.broadcast %4 : vector<1x32xf32> to vector<9x32xf32>
    %6 = arith.addf %3, %5 : vector<9x32xf32>
    %cst_6 = arith.constant 0.000000e+00 : f32
    %7 = vector.broadcast %cst_6 : f32 to vector<9x32xf32>
    %8 = arith.maximumf %6, %7 : vector<9x32xf32>
    %cst_7 = arith.constant 0.000000e+00 : bf16
    %9 = vector.broadcast %cst_7 : bf16 to vector<1x32xbf16>
    %c0_8 = arith.constant 0 : index
    %c0_9 = arith.constant 0 : index
    %10 = vector.load %arg7[%c0_8, %c0_9] : memref<11x32xbf16, #tpu.memory_space<vmem>>, vector<1x32xbf16>
    tpu.vector_store %arg7[%c0_8, %c0_9], %9 {strides = array<i32>} : memref<11x32xbf16, #tpu.memory_space<vmem>>, vector<1x32xbf16>,
    %c10 = arith.constant 10 : index
    %c0_10 = arith.constant 0 : index
    %11 = vector.load %arg7[%c10, %c0_10] : memref<11x32xbf16, #tpu.memory_space<vmem>>, vector<1x32xbf16>
    tpu.vector_store %arg7[%c10, %c0_10], %9 {strides = array<i32>} : memref<11x32xbf16, #tpu.memory_space<vmem>>, vector<1x32xbf16>,
    %12 = arith.truncf %8 : vector<9x32xf32> to vector<9x32xbf16>
    %c1 = arith.constant 1 : index
    %c0_11 = arith.constant 0 : index
    %13 = vector.load %arg7[%c1, %c0_11] : memref<11x32xbf16, #tpu.memory_space<vmem>>, vector<9x32xbf16>
    tpu.vector_store %arg7[%c1, %c0_11], %12 {strides = array<i32>} : memref<11x32xbf16, #tpu.memory_space<vmem>>, vector<9x32xbf16>,
    %c0_12 = arith.constant 0 : index
    %c0_13 = arith.constant 0 : index
    %14 = vector.load %arg7[%c0_12, %c0_13] : memref<11x32xbf16, #tpu.memory_space<vmem>>, vector<11x32xbf16>
    %cst_14 = arith.constant 0.000000e+00 : f32
    %15 = vector.broadcast %cst_14 : f32 to vector<9x256xf32>
    %16 = vector.extract_strided_slice %14 {offsets = [0, 0], sizes = [9, 32], strides = [1, 1]} : vector<11x32xbf16> to vector<9x32xbf16>
    %c0_15 = arith.constant 0 : index
    %c0_16 = arith.constant 0 : index
    %c0_17 = arith.constant 0 : index
    %17 = vector.load %arg4[%c0_15, %c0_16, %c0_17] : memref<3x32x256xbf16, #tpu.memory_space<vmem>>, vector<1x32x256xbf16>
    %18 = vector.shape_cast %17 : vector<1x32x256xbf16> to vector<32x256xbf16>
    %cst_18 = arith.constant dense<0.000000e+00> : vector<9x256xf32>
    %19 = tpu.matmul %16, %18, %cst_18 {dimension_numbers = #tpu.dot_dimension_numbers<[1], [0], [0], [1], [0, 0, 1, 1], [], []>} : vector<9x32xbf16>, vector<32x256xbf16>, vector<9x256xf32> -> vector<9x256xf32>
    %20 = arith.addf %15, %19 : vector<9x256xf32>
    %21 = vector.extract_strided_slice %14 {offsets = [1, 0], sizes = [9, 32], strides = [1, 1]} : vector<11x32xbf16> to vector<9x32xbf16>
    %c1_19 = arith.constant 1 : index
    %c0_20 = arith.constant 0 : index
    %c0_21 = arith.constant 0 : index
    %22 = vector.load %arg4[%c1_19, %c0_20, %c0_21] : memref<3x32x256xbf16, #tpu.memory_space<vmem>>, vector<1x32x256xbf16>
    %23 = vector.shape_cast %22 : vector<1x32x256xbf16> to vector<32x256xbf16>
    %cst_22 = arith.constant dense<0.000000e+00> : vector<9x256xf32>
    %24 = tpu.matmul %21, %23, %cst_22 {dimension_numbers = #tpu.dot_dimension_numbers<[1], [0], [0], [1], [0, 0, 1, 1], [], []>} : vector<9x32xbf16>, vector<32x256xbf16>, vector<9x256xf32> -> vector<9x256xf32>
    %25 = arith.addf %20, %24 : vector<9x256xf32>
    %26 = vector.extract_strided_slice %14 {offsets = [2, 0], sizes = [9, 32], strides = [1, 1]} : vector<11x32xbf16> to vector<9x32xbf16>
    %c2 = arith.constant 2 : index
    %c0_23 = arith.constant 0 : index
    %c0_24 = arith.constant 0 : index
    %27 = vector.load %arg4[%c2, %c0_23, %c0_24] : memref<3x32x256xbf16, #tpu.memory_space<vmem>>, vector<1x32x256xbf16>
    %28 = vector.shape_cast %27 : vector<1x32x256xbf16> to vector<32x256xbf16>
    %cst_25 = arith.constant dense<0.000000e+00> : vector<9x256xf32>
    %29 = tpu.matmul %26, %28, %cst_25 {dimension_numbers = #tpu.dot_dimension_numbers<[1], [0], [0], [1], [0, 0, 1, 1], [], []>} : vector<9x32xbf16>, vector<32x256xbf16>, vector<9x256xf32> -> vector<9x256xf32>
    %30 = arith.addf %25, %29 : vector<9x256xf32>
    %c0_26 = arith.constant 0 : index
    %c0_27 = arith.constant 0 : index
    %31 = vector.load %arg5[%c0_26, %c0_27] : memref<1x256xf32, #tpu.memory_space<vmem>>, vector<1x256xf32>
    %32 = vector.broadcast %31 : vector<1x256xf32> to vector<9x256xf32>
    %33 = arith.addf %30, %32 : vector<9x256xf32>
    %cst_28 = arith.constant 0.000000e+00 : f32
    %34 = vector.broadcast %cst_28 : f32 to vector<9x256xf32>
    %35 = arith.maximumf %33, %34 : vector<9x256xf32>
    %36 = arith.truncf %35 : vector<9x256xf32> to vector<9x256xbf16>
    %c0_29 = arith.constant 0 : index
    %c0_30 = arith.constant 0 : index
    %c0_31 = arith.constant 0 : index
    %37 = vector.load %arg6[%c0_29, %c0_30, %c0_31] : memref<1x9x256xbf16, #tpu.memory_space<vmem>>, vector<1x9x256xbf16>
    %38 = vector.shape_cast %37 : vector<1x9x256xbf16> to vector<9x256xbf16>
    %39 = vector.shape_cast %36 : vector<9x256xbf16> to vector<1x9x256xbf16>
    tpu.vector_store %arg6[%c0_29, %c0_30, %c0_31], %39 {strides = array<i32>} : memref<1x9x256xbf16, #tpu.memory_space<vmem>>, vector<1x9x256xbf16>,
    return
  }
  func.func @transform_0(%arg0: i32) -> (i32, i32, i32) {
    %c0_i32 = arith.constant 0 : i32
    %c0_i32_0 = arith.constant 0 : i32
    %c0_i32_1 = arith.constant 0 : i32
    return %arg0, %c0_i32, %c0_i32_0 : i32, i32, i32
  }
  func.func @transform_1(%arg0: i32) -> (i32, i32) {
    %c0_i32 = arith.constant 0 : i32
    %c0_i32_0 = arith.constant 0 : i32
    %c0_i32_1 = arith.constant 0 : i32
    return %c0_i32, %c0_i32_0 : i32, i32
  }
  func.func @transform_2(%arg0: i32) -> (i32, i32) {
    %c0_i32 = arith.constant 0 : i32
    %c0_i32_0 = arith.constant 0 : i32
    %c0_i32_1 = arith.constant 0 : i32
    return %c0_i32, %c0_i32_0 : i32, i32
  }
  func.func @transform_3(%arg0: i32) -> (i32, i32, i32) {
    %c0_i32 = arith.constant 0 : i32
    %c0_i32_0 = arith.constant 0 : i32
    %c0_i32_1 = arith.constant 0 : i32
    %c0_i32_2 = arith.constant 0 : i32
    return %c0_i32, %c0_i32_0, %c0_i32_1 : i32, i32, i32
  }
  func.func @transform_4(%arg0: i32) -> (i32, i32) {
    %c0_i32 = arith.constant 0 : i32
    %c0_i32_0 = arith.constant 0 : i32
    %c0_i32_1 = arith.constant 0 : i32
    return %c0_i32, %c0_i32_0 : i32, i32
  }
  func.func @transform_5(%arg0: i32) -> (i32, i32, i32) {
    %c0_i32 = arith.constant 0 : i32
    %c0_i32_0 = arith.constant 0 : i32
    %c0_i32_1 = arith.constant 0 : i32
    return %arg0, %c0_i32, %c0_i32_0 : i32, i32, i32
  }
}

module attributes {stable_mosaic.version = 11 : i64} {
  func.func @_maxpool_kernel(%arg0: i32, %arg1: memref<1x10x256xbf16, #tpu.memory_space<vmem>>, %arg2: memref<1x9x128xbf16, #tpu.memory_space<vmem>>) attributes {dimension_semantics = [#tpu.dimension_semantics<parallel>], iteration_bounds = array<i64: 2>, scalar_prefetch = 0 : i64, scratch_operands = 0 : i64, tpu.core_type = #tpu.core_type<tc>, window_params = [{transform_indices = @transform_0, window_bounds = array<i64: 1, 10, 256>}, {transform_indices = @transform_1, window_bounds = array<i64: 1, 9, 128>}]} {
    %c0 = arith.constant 0 : index
    %c0_0 = arith.constant 0 : index
    %c0_1 = arith.constant 0 : index
    %0 = vector.load %arg1[%c0, %c0_0, %c0_1] : memref<1x10x256xbf16, #tpu.memory_space<vmem>>, vector<1x10x256xbf16>
    %1 = vector.shape_cast %0 : vector<1x10x256xbf16> to vector<10x256xbf16>
    %2 = vector.extract_strided_slice %1 {offsets = [0, 0], sizes = [9, 128], strides = [1, 1]} : vector<10x256xbf16> to vector<9x128xbf16>
    %3 = vector.extract_strided_slice %1 {offsets = [0, 128], sizes = [9, 128], strides = [1, 1]} : vector<10x256xbf16> to vector<9x128xbf16>
    %4 = vector.extract_strided_slice %1 {offsets = [1, 0], sizes = [9, 128], strides = [1, 1]} : vector<10x256xbf16> to vector<9x128xbf16>
    %5 = arith.maximumf %2, %3 : vector<9x128xbf16>
    %6 = arith.maximumf %5, %4 : vector<9x128xbf16>
    %c0_2 = arith.constant 0 : index
    %c0_3 = arith.constant 0 : index
    %c0_4 = arith.constant 0 : index
    %7 = vector.load %arg2[%c0_2, %c0_3, %c0_4] : memref<1x9x128xbf16, #tpu.memory_space<vmem>>, vector<1x9x128xbf16>
    %8 = vector.shape_cast %7 : vector<1x9x128xbf16> to vector<9x128xbf16>
    %9 = vector.shape_cast %6 : vector<9x128xbf16> to vector<1x9x128xbf16>
    tpu.vector_store %arg2[%c0_2, %c0_3, %c0_4], %9 {strides = array<i32>} : memref<1x9x128xbf16, #tpu.memory_space<vmem>>, vector<1x9x128xbf16>,
    return
  }
  func.func @transform_0(%arg0: i32) -> (i32, i32, i32) {
    %c0_i32 = arith.constant 0 : i32
    %c0_i32_0 = arith.constant 0 : i32
    %c0_i32_1 = arith.constant 0 : i32
    return %arg0, %c0_i32, %c0_i32_0 : i32, i32, i32
  }
  func.func @transform_1(%arg0: i32) -> (i32, i32, i32) {
    %c0_i32 = arith.constant 0 : i32
    %c0_i32_0 = arith.constant 0 : i32
    %c0_i32_1 = arith.constant 0 : i32
    return %arg0, %c0_i32, %c0_i32_0 : i32, i32, i32
  }
}

module attributes {stable_mosaic.version = 11 : i64} {
  func.func @_fire_kernel(%arg0: i32, %arg1: memref<1x9x256xbf16, #tpu.memory_space<vmem>>, %arg2: memref<256x32xbf16, #tpu.memory_space<vmem>>, %arg3: memref<1x32xf32, #tpu.memory_space<vmem>>, %arg4: memref<3x32x256xbf16, #tpu.memory_space<vmem>>, %arg5: memref<1x256xf32, #tpu.memory_space<vmem>>, %arg6: memref<1x9x256xbf16, #tpu.memory_space<vmem>>, %arg7: memref<11x32xbf16, #tpu.memory_space<vmem>>) attributes {dimension_semantics = [#tpu.dimension_semantics<parallel>], iteration_bounds = array<i64: 2>, scalar_prefetch = 0 : i64, scratch_operands = 1 : i64, tpu.core_type = #tpu.core_type<tc>, window_params = [{transform_indices = @transform_0, window_bounds = array<i64: 1, 9, 256>}, {pipeline_mode = #tpu.pipeline_mode<synchronous>, transform_indices = @transform_1, window_bounds = array<i64: 256, 32>}, {pipeline_mode = #tpu.pipeline_mode<synchronous>, transform_indices = @transform_2, window_bounds = array<i64: 1, 32>}, {pipeline_mode = #tpu.pipeline_mode<synchronous>, transform_indices = @transform_3, window_bounds = array<i64: 3, 32, 256>}, {pipeline_mode = #tpu.pipeline_mode<synchronous>, transform_indices = @transform_4, window_bounds = array<i64: 1, 256>}, {transform_indices = @transform_5, window_bounds = array<i64: 1, 9, 256>}]} {
    %c0 = arith.constant 0 : index
    %c0_0 = arith.constant 0 : index
    %c0_1 = arith.constant 0 : index
    %0 = vector.load %arg1[%c0, %c0_0, %c0_1] : memref<1x9x256xbf16, #tpu.memory_space<vmem>>, vector<1x9x256xbf16>
    %1 = vector.shape_cast %0 : vector<1x9x256xbf16> to vector<9x256xbf16>
    %c0_2 = arith.constant 0 : index
    %c0_3 = arith.constant 0 : index
    %2 = vector.load %arg2[%c0_2, %c0_3] : memref<256x32xbf16, #tpu.memory_space<vmem>>, vector<256x32xbf16>
    %cst = arith.constant dense<0.000000e+00> : vector<9x32xf32>
    %3 = tpu.matmul %1, %2, %cst {dimension_numbers = #tpu.dot_dimension_numbers<[1], [0], [0], [1], [0, 0, 1, 1], [], []>} : vector<9x256xbf16>, vector<256x32xbf16>, vector<9x32xf32> -> vector<9x32xf32>
    %c0_4 = arith.constant 0 : index
    %c0_5 = arith.constant 0 : index
    %4 = vector.load %arg3[%c0_4, %c0_5] : memref<1x32xf32, #tpu.memory_space<vmem>>, vector<1x32xf32>
    %5 = vector.broadcast %4 : vector<1x32xf32> to vector<9x32xf32>
    %6 = arith.addf %3, %5 : vector<9x32xf32>
    %cst_6 = arith.constant 0.000000e+00 : f32
    %7 = vector.broadcast %cst_6 : f32 to vector<9x32xf32>
    %8 = arith.maximumf %6, %7 : vector<9x32xf32>
    %cst_7 = arith.constant 0.000000e+00 : bf16
    %9 = vector.broadcast %cst_7 : bf16 to vector<1x32xbf16>
    %c0_8 = arith.constant 0 : index
    %c0_9 = arith.constant 0 : index
    %10 = vector.load %arg7[%c0_8, %c0_9] : memref<11x32xbf16, #tpu.memory_space<vmem>>, vector<1x32xbf16>
    tpu.vector_store %arg7[%c0_8, %c0_9], %9 {strides = array<i32>} : memref<11x32xbf16, #tpu.memory_space<vmem>>, vector<1x32xbf16>,
    %c10 = arith.constant 10 : index
    %c0_10 = arith.constant 0 : index
    %11 = vector.load %arg7[%c10, %c0_10] : memref<11x32xbf16, #tpu.memory_space<vmem>>, vector<1x32xbf16>
    tpu.vector_store %arg7[%c10, %c0_10], %9 {strides = array<i32>} : memref<11x32xbf16, #tpu.memory_space<vmem>>, vector<1x32xbf16>,
    %12 = arith.truncf %8 : vector<9x32xf32> to vector<9x32xbf16>
    %c1 = arith.constant 1 : index
    %c0_11 = arith.constant 0 : index
    %13 = vector.load %arg7[%c1, %c0_11] : memref<11x32xbf16, #tpu.memory_space<vmem>>, vector<9x32xbf16>
    tpu.vector_store %arg7[%c1, %c0_11], %12 {strides = array<i32>} : memref<11x32xbf16, #tpu.memory_space<vmem>>, vector<9x32xbf16>,
    %c0_12 = arith.constant 0 : index
    %c0_13 = arith.constant 0 : index
    %14 = vector.load %arg7[%c0_12, %c0_13] : memref<11x32xbf16, #tpu.memory_space<vmem>>, vector<11x32xbf16>
    %cst_14 = arith.constant 0.000000e+00 : f32
    %15 = vector.broadcast %cst_14 : f32 to vector<9x256xf32>
    %16 = vector.extract_strided_slice %14 {offsets = [0, 0], sizes = [9, 32], strides = [1, 1]} : vector<11x32xbf16> to vector<9x32xbf16>
    %c0_15 = arith.constant 0 : index
    %c0_16 = arith.constant 0 : index
    %c0_17 = arith.constant 0 : index
    %17 = vector.load %arg4[%c0_15, %c0_16, %c0_17] : memref<3x32x256xbf16, #tpu.memory_space<vmem>>, vector<1x32x256xbf16>
    %18 = vector.shape_cast %17 : vector<1x32x256xbf16> to vector<32x256xbf16>
    %cst_18 = arith.constant dense<0.000000e+00> : vector<9x256xf32>
    %19 = tpu.matmul %16, %18, %cst_18 {dimension_numbers = #tpu.dot_dimension_numbers<[1], [0], [0], [1], [0, 0, 1, 1], [], []>} : vector<9x32xbf16>, vector<32x256xbf16>, vector<9x256xf32> -> vector<9x256xf32>
    %20 = arith.addf %15, %19 : vector<9x256xf32>
    %21 = vector.extract_strided_slice %14 {offsets = [1, 0], sizes = [9, 32], strides = [1, 1]} : vector<11x32xbf16> to vector<9x32xbf16>
    %c1_19 = arith.constant 1 : index
    %c0_20 = arith.constant 0 : index
    %c0_21 = arith.constant 0 : index
    %22 = vector.load %arg4[%c1_19, %c0_20, %c0_21] : memref<3x32x256xbf16, #tpu.memory_space<vmem>>, vector<1x32x256xbf16>
    %23 = vector.shape_cast %22 : vector<1x32x256xbf16> to vector<32x256xbf16>
    %cst_22 = arith.constant dense<0.000000e+00> : vector<9x256xf32>
    %24 = tpu.matmul %21, %23, %cst_22 {dimension_numbers = #tpu.dot_dimension_numbers<[1], [0], [0], [1], [0, 0, 1, 1], [], []>} : vector<9x32xbf16>, vector<32x256xbf16>, vector<9x256xf32> -> vector<9x256xf32>
    %25 = arith.addf %20, %24 : vector<9x256xf32>
    %26 = vector.extract_strided_slice %14 {offsets = [2, 0], sizes = [9, 32], strides = [1, 1]} : vector<11x32xbf16> to vector<9x32xbf16>
    %c2 = arith.constant 2 : index
    %c0_23 = arith.constant 0 : index
    %c0_24 = arith.constant 0 : index
    %27 = vector.load %arg4[%c2, %c0_23, %c0_24] : memref<3x32x256xbf16, #tpu.memory_space<vmem>>, vector<1x32x256xbf16>
    %28 = vector.shape_cast %27 : vector<1x32x256xbf16> to vector<32x256xbf16>
    %cst_25 = arith.constant dense<0.000000e+00> : vector<9x256xf32>
    %29 = tpu.matmul %26, %28, %cst_25 {dimension_numbers = #tpu.dot_dimension_numbers<[1], [0], [0], [1], [0, 0, 1, 1], [], []>} : vector<9x32xbf16>, vector<32x256xbf16>, vector<9x256xf32> -> vector<9x256xf32>
    %30 = arith.addf %25, %29 : vector<9x256xf32>
    %c0_26 = arith.constant 0 : index
    %c0_27 = arith.constant 0 : index
    %31 = vector.load %arg5[%c0_26, %c0_27] : memref<1x256xf32, #tpu.memory_space<vmem>>, vector<1x256xf32>
    %32 = vector.broadcast %31 : vector<1x256xf32> to vector<9x256xf32>
    %33 = arith.addf %30, %32 : vector<9x256xf32>
    %cst_28 = arith.constant 0.000000e+00 : f32
    %34 = vector.broadcast %cst_28 : f32 to vector<9x256xf32>
    %35 = arith.maximumf %33, %34 : vector<9x256xf32>
    %36 = arith.truncf %35 : vector<9x256xf32> to vector<9x256xbf16>
    %c0_29 = arith.constant 0 : index
    %c0_30 = arith.constant 0 : index
    %c0_31 = arith.constant 0 : index
    %37 = vector.load %arg6[%c0_29, %c0_30, %c0_31] : memref<1x9x256xbf16, #tpu.memory_space<vmem>>, vector<1x9x256xbf16>
    %38 = vector.shape_cast %37 : vector<1x9x256xbf16> to vector<9x256xbf16>
    %39 = vector.shape_cast %36 : vector<9x256xbf16> to vector<1x9x256xbf16>
    tpu.vector_store %arg6[%c0_29, %c0_30, %c0_31], %39 {strides = array<i32>} : memref<1x9x256xbf16, #tpu.memory_space<vmem>>, vector<1x9x256xbf16>,
    return
  }
  func.func @transform_0(%arg0: i32) -> (i32, i32, i32) {
    %c0_i32 = arith.constant 0 : i32
    %c0_i32_0 = arith.constant 0 : i32
    %c0_i32_1 = arith.constant 0 : i32
    return %arg0, %c0_i32, %c0_i32_0 : i32, i32, i32
  }
  func.func @transform_1(%arg0: i32) -> (i32, i32) {
    %c0_i32 = arith.constant 0 : i32
    %c0_i32_0 = arith.constant 0 : i32
    %c0_i32_1 = arith.constant 0 : i32
    return %c0_i32, %c0_i32_0 : i32, i32
  }
  func.func @transform_2(%arg0: i32) -> (i32, i32) {
    %c0_i32 = arith.constant 0 : i32
    %c0_i32_0 = arith.constant 0 : i32
    %c0_i32_1 = arith.constant 0 : i32
    return %c0_i32, %c0_i32_0 : i32, i32
  }
  func.func @transform_3(%arg0: i32) -> (i32, i32, i32) {
    %c0_i32 = arith.constant 0 : i32
    %c0_i32_0 = arith.constant 0 : i32
    %c0_i32_1 = arith.constant 0 : i32
    %c0_i32_2 = arith.constant 0 : i32
    return %c0_i32, %c0_i32_0, %c0_i32_1 : i32, i32, i32
  }
  func.func @transform_4(%arg0: i32) -> (i32, i32) {
    %c0_i32 = arith.constant 0 : i32
    %c0_i32_0 = arith.constant 0 : i32
    %c0_i32_1 = arith.constant 0 : i32
    return %c0_i32, %c0_i32_0 : i32, i32
  }
  func.func @transform_5(%arg0: i32) -> (i32, i32, i32) {
    %c0_i32 = arith.constant 0 : i32
    %c0_i32_0 = arith.constant 0 : i32
    %c0_i32_1 = arith.constant 0 : i32
    return %arg0, %c0_i32, %c0_i32_0 : i32, i32, i32
  }
}

module attributes {stable_mosaic.version = 11 : i64} {
  func.func @_maxpool_kernel(%arg0: i32, %arg1: memref<1x6x512xbf16, #tpu.memory_space<vmem>>, %arg2: memref<1x5x256xbf16, #tpu.memory_space<vmem>>) attributes {dimension_semantics = [#tpu.dimension_semantics<parallel>], iteration_bounds = array<i64: 2>, scalar_prefetch = 0 : i64, scratch_operands = 0 : i64, tpu.core_type = #tpu.core_type<tc>, window_params = [{transform_indices = @transform_0, window_bounds = array<i64: 1, 6, 512>}, {transform_indices = @transform_1, window_bounds = array<i64: 1, 5, 256>}]} {
    %c0 = arith.constant 0 : index
    %c0_0 = arith.constant 0 : index
    %c0_1 = arith.constant 0 : index
    %0 = vector.load %arg1[%c0, %c0_0, %c0_1] : memref<1x6x512xbf16, #tpu.memory_space<vmem>>, vector<1x6x512xbf16>
    %1 = vector.shape_cast %0 : vector<1x6x512xbf16> to vector<6x512xbf16>
    %2 = vector.extract_strided_slice %1 {offsets = [0, 0], sizes = [5, 256], strides = [1, 1]} : vector<6x512xbf16> to vector<5x256xbf16>
    %3 = vector.extract_strided_slice %1 {offsets = [0, 256], sizes = [5, 256], strides = [1, 1]} : vector<6x512xbf16> to vector<5x256xbf16>
    %4 = vector.extract_strided_slice %1 {offsets = [1, 0], sizes = [5, 256], strides = [1, 1]} : vector<6x512xbf16> to vector<5x256xbf16>
    %5 = arith.maximumf %2, %3 : vector<5x256xbf16>
    %6 = arith.maximumf %5, %4 : vector<5x256xbf16>
    %c0_2 = arith.constant 0 : index
    %c0_3 = arith.constant 0 : index
    %c0_4 = arith.constant 0 : index
    %7 = vector.load %arg2[%c0_2, %c0_3, %c0_4] : memref<1x5x256xbf16, #tpu.memory_space<vmem>>, vector<1x5x256xbf16>
    %8 = vector.shape_cast %7 : vector<1x5x256xbf16> to vector<5x256xbf16>
    %9 = vector.shape_cast %6 : vector<5x256xbf16> to vector<1x5x256xbf16>
    tpu.vector_store %arg2[%c0_2, %c0_3, %c0_4], %9 {strides = array<i32>} : memref<1x5x256xbf16, #tpu.memory_space<vmem>>, vector<1x5x256xbf16>,
    return
  }
  func.func @transform_0(%arg0: i32) -> (i32, i32, i32) {
    %c0_i32 = arith.constant 0 : i32
    %c0_i32_0 = arith.constant 0 : i32
    %c0_i32_1 = arith.constant 0 : i32
    return %arg0, %c0_i32, %c0_i32_0 : i32, i32, i32
  }
  func.func @transform_1(%arg0: i32) -> (i32, i32, i32) {
    %c0_i32 = arith.constant 0 : i32
    %c0_i32_0 = arith.constant 0 : i32
    %c0_i32_1 = arith.constant 0 : i32
    return %arg0, %c0_i32, %c0_i32_0 : i32, i32, i32
  }
}

module attributes {stable_mosaic.version = 11 : i64} {
  func.func @_fire_kernel(%arg0: i32, %arg1: memref<1x5x256xbf16, #tpu.memory_space<vmem>>, %arg2: memref<256x48xbf16, #tpu.memory_space<vmem>>, %arg3: memref<1x48xf32, #tpu.memory_space<vmem>>, %arg4: memref<3x48x384xbf16, #tpu.memory_space<vmem>>, %arg5: memref<1x384xf32, #tpu.memory_space<vmem>>, %arg6: memref<1x5x384xbf16, #tpu.memory_space<vmem>>, %arg7: memref<7x48xbf16, #tpu.memory_space<vmem>>) attributes {dimension_semantics = [#tpu.dimension_semantics<parallel>], iteration_bounds = array<i64: 2>, scalar_prefetch = 0 : i64, scratch_operands = 1 : i64, tpu.core_type = #tpu.core_type<tc>, window_params = [{transform_indices = @transform_0, window_bounds = array<i64: 1, 5, 256>}, {pipeline_mode = #tpu.pipeline_mode<synchronous>, transform_indices = @transform_1, window_bounds = array<i64: 256, 48>}, {pipeline_mode = #tpu.pipeline_mode<synchronous>, transform_indices = @transform_2, window_bounds = array<i64: 1, 48>}, {pipeline_mode = #tpu.pipeline_mode<synchronous>, transform_indices = @transform_3, window_bounds = array<i64: 3, 48, 384>}, {pipeline_mode = #tpu.pipeline_mode<synchronous>, transform_indices = @transform_4, window_bounds = array<i64: 1, 384>}, {transform_indices = @transform_5, window_bounds = array<i64: 1, 5, 384>}]} {
    %c0 = arith.constant 0 : index
    %c0_0 = arith.constant 0 : index
    %c0_1 = arith.constant 0 : index
    %0 = vector.load %arg1[%c0, %c0_0, %c0_1] : memref<1x5x256xbf16, #tpu.memory_space<vmem>>, vector<1x5x256xbf16>
    %1 = vector.shape_cast %0 : vector<1x5x256xbf16> to vector<5x256xbf16>
    %c0_2 = arith.constant 0 : index
    %c0_3 = arith.constant 0 : index
    %2 = vector.load %arg2[%c0_2, %c0_3] : memref<256x48xbf16, #tpu.memory_space<vmem>>, vector<256x48xbf16>
    %cst = arith.constant dense<0.000000e+00> : vector<5x48xf32>
    %3 = tpu.matmul %1, %2, %cst {dimension_numbers = #tpu.dot_dimension_numbers<[1], [0], [0], [1], [0, 0, 1, 1], [], []>} : vector<5x256xbf16>, vector<256x48xbf16>, vector<5x48xf32> -> vector<5x48xf32>
    %c0_4 = arith.constant 0 : index
    %c0_5 = arith.constant 0 : index
    %4 = vector.load %arg3[%c0_4, %c0_5] : memref<1x48xf32, #tpu.memory_space<vmem>>, vector<1x48xf32>
    %5 = vector.broadcast %4 : vector<1x48xf32> to vector<5x48xf32>
    %6 = arith.addf %3, %5 : vector<5x48xf32>
    %cst_6 = arith.constant 0.000000e+00 : f32
    %7 = vector.broadcast %cst_6 : f32 to vector<5x48xf32>
    %8 = arith.maximumf %6, %7 : vector<5x48xf32>
    %cst_7 = arith.constant 0.000000e+00 : bf16
    %9 = vector.broadcast %cst_7 : bf16 to vector<1x48xbf16>
    %c0_8 = arith.constant 0 : index
    %c0_9 = arith.constant 0 : index
    %10 = vector.load %arg7[%c0_8, %c0_9] : memref<7x48xbf16, #tpu.memory_space<vmem>>, vector<1x48xbf16>
    tpu.vector_store %arg7[%c0_8, %c0_9], %9 {strides = array<i32>} : memref<7x48xbf16, #tpu.memory_space<vmem>>, vector<1x48xbf16>,
    %c6 = arith.constant 6 : index
    %c0_10 = arith.constant 0 : index
    %11 = vector.load %arg7[%c6, %c0_10] : memref<7x48xbf16, #tpu.memory_space<vmem>>, vector<1x48xbf16>
    tpu.vector_store %arg7[%c6, %c0_10], %9 {strides = array<i32>} : memref<7x48xbf16, #tpu.memory_space<vmem>>, vector<1x48xbf16>,
    %12 = arith.truncf %8 : vector<5x48xf32> to vector<5x48xbf16>
    %c1 = arith.constant 1 : index
    %c0_11 = arith.constant 0 : index
    %13 = vector.load %arg7[%c1, %c0_11] : memref<7x48xbf16, #tpu.memory_space<vmem>>, vector<5x48xbf16>
    tpu.vector_store %arg7[%c1, %c0_11], %12 {strides = array<i32>} : memref<7x48xbf16, #tpu.memory_space<vmem>>, vector<5x48xbf16>,
    %c0_12 = arith.constant 0 : index
    %c0_13 = arith.constant 0 : index
    %14 = vector.load %arg7[%c0_12, %c0_13] : memref<7x48xbf16, #tpu.memory_space<vmem>>, vector<7x48xbf16>
    %cst_14 = arith.constant 0.000000e+00 : f32
    %15 = vector.broadcast %cst_14 : f32 to vector<5x384xf32>
    %16 = vector.extract_strided_slice %14 {offsets = [0, 0], sizes = [5, 48], strides = [1, 1]} : vector<7x48xbf16> to vector<5x48xbf16>
    %c0_15 = arith.constant 0 : index
    %c0_16 = arith.constant 0 : index
    %c0_17 = arith.constant 0 : index
    %17 = vector.load %arg4[%c0_15, %c0_16, %c0_17] : memref<3x48x384xbf16, #tpu.memory_space<vmem>>, vector<1x48x384xbf16>
    %18 = vector.shape_cast %17 : vector<1x48x384xbf16> to vector<48x384xbf16>
    %cst_18 = arith.constant dense<0.000000e+00> : vector<5x384xf32>
    %19 = tpu.matmul %16, %18, %cst_18 {dimension_numbers = #tpu.dot_dimension_numbers<[1], [0], [0], [1], [0, 0, 1, 1], [], []>} : vector<5x48xbf16>, vector<48x384xbf16>, vector<5x384xf32> -> vector<5x384xf32>
    %20 = arith.addf %15, %19 : vector<5x384xf32>
    %21 = vector.extract_strided_slice %14 {offsets = [1, 0], sizes = [5, 48], strides = [1, 1]} : vector<7x48xbf16> to vector<5x48xbf16>
    %c1_19 = arith.constant 1 : index
    %c0_20 = arith.constant 0 : index
    %c0_21 = arith.constant 0 : index
    %22 = vector.load %arg4[%c1_19, %c0_20, %c0_21] : memref<3x48x384xbf16, #tpu.memory_space<vmem>>, vector<1x48x384xbf16>
    %23 = vector.shape_cast %22 : vector<1x48x384xbf16> to vector<48x384xbf16>
    %cst_22 = arith.constant dense<0.000000e+00> : vector<5x384xf32>
    %24 = tpu.matmul %21, %23, %cst_22 {dimension_numbers = #tpu.dot_dimension_numbers<[1], [0], [0], [1], [0, 0, 1, 1], [], []>} : vector<5x48xbf16>, vector<48x384xbf16>, vector<5x384xf32> -> vector<5x384xf32>
    %25 = arith.addf %20, %24 : vector<5x384xf32>
    %26 = vector.extract_strided_slice %14 {offsets = [2, 0], sizes = [5, 48], strides = [1, 1]} : vector<7x48xbf16> to vector<5x48xbf16>
    %c2 = arith.constant 2 : index
    %c0_23 = arith.constant 0 : index
    %c0_24 = arith.constant 0 : index
    %27 = vector.load %arg4[%c2, %c0_23, %c0_24] : memref<3x48x384xbf16, #tpu.memory_space<vmem>>, vector<1x48x384xbf16>
    %28 = vector.shape_cast %27 : vector<1x48x384xbf16> to vector<48x384xbf16>
    %cst_25 = arith.constant dense<0.000000e+00> : vector<5x384xf32>
    %29 = tpu.matmul %26, %28, %cst_25 {dimension_numbers = #tpu.dot_dimension_numbers<[1], [0], [0], [1], [0, 0, 1, 1], [], []>} : vector<5x48xbf16>, vector<48x384xbf16>, vector<5x384xf32> -> vector<5x384xf32>
    %30 = arith.addf %25, %29 : vector<5x384xf32>
    %c0_26 = arith.constant 0 : index
    %c0_27 = arith.constant 0 : index
    %31 = vector.load %arg5[%c0_26, %c0_27] : memref<1x384xf32, #tpu.memory_space<vmem>>, vector<1x384xf32>
    %32 = vector.broadcast %31 : vector<1x384xf32> to vector<5x384xf32>
    %33 = arith.addf %30, %32 : vector<5x384xf32>
    %cst_28 = arith.constant 0.000000e+00 : f32
    %34 = vector.broadcast %cst_28 : f32 to vector<5x384xf32>
    %35 = arith.maximumf %33, %34 : vector<5x384xf32>
    %36 = arith.truncf %35 : vector<5x384xf32> to vector<5x384xbf16>
    %c0_29 = arith.constant 0 : index
    %c0_30 = arith.constant 0 : index
    %c0_31 = arith.constant 0 : index
    %37 = vector.load %arg6[%c0_29, %c0_30, %c0_31] : memref<1x5x384xbf16, #tpu.memory_space<vmem>>, vector<1x5x384xbf16>
    %38 = vector.shape_cast %37 : vector<1x5x384xbf16> to vector<5x384xbf16>
    %39 = vector.shape_cast %36 : vector<5x384xbf16> to vector<1x5x384xbf16>
    tpu.vector_store %arg6[%c0_29, %c0_30, %c0_31], %39 {strides = array<i32>} : memref<1x5x384xbf16, #tpu.memory_space<vmem>>, vector<1x5x384xbf16>,
    return
  }
  func.func @transform_0(%arg0: i32) -> (i32, i32, i32) {
    %c0_i32 = arith.constant 0 : i32
    %c0_i32_0 = arith.constant 0 : i32
    %c0_i32_1 = arith.constant 0 : i32
    return %arg0, %c0_i32, %c0_i32_0 : i32, i32, i32
  }
  func.func @transform_1(%arg0: i32) -> (i32, i32) {
    %c0_i32 = arith.constant 0 : i32
    %c0_i32_0 = arith.constant 0 : i32
    %c0_i32_1 = arith.constant 0 : i32
    return %c0_i32, %c0_i32_0 : i32, i32
  }
  func.func @transform_2(%arg0: i32) -> (i32, i32) {
    %c0_i32 = arith.constant 0 : i32
    %c0_i32_0 = arith.constant 0 : i32
    %c0_i32_1 = arith.constant 0 : i32
    return %c0_i32, %c0_i32_0 : i32, i32
  }
  func.func @transform_3(%arg0: i32) -> (i32, i32, i32) {
    %c0_i32 = arith.constant 0 : i32
    %c0_i32_0 = arith.constant 0 : i32
    %c0_i32_1 = arith.constant 0 : i32
    %c0_i32_2 = arith.constant 0 : i32
    return %c0_i32, %c0_i32_0, %c0_i32_1 : i32, i32, i32
  }
  func.func @transform_4(%arg0: i32) -> (i32, i32) {
    %c0_i32 = arith.constant 0 : i32
    %c0_i32_0 = arith.constant 0 : i32
    %c0_i32_1 = arith.constant 0 : i32
    return %c0_i32, %c0_i32_0 : i32, i32
  }
  func.func @transform_5(%arg0: i32) -> (i32, i32, i32) {
    %c0_i32 = arith.constant 0 : i32
    %c0_i32_0 = arith.constant 0 : i32
    %c0_i32_1 = arith.constant 0 : i32
    return %arg0, %c0_i32, %c0_i32_0 : i32, i32, i32
  }
}

module attributes {stable_mosaic.version = 11 : i64} {
  func.func @_fire_kernel(%arg0: i32, %arg1: memref<1x5x384xbf16, #tpu.memory_space<vmem>>, %arg2: memref<384x48xbf16, #tpu.memory_space<vmem>>, %arg3: memref<1x48xf32, #tpu.memory_space<vmem>>, %arg4: memref<3x48x384xbf16, #tpu.memory_space<vmem>>, %arg5: memref<1x384xf32, #tpu.memory_space<vmem>>, %arg6: memref<1x5x384xbf16, #tpu.memory_space<vmem>>, %arg7: memref<7x48xbf16, #tpu.memory_space<vmem>>) attributes {dimension_semantics = [#tpu.dimension_semantics<parallel>], iteration_bounds = array<i64: 2>, scalar_prefetch = 0 : i64, scratch_operands = 1 : i64, tpu.core_type = #tpu.core_type<tc>, window_params = [{transform_indices = @transform_0, window_bounds = array<i64: 1, 5, 384>}, {pipeline_mode = #tpu.pipeline_mode<synchronous>, transform_indices = @transform_1, window_bounds = array<i64: 384, 48>}, {pipeline_mode = #tpu.pipeline_mode<synchronous>, transform_indices = @transform_2, window_bounds = array<i64: 1, 48>}, {pipeline_mode = #tpu.pipeline_mode<synchronous>, transform_indices = @transform_3, window_bounds = array<i64: 3, 48, 384>}, {pipeline_mode = #tpu.pipeline_mode<synchronous>, transform_indices = @transform_4, window_bounds = array<i64: 1, 384>}, {transform_indices = @transform_5, window_bounds = array<i64: 1, 5, 384>}]} {
    %c0 = arith.constant 0 : index
    %c0_0 = arith.constant 0 : index
    %c0_1 = arith.constant 0 : index
    %0 = vector.load %arg1[%c0, %c0_0, %c0_1] : memref<1x5x384xbf16, #tpu.memory_space<vmem>>, vector<1x5x384xbf16>
    %1 = vector.shape_cast %0 : vector<1x5x384xbf16> to vector<5x384xbf16>
    %c0_2 = arith.constant 0 : index
    %c0_3 = arith.constant 0 : index
    %2 = vector.load %arg2[%c0_2, %c0_3] : memref<384x48xbf16, #tpu.memory_space<vmem>>, vector<384x48xbf16>
    %cst = arith.constant dense<0.000000e+00> : vector<5x48xf32>
    %3 = tpu.matmul %1, %2, %cst {dimension_numbers = #tpu.dot_dimension_numbers<[1], [0], [0], [1], [0, 0, 1, 1], [], []>} : vector<5x384xbf16>, vector<384x48xbf16>, vector<5x48xf32> -> vector<5x48xf32>
    %c0_4 = arith.constant 0 : index
    %c0_5 = arith.constant 0 : index
    %4 = vector.load %arg3[%c0_4, %c0_5] : memref<1x48xf32, #tpu.memory_space<vmem>>, vector<1x48xf32>
    %5 = vector.broadcast %4 : vector<1x48xf32> to vector<5x48xf32>
    %6 = arith.addf %3, %5 : vector<5x48xf32>
    %cst_6 = arith.constant 0.000000e+00 : f32
    %7 = vector.broadcast %cst_6 : f32 to vector<5x48xf32>
    %8 = arith.maximumf %6, %7 : vector<5x48xf32>
    %cst_7 = arith.constant 0.000000e+00 : bf16
    %9 = vector.broadcast %cst_7 : bf16 to vector<1x48xbf16>
    %c0_8 = arith.constant 0 : index
    %c0_9 = arith.constant 0 : index
    %10 = vector.load %arg7[%c0_8, %c0_9] : memref<7x48xbf16, #tpu.memory_space<vmem>>, vector<1x48xbf16>
    tpu.vector_store %arg7[%c0_8, %c0_9], %9 {strides = array<i32>} : memref<7x48xbf16, #tpu.memory_space<vmem>>, vector<1x48xbf16>,
    %c6 = arith.constant 6 : index
    %c0_10 = arith.constant 0 : index
    %11 = vector.load %arg7[%c6, %c0_10] : memref<7x48xbf16, #tpu.memory_space<vmem>>, vector<1x48xbf16>
    tpu.vector_store %arg7[%c6, %c0_10], %9 {strides = array<i32>} : memref<7x48xbf16, #tpu.memory_space<vmem>>, vector<1x48xbf16>,
    %12 = arith.truncf %8 : vector<5x48xf32> to vector<5x48xbf16>
    %c1 = arith.constant 1 : index
    %c0_11 = arith.constant 0 : index
    %13 = vector.load %arg7[%c1, %c0_11] : memref<7x48xbf16, #tpu.memory_space<vmem>>, vector<5x48xbf16>
    tpu.vector_store %arg7[%c1, %c0_11], %12 {strides = array<i32>} : memref<7x48xbf16, #tpu.memory_space<vmem>>, vector<5x48xbf16>,
    %c0_12 = arith.constant 0 : index
    %c0_13 = arith.constant 0 : index
    %14 = vector.load %arg7[%c0_12, %c0_13] : memref<7x48xbf16, #tpu.memory_space<vmem>>, vector<7x48xbf16>
    %cst_14 = arith.constant 0.000000e+00 : f32
    %15 = vector.broadcast %cst_14 : f32 to vector<5x384xf32>
    %16 = vector.extract_strided_slice %14 {offsets = [0, 0], sizes = [5, 48], strides = [1, 1]} : vector<7x48xbf16> to vector<5x48xbf16>
    %c0_15 = arith.constant 0 : index
    %c0_16 = arith.constant 0 : index
    %c0_17 = arith.constant 0 : index
    %17 = vector.load %arg4[%c0_15, %c0_16, %c0_17] : memref<3x48x384xbf16, #tpu.memory_space<vmem>>, vector<1x48x384xbf16>
    %18 = vector.shape_cast %17 : vector<1x48x384xbf16> to vector<48x384xbf16>
    %cst_18 = arith.constant dense<0.000000e+00> : vector<5x384xf32>
    %19 = tpu.matmul %16, %18, %cst_18 {dimension_numbers = #tpu.dot_dimension_numbers<[1], [0], [0], [1], [0, 0, 1, 1], [], []>} : vector<5x48xbf16>, vector<48x384xbf16>, vector<5x384xf32> -> vector<5x384xf32>
    %20 = arith.addf %15, %19 : vector<5x384xf32>
    %21 = vector.extract_strided_slice %14 {offsets = [1, 0], sizes = [5, 48], strides = [1, 1]} : vector<7x48xbf16> to vector<5x48xbf16>
    %c1_19 = arith.constant 1 : index
    %c0_20 = arith.constant 0 : index
    %c0_21 = arith.constant 0 : index
    %22 = vector.load %arg4[%c1_19, %c0_20, %c0_21] : memref<3x48x384xbf16, #tpu.memory_space<vmem>>, vector<1x48x384xbf16>
    %23 = vector.shape_cast %22 : vector<1x48x384xbf16> to vector<48x384xbf16>
    %cst_22 = arith.constant dense<0.000000e+00> : vector<5x384xf32>
    %24 = tpu.matmul %21, %23, %cst_22 {dimension_numbers = #tpu.dot_dimension_numbers<[1], [0], [0], [1], [0, 0, 1, 1], [], []>} : vector<5x48xbf16>, vector<48x384xbf16>, vector<5x384xf32> -> vector<5x384xf32>
    %25 = arith.addf %20, %24 : vector<5x384xf32>
    %26 = vector.extract_strided_slice %14 {offsets = [2, 0], sizes = [5, 48], strides = [1, 1]} : vector<7x48xbf16> to vector<5x48xbf16>
    %c2 = arith.constant 2 : index
    %c0_23 = arith.constant 0 : index
    %c0_24 = arith.constant 0 : index
    %27 = vector.load %arg4[%c2, %c0_23, %c0_24] : memref<3x48x384xbf16, #tpu.memory_space<vmem>>, vector<1x48x384xbf16>
    %28 = vector.shape_cast %27 : vector<1x48x384xbf16> to vector<48x384xbf16>
    %cst_25 = arith.constant dense<0.000000e+00> : vector<5x384xf32>
    %29 = tpu.matmul %26, %28, %cst_25 {dimension_numbers = #tpu.dot_dimension_numbers<[1], [0], [0], [1], [0, 0, 1, 1], [], []>} : vector<5x48xbf16>, vector<48x384xbf16>, vector<5x384xf32> -> vector<5x384xf32>
    %30 = arith.addf %25, %29 : vector<5x384xf32>
    %c0_26 = arith.constant 0 : index
    %c0_27 = arith.constant 0 : index
    %31 = vector.load %arg5[%c0_26, %c0_27] : memref<1x384xf32, #tpu.memory_space<vmem>>, vector<1x384xf32>
    %32 = vector.broadcast %31 : vector<1x384xf32> to vector<5x384xf32>
    %33 = arith.addf %30, %32 : vector<5x384xf32>
    %cst_28 = arith.constant 0.000000e+00 : f32
    %34 = vector.broadcast %cst_28 : f32 to vector<5x384xf32>
    %35 = arith.maximumf %33, %34 : vector<5x384xf32>
    %36 = arith.truncf %35 : vector<5x384xf32> to vector<5x384xbf16>
    %c0_29 = arith.constant 0 : index
    %c0_30 = arith.constant 0 : index
    %c0_31 = arith.constant 0 : index
    %37 = vector.load %arg6[%c0_29, %c0_30, %c0_31] : memref<1x5x384xbf16, #tpu.memory_space<vmem>>, vector<1x5x384xbf16>
    %38 = vector.shape_cast %37 : vector<1x5x384xbf16> to vector<5x384xbf16>
    %39 = vector.shape_cast %36 : vector<5x384xbf16> to vector<1x5x384xbf16>
    tpu.vector_store %arg6[%c0_29, %c0_30, %c0_31], %39 {strides = array<i32>} : memref<1x5x384xbf16, #tpu.memory_space<vmem>>, vector<1x5x384xbf16>,
    return
  }
  func.func @transform_0(%arg0: i32) -> (i32, i32, i32) {
    %c0_i32 = arith.constant 0 : i32
    %c0_i32_0 = arith.constant 0 : i32
    %c0_i32_1 = arith.constant 0 : i32
    return %arg0, %c0_i32, %c0_i32_0 : i32, i32, i32
  }
  func.func @transform_1(%arg0: i32) -> (i32, i32) {
    %c0_i32 = arith.constant 0 : i32
    %c0_i32_0 = arith.constant 0 : i32
    %c0_i32_1 = arith.constant 0 : i32
    return %c0_i32, %c0_i32_0 : i32, i32
  }
  func.func @transform_2(%arg0: i32) -> (i32, i32) {
    %c0_i32 = arith.constant 0 : i32
    %c0_i32_0 = arith.constant 0 : i32
    %c0_i32_1 = arith.constant 0 : i32
    return %c0_i32, %c0_i32_0 : i32, i32
  }
  func.func @transform_3(%arg0: i32) -> (i32, i32, i32) {
    %c0_i32 = arith.constant 0 : i32
    %c0_i32_0 = arith.constant 0 : i32
    %c0_i32_1 = arith.constant 0 : i32
    %c0_i32_2 = arith.constant 0 : i32
    return %c0_i32, %c0_i32_0, %c0_i32_1 : i32, i32, i32
  }
  func.func @transform_4(%arg0: i32) -> (i32, i32) {
    %c0_i32 = arith.constant 0 : i32
    %c0_i32_0 = arith.constant 0 : i32
    %c0_i32_1 = arith.constant 0 : i32
    return %c0_i32, %c0_i32_0 : i32, i32
  }
  func.func @transform_5(%arg0: i32) -> (i32, i32, i32) {
    %c0_i32 = arith.constant 0 : i32
    %c0_i32_0 = arith.constant 0 : i32
    %c0_i32_1 = arith.constant 0 : i32
    return %arg0, %c0_i32, %c0_i32_0 : i32, i32, i32
  }
}

module attributes {stable_mosaic.version = 11 : i64} {
  func.func @_fire_kernel(%arg0: i32, %arg1: memref<1x5x384xbf16, #tpu.memory_space<vmem>>, %arg2: memref<384x64xbf16, #tpu.memory_space<vmem>>, %arg3: memref<1x64xf32, #tpu.memory_space<vmem>>, %arg4: memref<3x64x512xbf16, #tpu.memory_space<vmem>>, %arg5: memref<1x512xf32, #tpu.memory_space<vmem>>, %arg6: memref<1x5x512xbf16, #tpu.memory_space<vmem>>, %arg7: memref<7x64xbf16, #tpu.memory_space<vmem>>) attributes {dimension_semantics = [#tpu.dimension_semantics<parallel>], iteration_bounds = array<i64: 2>, scalar_prefetch = 0 : i64, scratch_operands = 1 : i64, tpu.core_type = #tpu.core_type<tc>, window_params = [{transform_indices = @transform_0, window_bounds = array<i64: 1, 5, 384>}, {pipeline_mode = #tpu.pipeline_mode<synchronous>, transform_indices = @transform_1, window_bounds = array<i64: 384, 64>}, {pipeline_mode = #tpu.pipeline_mode<synchronous>, transform_indices = @transform_2, window_bounds = array<i64: 1, 64>}, {pipeline_mode = #tpu.pipeline_mode<synchronous>, transform_indices = @transform_3, window_bounds = array<i64: 3, 64, 512>}, {pipeline_mode = #tpu.pipeline_mode<synchronous>, transform_indices = @transform_4, window_bounds = array<i64: 1, 512>}, {transform_indices = @transform_5, window_bounds = array<i64: 1, 5, 512>}]} {
    %c0 = arith.constant 0 : index
    %c0_0 = arith.constant 0 : index
    %c0_1 = arith.constant 0 : index
    %0 = vector.load %arg1[%c0, %c0_0, %c0_1] : memref<1x5x384xbf16, #tpu.memory_space<vmem>>, vector<1x5x384xbf16>
    %1 = vector.shape_cast %0 : vector<1x5x384xbf16> to vector<5x384xbf16>
    %c0_2 = arith.constant 0 : index
    %c0_3 = arith.constant 0 : index
    %2 = vector.load %arg2[%c0_2, %c0_3] : memref<384x64xbf16, #tpu.memory_space<vmem>>, vector<384x64xbf16>
    %cst = arith.constant dense<0.000000e+00> : vector<5x64xf32>
    %3 = tpu.matmul %1, %2, %cst {dimension_numbers = #tpu.dot_dimension_numbers<[1], [0], [0], [1], [0, 0, 1, 1], [], []>} : vector<5x384xbf16>, vector<384x64xbf16>, vector<5x64xf32> -> vector<5x64xf32>
    %c0_4 = arith.constant 0 : index
    %c0_5 = arith.constant 0 : index
    %4 = vector.load %arg3[%c0_4, %c0_5] : memref<1x64xf32, #tpu.memory_space<vmem>>, vector<1x64xf32>
    %5 = vector.broadcast %4 : vector<1x64xf32> to vector<5x64xf32>
    %6 = arith.addf %3, %5 : vector<5x64xf32>
    %cst_6 = arith.constant 0.000000e+00 : f32
    %7 = vector.broadcast %cst_6 : f32 to vector<5x64xf32>
    %8 = arith.maximumf %6, %7 : vector<5x64xf32>
    %cst_7 = arith.constant 0.000000e+00 : bf16
    %9 = vector.broadcast %cst_7 : bf16 to vector<1x64xbf16>
    %c0_8 = arith.constant 0 : index
    %c0_9 = arith.constant 0 : index
    %10 = vector.load %arg7[%c0_8, %c0_9] : memref<7x64xbf16, #tpu.memory_space<vmem>>, vector<1x64xbf16>
    tpu.vector_store %arg7[%c0_8, %c0_9], %9 {strides = array<i32>} : memref<7x64xbf16, #tpu.memory_space<vmem>>, vector<1x64xbf16>,
    %c6 = arith.constant 6 : index
    %c0_10 = arith.constant 0 : index
    %11 = vector.load %arg7[%c6, %c0_10] : memref<7x64xbf16, #tpu.memory_space<vmem>>, vector<1x64xbf16>
    tpu.vector_store %arg7[%c6, %c0_10], %9 {strides = array<i32>} : memref<7x64xbf16, #tpu.memory_space<vmem>>, vector<1x64xbf16>,
    %12 = arith.truncf %8 : vector<5x64xf32> to vector<5x64xbf16>
    %c1 = arith.constant 1 : index
    %c0_11 = arith.constant 0 : index
    %13 = vector.load %arg7[%c1, %c0_11] : memref<7x64xbf16, #tpu.memory_space<vmem>>, vector<5x64xbf16>
    tpu.vector_store %arg7[%c1, %c0_11], %12 {strides = array<i32>} : memref<7x64xbf16, #tpu.memory_space<vmem>>, vector<5x64xbf16>,
    %c0_12 = arith.constant 0 : index
    %c0_13 = arith.constant 0 : index
    %14 = vector.load %arg7[%c0_12, %c0_13] : memref<7x64xbf16, #tpu.memory_space<vmem>>, vector<7x64xbf16>
    %cst_14 = arith.constant 0.000000e+00 : f32
    %15 = vector.broadcast %cst_14 : f32 to vector<5x512xf32>
    %16 = vector.extract_strided_slice %14 {offsets = [0, 0], sizes = [5, 64], strides = [1, 1]} : vector<7x64xbf16> to vector<5x64xbf16>
    %c0_15 = arith.constant 0 : index
    %c0_16 = arith.constant 0 : index
    %c0_17 = arith.constant 0 : index
    %17 = vector.load %arg4[%c0_15, %c0_16, %c0_17] : memref<3x64x512xbf16, #tpu.memory_space<vmem>>, vector<1x64x512xbf16>
    %18 = vector.shape_cast %17 : vector<1x64x512xbf16> to vector<64x512xbf16>
    %cst_18 = arith.constant dense<0.000000e+00> : vector<5x512xf32>
    %19 = tpu.matmul %16, %18, %cst_18 {dimension_numbers = #tpu.dot_dimension_numbers<[1], [0], [0], [1], [0, 0, 1, 1], [], []>} : vector<5x64xbf16>, vector<64x512xbf16>, vector<5x512xf32> -> vector<5x512xf32>
    %20 = arith.addf %15, %19 : vector<5x512xf32>
    %21 = vector.extract_strided_slice %14 {offsets = [1, 0], sizes = [5, 64], strides = [1, 1]} : vector<7x64xbf16> to vector<5x64xbf16>
    %c1_19 = arith.constant 1 : index
    %c0_20 = arith.constant 0 : index
    %c0_21 = arith.constant 0 : index
    %22 = vector.load %arg4[%c1_19, %c0_20, %c0_21] : memref<3x64x512xbf16, #tpu.memory_space<vmem>>, vector<1x64x512xbf16>
    %23 = vector.shape_cast %22 : vector<1x64x512xbf16> to vector<64x512xbf16>
    %cst_22 = arith.constant dense<0.000000e+00> : vector<5x512xf32>
    %24 = tpu.matmul %21, %23, %cst_22 {dimension_numbers = #tpu.dot_dimension_numbers<[1], [0], [0], [1], [0, 0, 1, 1], [], []>} : vector<5x64xbf16>, vector<64x512xbf16>, vector<5x512xf32> -> vector<5x512xf32>
    %25 = arith.addf %20, %24 : vector<5x512xf32>
    %26 = vector.extract_strided_slice %14 {offsets = [2, 0], sizes = [5, 64], strides = [1, 1]} : vector<7x64xbf16> to vector<5x64xbf16>
    %c2 = arith.constant 2 : index
    %c0_23 = arith.constant 0 : index
    %c0_24 = arith.constant 0 : index
    %27 = vector.load %arg4[%c2, %c0_23, %c0_24] : memref<3x64x512xbf16, #tpu.memory_space<vmem>>, vector<1x64x512xbf16>
    %28 = vector.shape_cast %27 : vector<1x64x512xbf16> to vector<64x512xbf16>
    %cst_25 = arith.constant dense<0.000000e+00> : vector<5x512xf32>
    %29 = tpu.matmul %26, %28, %cst_25 {dimension_numbers = #tpu.dot_dimension_numbers<[1], [0], [0], [1], [0, 0, 1, 1], [], []>} : vector<5x64xbf16>, vector<64x512xbf16>, vector<5x512xf32> -> vector<5x512xf32>
    %30 = arith.addf %25, %29 : vector<5x512xf32>
    %c0_26 = arith.constant 0 : index
    %c0_27 = arith.constant 0 : index
    %31 = vector.load %arg5[%c0_26, %c0_27] : memref<1x512xf32, #tpu.memory_space<vmem>>, vector<1x512xf32>
    %32 = vector.broadcast %31 : vector<1x512xf32> to vector<5x512xf32>
    %33 = arith.addf %30, %32 : vector<5x512xf32>
    %cst_28 = arith.constant 0.000000e+00 : f32
    %34 = vector.broadcast %cst_28 : f32 to vector<5x512xf32>
    %35 = arith.maximumf %33, %34 : vector<5x512xf32>
    %36 = arith.truncf %35 : vector<5x512xf32> to vector<5x512xbf16>
    %c0_29 = arith.constant 0 : index
    %c0_30 = arith.constant 0 : index
    %c0_31 = arith.constant 0 : index
    %37 = vector.load %arg6[%c0_29, %c0_30, %c0_31] : memref<1x5x512xbf16, #tpu.memory_space<vmem>>, vector<1x5x512xbf16>
    %38 = vector.shape_cast %37 : vector<1x5x512xbf16> to vector<5x512xbf16>
    %39 = vector.shape_cast %36 : vector<5x512xbf16> to vector<1x5x512xbf16>
    tpu.vector_store %arg6[%c0_29, %c0_30, %c0_31], %39 {strides = array<i32>} : memref<1x5x512xbf16, #tpu.memory_space<vmem>>, vector<1x5x512xbf16>,
    return
  }
  func.func @transform_0(%arg0: i32) -> (i32, i32, i32) {
    %c0_i32 = arith.constant 0 : i32
    %c0_i32_0 = arith.constant 0 : i32
    %c0_i32_1 = arith.constant 0 : i32
    return %arg0, %c0_i32, %c0_i32_0 : i32, i32, i32
  }
  func.func @transform_1(%arg0: i32) -> (i32, i32) {
    %c0_i32 = arith.constant 0 : i32
    %c0_i32_0 = arith.constant 0 : i32
    %c0_i32_1 = arith.constant 0 : i32
    return %c0_i32, %c0_i32_0 : i32, i32
  }
  func.func @transform_2(%arg0: i32) -> (i32, i32) {
    %c0_i32 = arith.constant 0 : i32
    %c0_i32_0 = arith.constant 0 : i32
    %c0_i32_1 = arith.constant 0 : i32
    return %c0_i32, %c0_i32_0 : i32, i32
  }
  func.func @transform_3(%arg0: i32) -> (i32, i32, i32) {
    %c0_i32 = arith.constant 0 : i32
    %c0_i32_0 = arith.constant 0 : i32
    %c0_i32_1 = arith.constant 0 : i32
    %c0_i32_2 = arith.constant 0 : i32
    return %c0_i32, %c0_i32_0, %c0_i32_1 : i32, i32, i32
  }
  func.func @transform_4(%arg0: i32) -> (i32, i32) {
    %c0_i32 = arith.constant 0 : i32
    %c0_i32_0 = arith.constant 0 : i32
    %c0_i32_1 = arith.constant 0 : i32
    return %c0_i32, %c0_i32_0 : i32, i32
  }
  func.func @transform_5(%arg0: i32) -> (i32, i32, i32) {
    %c0_i32 = arith.constant 0 : i32
    %c0_i32_0 = arith.constant 0 : i32
    %c0_i32_1 = arith.constant 0 : i32
    return %arg0, %c0_i32, %c0_i32_0 : i32, i32, i32
  }
}

module attributes {stable_mosaic.version = 11 : i64} {
  func.func @_fire_kernel(%arg0: i32, %arg1: memref<1x5x512xbf16, #tpu.memory_space<vmem>>, %arg2: memref<512x64xbf16, #tpu.memory_space<vmem>>, %arg3: memref<1x64xf32, #tpu.memory_space<vmem>>, %arg4: memref<3x64x512xbf16, #tpu.memory_space<vmem>>, %arg5: memref<1x512xf32, #tpu.memory_space<vmem>>, %arg6: memref<1x5x512xbf16, #tpu.memory_space<vmem>>, %arg7: memref<7x64xbf16, #tpu.memory_space<vmem>>) attributes {dimension_semantics = [#tpu.dimension_semantics<parallel>], iteration_bounds = array<i64: 2>, scalar_prefetch = 0 : i64, scratch_operands = 1 : i64, tpu.core_type = #tpu.core_type<tc>, window_params = [{transform_indices = @transform_0, window_bounds = array<i64: 1, 5, 512>}, {pipeline_mode = #tpu.pipeline_mode<synchronous>, transform_indices = @transform_1, window_bounds = array<i64: 512, 64>}, {pipeline_mode = #tpu.pipeline_mode<synchronous>, transform_indices = @transform_2, window_bounds = array<i64: 1, 64>}, {pipeline_mode = #tpu.pipeline_mode<synchronous>, transform_indices = @transform_3, window_bounds = array<i64: 3, 64, 512>}, {pipeline_mode = #tpu.pipeline_mode<synchronous>, transform_indices = @transform_4, window_bounds = array<i64: 1, 512>}, {transform_indices = @transform_5, window_bounds = array<i64: 1, 5, 512>}]} {
    %c0 = arith.constant 0 : index
    %c0_0 = arith.constant 0 : index
    %c0_1 = arith.constant 0 : index
    %0 = vector.load %arg1[%c0, %c0_0, %c0_1] : memref<1x5x512xbf16, #tpu.memory_space<vmem>>, vector<1x5x512xbf16>
    %1 = vector.shape_cast %0 : vector<1x5x512xbf16> to vector<5x512xbf16>
    %c0_2 = arith.constant 0 : index
    %c0_3 = arith.constant 0 : index
    %2 = vector.load %arg2[%c0_2, %c0_3] : memref<512x64xbf16, #tpu.memory_space<vmem>>, vector<512x64xbf16>
    %cst = arith.constant dense<0.000000e+00> : vector<5x64xf32>
    %3 = tpu.matmul %1, %2, %cst {dimension_numbers = #tpu.dot_dimension_numbers<[1], [0], [0], [1], [0, 0, 1, 1], [], []>} : vector<5x512xbf16>, vector<512x64xbf16>, vector<5x64xf32> -> vector<5x64xf32>
    %c0_4 = arith.constant 0 : index
    %c0_5 = arith.constant 0 : index
    %4 = vector.load %arg3[%c0_4, %c0_5] : memref<1x64xf32, #tpu.memory_space<vmem>>, vector<1x64xf32>
    %5 = vector.broadcast %4 : vector<1x64xf32> to vector<5x64xf32>
    %6 = arith.addf %3, %5 : vector<5x64xf32>
    %cst_6 = arith.constant 0.000000e+00 : f32
    %7 = vector.broadcast %cst_6 : f32 to vector<5x64xf32>
    %8 = arith.maximumf %6, %7 : vector<5x64xf32>
    %cst_7 = arith.constant 0.000000e+00 : bf16
    %9 = vector.broadcast %cst_7 : bf16 to vector<1x64xbf16>
    %c0_8 = arith.constant 0 : index
    %c0_9 = arith.constant 0 : index
    %10 = vector.load %arg7[%c0_8, %c0_9] : memref<7x64xbf16, #tpu.memory_space<vmem>>, vector<1x64xbf16>
    tpu.vector_store %arg7[%c0_8, %c0_9], %9 {strides = array<i32>} : memref<7x64xbf16, #tpu.memory_space<vmem>>, vector<1x64xbf16>,
    %c6 = arith.constant 6 : index
    %c0_10 = arith.constant 0 : index
    %11 = vector.load %arg7[%c6, %c0_10] : memref<7x64xbf16, #tpu.memory_space<vmem>>, vector<1x64xbf16>
    tpu.vector_store %arg7[%c6, %c0_10], %9 {strides = array<i32>} : memref<7x64xbf16, #tpu.memory_space<vmem>>, vector<1x64xbf16>,
    %12 = arith.truncf %8 : vector<5x64xf32> to vector<5x64xbf16>
    %c1 = arith.constant 1 : index
    %c0_11 = arith.constant 0 : index
    %13 = vector.load %arg7[%c1, %c0_11] : memref<7x64xbf16, #tpu.memory_space<vmem>>, vector<5x64xbf16>
    tpu.vector_store %arg7[%c1, %c0_11], %12 {strides = array<i32>} : memref<7x64xbf16, #tpu.memory_space<vmem>>, vector<5x64xbf16>,
    %c0_12 = arith.constant 0 : index
    %c0_13 = arith.constant 0 : index
    %14 = vector.load %arg7[%c0_12, %c0_13] : memref<7x64xbf16, #tpu.memory_space<vmem>>, vector<7x64xbf16>
    %cst_14 = arith.constant 0.000000e+00 : f32
    %15 = vector.broadcast %cst_14 : f32 to vector<5x512xf32>
    %16 = vector.extract_strided_slice %14 {offsets = [0, 0], sizes = [5, 64], strides = [1, 1]} : vector<7x64xbf16> to vector<5x64xbf16>
    %c0_15 = arith.constant 0 : index
    %c0_16 = arith.constant 0 : index
    %c0_17 = arith.constant 0 : index
    %17 = vector.load %arg4[%c0_15, %c0_16, %c0_17] : memref<3x64x512xbf16, #tpu.memory_space<vmem>>, vector<1x64x512xbf16>
    %18 = vector.shape_cast %17 : vector<1x64x512xbf16> to vector<64x512xbf16>
    %cst_18 = arith.constant dense<0.000000e+00> : vector<5x512xf32>
    %19 = tpu.matmul %16, %18, %cst_18 {dimension_numbers = #tpu.dot_dimension_numbers<[1], [0], [0], [1], [0, 0, 1, 1], [], []>} : vector<5x64xbf16>, vector<64x512xbf16>, vector<5x512xf32> -> vector<5x512xf32>
    %20 = arith.addf %15, %19 : vector<5x512xf32>
    %21 = vector.extract_strided_slice %14 {offsets = [1, 0], sizes = [5, 64], strides = [1, 1]} : vector<7x64xbf16> to vector<5x64xbf16>
    %c1_19 = arith.constant 1 : index
    %c0_20 = arith.constant 0 : index
    %c0_21 = arith.constant 0 : index
    %22 = vector.load %arg4[%c1_19, %c0_20, %c0_21] : memref<3x64x512xbf16, #tpu.memory_space<vmem>>, vector<1x64x512xbf16>
    %23 = vector.shape_cast %22 : vector<1x64x512xbf16> to vector<64x512xbf16>
    %cst_22 = arith.constant dense<0.000000e+00> : vector<5x512xf32>
    %24 = tpu.matmul %21, %23, %cst_22 {dimension_numbers = #tpu.dot_dimension_numbers<[1], [0], [0], [1], [0, 0, 1, 1], [], []>} : vector<5x64xbf16>, vector<64x512xbf16>, vector<5x512xf32> -> vector<5x512xf32>
    %25 = arith.addf %20, %24 : vector<5x512xf32>
    %26 = vector.extract_strided_slice %14 {offsets = [2, 0], sizes = [5, 64], strides = [1, 1]} : vector<7x64xbf16> to vector<5x64xbf16>
    %c2 = arith.constant 2 : index
    %c0_23 = arith.constant 0 : index
    %c0_24 = arith.constant 0 : index
    %27 = vector.load %arg4[%c2, %c0_23, %c0_24] : memref<3x64x512xbf16, #tpu.memory_space<vmem>>, vector<1x64x512xbf16>
    %28 = vector.shape_cast %27 : vector<1x64x512xbf16> to vector<64x512xbf16>
    %cst_25 = arith.constant dense<0.000000e+00> : vector<5x512xf32>
    %29 = tpu.matmul %26, %28, %cst_25 {dimension_numbers = #tpu.dot_dimension_numbers<[1], [0], [0], [1], [0, 0, 1, 1], [], []>} : vector<5x64xbf16>, vector<64x512xbf16>, vector<5x512xf32> -> vector<5x512xf32>
    %30 = arith.addf %25, %29 : vector<5x512xf32>
    %c0_26 = arith.constant 0 : index
    %c0_27 = arith.constant 0 : index
    %31 = vector.load %arg5[%c0_26, %c0_27] : memref<1x512xf32, #tpu.memory_space<vmem>>, vector<1x512xf32>
    %32 = vector.broadcast %31 : vector<1x512xf32> to vector<5x512xf32>
    %33 = arith.addf %30, %32 : vector<5x512xf32>
    %cst_28 = arith.constant 0.000000e+00 : f32
    %34 = vector.broadcast %cst_28 : f32 to vector<5x512xf32>
    %35 = arith.maximumf %33, %34 : vector<5x512xf32>
    %36 = arith.truncf %35 : vector<5x512xf32> to vector<5x512xbf16>
    %c0_29 = arith.constant 0 : index
    %c0_30 = arith.constant 0 : index
    %c0_31 = arith.constant 0 : index
    %37 = vector.load %arg6[%c0_29, %c0_30, %c0_31] : memref<1x5x512xbf16, #tpu.memory_space<vmem>>, vector<1x5x512xbf16>
    %38 = vector.shape_cast %37 : vector<1x5x512xbf16> to vector<5x512xbf16>
    %39 = vector.shape_cast %36 : vector<5x512xbf16> to vector<1x5x512xbf16>
    tpu.vector_store %arg6[%c0_29, %c0_30, %c0_31], %39 {strides = array<i32>} : memref<1x5x512xbf16, #tpu.memory_space<vmem>>, vector<1x5x512xbf16>,
    return
  }
  func.func @transform_0(%arg0: i32) -> (i32, i32, i32) {
    %c0_i32 = arith.constant 0 : i32
    %c0_i32_0 = arith.constant 0 : i32
    %c0_i32_1 = arith.constant 0 : i32
    return %arg0, %c0_i32, %c0_i32_0 : i32, i32, i32
  }
  func.func @transform_1(%arg0: i32) -> (i32, i32) {
    %c0_i32 = arith.constant 0 : i32
    %c0_i32_0 = arith.constant 0 : i32
    %c0_i32_1 = arith.constant 0 : i32
    return %c0_i32, %c0_i32_0 : i32, i32
  }
  func.func @transform_2(%arg0: i32) -> (i32, i32) {
    %c0_i32 = arith.constant 0 : i32
    %c0_i32_0 = arith.constant 0 : i32
    %c0_i32_1 = arith.constant 0 : i32
    return %c0_i32, %c0_i32_0 : i32, i32
  }
  func.func @transform_3(%arg0: i32) -> (i32, i32, i32) {
    %c0_i32 = arith.constant 0 : i32
    %c0_i32_0 = arith.constant 0 : i32
    %c0_i32_1 = arith.constant 0 : i32
    %c0_i32_2 = arith.constant 0 : i32
    return %c0_i32, %c0_i32_0, %c0_i32_1 : i32, i32, i32
  }
  func.func @transform_4(%arg0: i32) -> (i32, i32) {
    %c0_i32 = arith.constant 0 : i32
    %c0_i32_0 = arith.constant 0 : i32
    %c0_i32_1 = arith.constant 0 : i32
    return %c0_i32, %c0_i32_0 : i32, i32
  }
  func.func @transform_5(%arg0: i32) -> (i32, i32, i32) {
    %c0_i32 = arith.constant 0 : i32
    %c0_i32_0 = arith.constant 0 : i32
    %c0_i32_1 = arith.constant 0 : i32
    return %arg0, %c0_i32, %c0_i32_0 : i32, i32, i32
  }
}

module attributes {stable_mosaic.version = 11 : i64} {
  func.func @_matmul_bias_kernel(%arg0: i32, %arg1: memref<8x1536xbf16, #tpu.memory_space<vmem>>, %arg2: memref<1536x75xbf16, #tpu.memory_space<vmem>>, %arg3: memref<1x75xf32, #tpu.memory_space<vmem>>, %arg4: memref<8x75xbf16, #tpu.memory_space<vmem>>) attributes {dimension_semantics = [#tpu.dimension_semantics<parallel>], iteration_bounds = array<i64: 1>, scalar_prefetch = 0 : i64, scratch_operands = 0 : i64, tpu.core_type = #tpu.core_type<tc>, window_params = [{transform_indices = @transform_0, window_bounds = array<i64: 8, 1536>}, {pipeline_mode = #tpu.pipeline_mode<synchronous>, transform_indices = @transform_1, window_bounds = array<i64: 1536, 75>}, {pipeline_mode = #tpu.pipeline_mode<synchronous>, transform_indices = @transform_2, window_bounds = array<i64: 1, 75>}, {transform_indices = @transform_3, window_bounds = array<i64: 8, 75>}]} {
    %c0 = arith.constant 0 : index
    %c0_0 = arith.constant 0 : index
    %0 = vector.load %arg1[%c0, %c0_0] : memref<8x1536xbf16, #tpu.memory_space<vmem>>, vector<8x1536xbf16>
    %c0_1 = arith.constant 0 : index
    %c0_2 = arith.constant 0 : index
    %1 = vector.load %arg2[%c0_1, %c0_2] : memref<1536x75xbf16, #tpu.memory_space<vmem>>, vector<1536x75xbf16>
    %cst = arith.constant dense<0.000000e+00> : vector<8x75xf32>
    %2 = tpu.matmul %0, %1, %cst {dimension_numbers = #tpu.dot_dimension_numbers<[1], [0], [0], [1], [0, 0, 1, 1], [], []>} : vector<8x1536xbf16>, vector<1536x75xbf16>, vector<8x75xf32> -> vector<8x75xf32>
    %c0_3 = arith.constant 0 : index
    %c0_4 = arith.constant 0 : index
    %3 = vector.load %arg3[%c0_3, %c0_4] : memref<1x75xf32, #tpu.memory_space<vmem>>, vector<1x75xf32>
    %4 = vector.broadcast %3 : vector<1x75xf32> to vector<8x75xf32>
    %5 = arith.addf %2, %4 : vector<8x75xf32>
    %cst_5 = arith.constant 0.000000e+00 : f32
    %6 = vector.broadcast %cst_5 : f32 to vector<8x75xf32>
    %7 = arith.maximumf %5, %6 : vector<8x75xf32>
    %8 = arith.truncf %7 : vector<8x75xf32> to vector<8x75xbf16>
    %c0_6 = arith.constant 0 : index
    %c0_7 = arith.constant 0 : index
    %9 = vector.load %arg4[%c0_6, %c0_7] : memref<8x75xbf16, #tpu.memory_space<vmem>>, vector<8x75xbf16>
    tpu.vector_store %arg4[%c0_6, %c0_7], %8 {strides = array<i32>} : memref<8x75xbf16, #tpu.memory_space<vmem>>, vector<8x75xbf16>,
    return
  }
  func.func @transform_0(%arg0: i32) -> (i32, i32) {
    %c0_i32 = arith.constant 0 : i32
    %c0_i32_0 = arith.constant 0 : i32
    return %arg0, %c0_i32 : i32, i32
  }
  func.func @transform_1(%arg0: i32) -> (i32, i32) {
    %c0_i32 = arith.constant 0 : i32
    %c0_i32_0 = arith.constant 0 : i32
    %c0_i32_1 = arith.constant 0 : i32
    return %c0_i32, %c0_i32_0 : i32, i32
  }
  func.func @transform_2(%arg0: i32) -> (i32, i32) {
    %c0_i32 = arith.constant 0 : i32
    %c0_i32_0 = arith.constant 0 : i32
    %c0_i32_1 = arith.constant 0 : i32
    return %c0_i32, %c0_i32_0 : i32, i32
  }
  func.func @transform_3(%arg0: i32) -> (i32, i32) {
    %c0_i32 = arith.constant 0 : i32
    %c0_i32_0 = arith.constant 0 : i32
    return %arg0, %c0_i32 : i32, i32
  }
}

module attributes {stable_mosaic.version = 11 : i64} {
  func.func @_matmul_bias_kernel(%arg0: i32, %arg1: memref<8x225xbf16, #tpu.memory_space<vmem>>, %arg2: memref<225x75xbf16, #tpu.memory_space<vmem>>, %arg3: memref<1x75xf32, #tpu.memory_space<vmem>>, %arg4: memref<8x75xf32, #tpu.memory_space<vmem>>) attributes {dimension_semantics = [#tpu.dimension_semantics<parallel>], iteration_bounds = array<i64: 1>, scalar_prefetch = 0 : i64, scratch_operands = 0 : i64, tpu.core_type = #tpu.core_type<tc>, window_params = [{transform_indices = @transform_0, window_bounds = array<i64: 8, 225>}, {pipeline_mode = #tpu.pipeline_mode<synchronous>, transform_indices = @transform_1, window_bounds = array<i64: 225, 75>}, {pipeline_mode = #tpu.pipeline_mode<synchronous>, transform_indices = @transform_2, window_bounds = array<i64: 1, 75>}, {transform_indices = @transform_3, window_bounds = array<i64: 8, 75>}]} {
    %c0 = arith.constant 0 : index
    %c0_0 = arith.constant 0 : index
    %0 = vector.load %arg1[%c0, %c0_0] : memref<8x225xbf16, #tpu.memory_space<vmem>>, vector<8x225xbf16>
    %c0_1 = arith.constant 0 : index
    %c0_2 = arith.constant 0 : index
    %1 = vector.load %arg2[%c0_1, %c0_2] : memref<225x75xbf16, #tpu.memory_space<vmem>>, vector<225x75xbf16>
    %cst = arith.constant dense<0.000000e+00> : vector<8x75xf32>
    %2 = tpu.matmul %0, %1, %cst {dimension_numbers = #tpu.dot_dimension_numbers<[1], [0], [0], [1], [0, 0, 1, 1], [], []>} : vector<8x225xbf16>, vector<225x75xbf16>, vector<8x75xf32> -> vector<8x75xf32>
    %c0_3 = arith.constant 0 : index
    %c0_4 = arith.constant 0 : index
    %3 = vector.load %arg3[%c0_3, %c0_4] : memref<1x75xf32, #tpu.memory_space<vmem>>, vector<1x75xf32>
    %4 = vector.broadcast %3 : vector<1x75xf32> to vector<8x75xf32>
    %5 = arith.addf %2, %4 : vector<8x75xf32>
    %c0_5 = arith.constant 0 : index
    %c0_6 = arith.constant 0 : index
    %6 = vector.load %arg4[%c0_5, %c0_6] : memref<8x75xf32, #tpu.memory_space<vmem>>, vector<8x75xf32>
    tpu.vector_store %arg4[%c0_5, %c0_6], %5 {strides = array<i32>} : memref<8x75xf32, #tpu.memory_space<vmem>>, vector<8x75xf32>,
    return
  }
  func.func @transform_0(%arg0: i32) -> (i32, i32) {
    %c0_i32 = arith.constant 0 : i32
    %c0_i32_0 = arith.constant 0 : i32
    return %arg0, %c0_i32 : i32, i32
  }
  func.func @transform_1(%arg0: i32) -> (i32, i32) {
    %c0_i32 = arith.constant 0 : i32
    %c0_i32_0 = arith.constant 0 : i32
    %c0_i32_1 = arith.constant 0 : i32
    return %c0_i32, %c0_i32_0 : i32, i32
  }
  func.func @transform_2(%arg0: i32) -> (i32, i32) {
    %c0_i32 = arith.constant 0 : i32
    %c0_i32_0 = arith.constant 0 : i32
    %c0_i32_1 = arith.constant 0 : i32
    return %c0_i32, %c0_i32_0 : i32, i32
  }
  func.func @transform_3(%arg0: i32) -> (i32, i32) {
    %c0_i32 = arith.constant 0 : i32
    %c0_i32_0 = arith.constant 0 : i32
    return %arg0, %c0_i32 : i32, i32
  }
}

</mosaic_0001>

<bundles_post_ra>
// kernel: _lambda_.15
= control target key start
LH: loop header
LB: loop body
LE: loop exit
PB: predicated region body
PF: predicated region fallthrough
CT: control target
= control target key end

     0   :  { %s275_s6 = smov 0   ;;  %s300_s0 = inlined_call_operand.vmem [shape: bf16[2,18,128], index: 0, kind: input, shape index: {}]   ;;  %s301_s1 = inlined_call_operand.vmem [shape: bf16[2,17,64], index: 1, kind: output, shape index: {}]  }
   0x1 LB: > { %s236_s7 = sadd.s32 4294967295, %s262_s6   ;;  %p240_p0 = scmp.ge.s32.totalorder %s262_s6, 1  ;;  %s262_s6 = sphi %s275_s6, %s11_s6  }
   0x2   : > { %p87_p1 = scmp.lt.s32.totalorder %s262_s6, 3 }
   0x4   : > { %p88_p2 = pnand %p240_p0, %p87_p1 }
   0x5   : > { %p107_p3 = scmp.lt.s32.totalorder (!%p88_p2), %s236_s7, 1  ;;  %s264_s12 = smov (!%p88_p2), 64  }
   0x6   : > { %91 = sbr.rel (%p88_p2) target bundleno = 140 (0x8c), region = 24 }
   0xb   : > { %s305_s7 = smov (!%p107_p3, %s236_s7), 1  ;;  %vm135_vm0 = vsmask.f32 3328  ;;  %vm136_vm1 = vsmask.f32 7440  ;;  %vm175_vm3 = vcmask 516096  }
   0xc   : > { %s246_s8 = smul.u32 12, %s305_s7  ;;  %vm286_vm2 = vmor %vm135_vm0, %vm136_vm1  ;;  %vm176_vm4 = vsmask.f32 256  ;;  %vm172_vm6 = vcmask 519168  }
   0xd   : > { %vm177_vm5 = vmand %vm175_vm3, %vm176_vm4 }
   0xe   : > { %s111_s11 = scalar_lea.vmem %s300_s0, %s246_s8  ;;  %s116_s15 = scalar_lea.vmem %s301_s1, %s246_s8 }
   0xf   : > { %v119_v0 = vld [vmem:[%s111_s11 + $0x8] sm:$0x1]  ;;  %v118_v1 = vld [vmem:[%s111_s11 + $0x4] sm:$0xf]  ;;  %v117_v2 = vld [vmem:[%s111_s11] sm:$0xf] }
  0x10   : > { %127 = vrot.lane.b32.xlu0 %v119_v0, %s264_s12  ;;  %125 = vrot.lane.b32.xlu1 %v118_v1, %s264_s12  ;;  %v148_v3 = vshll.u32 %v118_v1, 16  ;;  %v152_v4 = vshrl.u32 %v118_v1, 16  ;;  %v139_v7 = vshrl.u32 %v117_v2, 16  ;;  %v142_v8 = vshll.u32 %v117_v2, 16  ;;  %v178_v24 = vld [vmem:[%s116_s15 + $0x8] sm:$0x1] }
  0x11   : > { %v158_v9 = vshll.u32 %v119_v0, 16  ;;  %v162_v17 = vshrl.u32 %v119_v0, 16 }
  0x12   : > { %v150_v5 = vrot.slane %v148_v3, 5  ;;  %v154_v6 = vrot.slane %v152_v4, 4  ;;  %v141_v10 = vrot.slane %v139_v7, 4  ;;  %v144_v11 = vrot.slane %v142_v8, 5 }
  0x13   : > { %v160_v13 = vrot.slane %v158_v9, 5 }
  0x14   : > { %123 = vrot.lane.b32.xlu0 %v117_v2, %s264_s12  ;;  %v155_v12 = vor.u32 %v154_v6, %v150_v5  ;;  %v145_v15 = vor.u32 %v144_v11, %v141_v10 }
  0x16   : > { %v156_v14 = vrot.slane %v155_v12, 4  ;;  %v146_v21 = vrot.slane %v145_v15, 4 }
  0x18   : > { %v161_v20 = vsel %vm286_vm2, %v156_v14, %v160_v13  ;;  %v151_v28 = vsel %vm286_vm2, %v146_v21, %v150_v5 }
  0x82   : > { %v128_v18 = vpop.permute.xlu0 %127  ;;  %v126_v19 = vpop.permute.xlu1 %125 }
  0x83   : > { %v134_v22 = vmax.bf16 %v128_v18, %v119_v0  ;;  %v133_v23 = vmax.bf16 %v126_v19, %v118_v1 }
  0x85   : > { %v171_v25 = vmax.bf16 %v162_v17, %v134_v22  ;;  %v170_v26 = vmax.bf16 %v161_v20, %v133_v23 }
  0x86   : > { %v124_v27 = vpop.permute.xlu0 %123 }
  0x87   : > { %v179_v29 = vsel %vm177_vm5, %v171_v25, %v178_v24  ;;  %174 = vst.msk [vmem:[%s116_s15 + $0x4] sm:$0xf] %vm172_vm6, %v170_v26  ;;  %v132_v30 = vmax.bf16 %v124_v27, %v117_v2 }
  0x88   : > { %180 = vst [vmem:[%s116_s15 + $0x8] sm:$0x1] %v179_v29 }
  0x89   : > { %v169_v31 = vmax.bf16 %v151_v28, %v132_v30 }
  0x8b   : > { %173 = vst.msk [vmem:[%s116_s15] sm:$0xf] %vm172_vm6, %v169_v31 }
  0x8c PF: > { %s11_s6 = sadd.s32 1, %s262_s6  }
  0x8d   : > { %p8_p4 = scmp.ge.s32.totalorder %s11_s6, 4  }
  0x8f   :  { %10 = sbr.rel (!%p8_p4) target bundleno = 1 (0x1), region = 54 }

// kernel: _lambda_.14
= control target key start
LH: loop header
LB: loop body
LE: loop exit
PB: predicated region body
PF: predicated region fallthrough
CT: control target
= control target key end

     0   :  { %vm83_vm0 = vcmask 1041408   ;;  %vm70_vm1 = vcmask 293888   ;;  %vm192_vm2 = vcmask 519168   ;;  %s349_s1 = inlined_call_operand.vmem [shape: bf16[36,64], index: 1, kind: input, shape index: {}]   ;;  %s350_s0 = inlined_call_operand.vmem [shape: bf16[64,36], index: 0, kind: input, shape index: {}]   ;;  %s351_s2 = inlined_call_operand.vmem [shape: f32[1,64], index: 2, kind: input, shape index: {}]   ;;  %s352_s3 = inlined_call_operand.vmem [shape: bf16[64,64], index: 3, kind: output, shape index: {}]  }
   0x1   :  { %v262_v0 = vld [vmem:[%s349_s1 + $0x10] ss:$0 sps:$4 sm:$0x33]   ;;  %v263_v1 = vld [vmem:[%s349_s1 + $0x8] sm:$0xff]   ;;  %v264_v3 = vld [vmem:[%s349_s1] sm:$0xff]  }
   0x2   :  { %260 = vmatprep.subr.msk.bf16.mxu0 %vm83_vm0, %v262_v0  ;;  %261 = vmatprep.subr.msk.bf16.mxu1 %vm83_vm0, %v262_v0  ;;  %v85_v2 = vsel %vm83_vm0, %v262_v0, 0  ;;  %v265_v4 = vld [vmem:[%s350_s0] sm:$0xff]   ;;  %v266_v5 = vld [vmem:[%s350_s0 + $0x10] sm:$0xff]   ;;  %v267_v6 = vld [vmem:[%s350_s0 + $0x8] sm:$0xff]  }
   0x3   :  { %241 = vmatpush3.bf16.msra.mxu0 %v85_v2  ;;  %257 = vmatpush3.bf16.msra.mxu1 %v85_v2  ;;  %v268_v7 = vld [vmem:[%s350_s0 + $0x18] sm:$0xff]   ;;  %v205_v8 = vld [vmem:[%s351_s2] ss:$0 sm:$0xff] }
   0x4   :  { %242 = vmatprep.subr.bf16.mxu0 %v263_v1  ;;  %255 = vmatprep.subr.bf16.mxu1 %v263_v1 }
   0x5   :  { %246 = vmatprep.mubr.msk.bf16.mxu0 %vm70_vm1, %v265_v4  ;;  %250 = vmatprep.mubr.msk.bf16.mxu1 %vm70_vm1, %v266_v5 }
   0x7   :  { %243 = vmatpush3.bf16.msra.mxu0 %v263_v1  ;;  %258 = vmatpush3.bf16.msra.mxu1 %v263_v1 }
   0x8   :  { %244 = vmatprep.subr.bf16.mxu0 %v264_v3  ;;  %256 = vmatprep.subr.bf16.mxu1 %v264_v3 }
   0xb   :  { %245 = vmatpush3.bf16.msra.mxu0 %v264_v3  ;;  %259 = vmatpush3.bf16.msra.mxu1 %v264_v3 }
   0xe   :  { %247 = vmatmul.mubr.msk.bf16.vlgmr.msra.gmra.mxu0 %vm70_vm1, %v267_v6  ;;  %251 = vmatmul.mubr.msk.bf16.vlgmr.msra.gmra.mxu1 %vm70_vm1, %v268_v7 }
  0xce   :  { %v248_v9 = vpop.f32.mrf.mxu0  ;;  %v252_v10 = vpop.f32.mrf.mxu1 }
  0xcf   :  { %v130_v11 = vadd.f32 %v248_v9, %v205_v8  ;;  %v146_v12 = vadd.f32 %v252_v10, %v205_v8 }
  0xd0   :  { %v121_v13 = vpop.f32.mrf.mxu0  ;;  %v137_v14 = vpop.f32.mrf.mxu1 }
  0xd1   :  { %v154_v15 = vmax.f32 %v130_v11, 0.0  ;;  %v158_v16 = vmax.f32 %v146_v12, 0.0  ;;  %v122_v17 = vadd.f32 %v205_v8, %v121_v13  ;;  %v138_v18 = vadd.f32 %v205_v8, %v137_v14 }
  0xd2   :  { %v249_v19 = vpop.f32.mrf.mxu0  ;;  %v253_v20 = vpop.f32.mrf.mxu1 }
  0xd3   :  { %v227_v21 = vpack.c.bf16 %v154_v15, %v154_v15  ;;  %v231_v22 = vpack.c.bf16 %v158_v16, %v158_v16  ;;  %v152_v23 = vmax.f32 %v122_v17, 0.0  ;;  %v156_v24 = vmax.f32 %v138_v18, 0.0 }
  0xd4   :  { %v133_v25 = vadd.f32 %v249_v19, %v205_v8  ;;  %v149_v26 = vadd.f32 %v253_v20, %v205_v8  ;;  %v124_v27 = vpop.f32.mrf.mxu0  ;;  %v140_v28 = vpop.f32.mrf.mxu1 }
  0xd5   :  { %195 = vst.msk [vmem:[%s352_s3 + $0x8] sm:$0xf] %vm192_vm2, %v227_v21  ;;  %199 = vst.msk [vmem:[%s352_s3 + $0x18] sm:$0xf] %vm192_vm2, %v231_v22  ;;  %v225_v29 = vpack.c.bf16 %v152_v23, %v152_v23  ;;  %v229_v30 = vpack.c.bf16 %v156_v24, %v156_v24  ;;  %v125_v31 = vadd.f32 %v205_v8, %v124_v27 }
  0xd6   :  { %v141_v32 = vadd.f32 %v205_v8, %v140_v28  ;;  %v155_v33 = vmax.f32 %v133_v25, 0.0  ;;  %v159_v34 = vmax.f32 %v149_v26, 0.0 }
  0xd7   :  { %193 = vst.msk [vmem:[%s352_s3] sm:$0xf] %vm192_vm2, %v225_v29  ;;  %197 = vst.msk [vmem:[%s352_s3 + $0x10] sm:$0xf] %vm192_vm2, %v229_v30  ;;  %v153_v35 = vmax.f32 %v125_v31, 0.0 }
  0xd8   :  { %v157_v36 = vmax.f32 %v141_v32, 0.0  ;;  %v228_v37 = vpack.c.bf16 %v155_v33, %v155_v33  ;;  %v232_v38 = vpack.c.bf16 %v159_v34, %v159_v34 }
  0xd9   :  { %v226_v39 = vpack.c.bf16 %v153_v35, %v153_v35 }
  0xda   :  { %v230_v40 = vpack.c.bf16 %v157_v36, %v157_v36  ;;  %196 = vst.msk [vmem:[%s352_s3 + $0xc] sm:$0xf] %vm192_vm2, %v228_v37  ;;  %200 = vst.msk [vmem:[%s352_s3 + $0x1c] sm:$0xf] %vm192_vm2, %v232_v38 }
  0xdb   :  { %194 = vst.msk [vmem:[%s352_s3 + $0x4] sm:$0xf] %vm192_vm2, %v226_v39 }
  0xdc   :  { %198 = vst.msk [vmem:[%s352_s3 + $0x14] sm:$0xf] %vm192_vm2, %v230_v40 }

// kernel: _lambda_.16
= control target key start
LH: loop header
LB: loop body
LE: loop exit
PB: predicated region body
PF: predicated region fallthrough
CT: control target
= control target key end

     0   :  { %s854_s18 = smov 0   ;;  %s918_s0 = inlined_call_operand.vmem [shape: bf16[2,17,64], index: 0, kind: input, shape index: {}]   ;;  %s919_s1 = inlined_call_operand.vmem [shape: bf16[64,16], index: 1, kind: input, shape index: {}]   ;;  %s920_s2 = inlined_call_operand.vmem [shape: f32[1,16], index: 2, kind: input, shape index: {}]   ;;  %s921_s3 = inlined_call_operand.vmem [shape: bf16[3,16,128], index: 3, kind: input, shape index: {}]   ;;  %s922_s4 = inlined_call_operand.vmem [shape: f32[1,128], index: 4, kind: input, shape index: {}]   ;;  %s923_s5 = inlined_call_operand.vmem [shape: bf16[2,17,128], index: 5, kind: output, shape index: {}]  }
   0x1 LB: > { %s700_s19 = sadd.s32 4294967295, %s822_s18   ;;  %p704_p0 = scmp.ge.s32.totalorder %s822_s18, 1  ;;  %s822_s18 = sphi %s854_s18, %s15_s18  }
   0x2   : > { %p187_p1 = scmp.lt.s32.totalorder %s822_s18, 3 }
   0x4   : > { %p188_p2 = pnand %p704_p0, %p187_p1 }
   0x5   : > { %p215_p3 = scmp.lt.s32.totalorder (!%p188_p2), %s700_s19, 1 }
   0x6   : > { %191 = sbr.rel (%p188_p2) target bundleno = 480 (0x1e0), region = 40 }
   0xb   : > { %v805_v0 = vld [vmem:[%s919_s1 + $0x18] sm:$0xff]   ;;  %v806_v1 = vld [vmem:[%s919_s1 + $0x10] sm:$0xff]   ;;  %s925_s19 = smov (!%p215_p3, %s700_s19), 1  ;;  %v807_v2 = vld [vmem:[%s919_s1 + $0x8] sm:$0xff]   ;;  %vm276_vm0 = vcmask 523264   ;;  %vm334_vm1 = vcmask 122880  }
   0xc   : > { %766 = vmatprep.subr.bf16.mxu0 %v805_v0  ;;  %s796_s26 = smul.u32 12, %s925_s19  ;;  %v808_v3 = vld [vmem:[%s919_s1] sm:$0xff]   ;;  %vm335_vm2 = vsmask.f32 256  ;;  %vm340_vm4 = vcmask 123905   ;;  %v811_v10 = vld [vmem:[%s921_s3 + $0x8] sm:$0xff]  }
   0xd   : > { %767 = vmatpush3.bf16.msra.mxu0 %v805_v0  ;;  %vm336_vm3 = vmand %vm334_vm1, %vm335_vm2  ;;  %v337_v6 = vld [vmem:[#allocation2] sm:$0x1]  ;;  %vm341_vm5 = vsmask.f32 1280  ;;  %v343_v8 = vld [vmem:[#allocation2 + $0x8] sm:$0x2]  ;;  %778 = vmatprep.subr.bf16.mxu1 %v811_v10 }
   0xe   : > { %768 = vmatprep.subr.bf16.mxu0 %v806_v1  ;;  %s219_s29 = scalar_lea.vmem %s918_s0, %s796_s26  ;;  %v338_v7 = vsel %vm336_vm3, 0, %v337_v6  ;;  %vm342_vm6 = vmand %vm340_vm4, %vm341_vm5  ;;  %779 = vmatpush3.bf16.msra.mxu1 %v811_v10  ;;  %v814_v11 = vld [vmem:[%s921_s3] sm:$0xff]   ;;  %vm382_vm7 = vcmask 125952   ;;  %vm383_vm8 = vsmask.f32 7938  ;;  %vm429_vm13 = vcmask 130048   ;;  %s224_s21 = scalar_lea.vmem %s923_s5, %s796_s26 }
   0xf   : > { %v809_v4 = vld [vmem:[%s219_s29] sm:$0xff]   ;;  %v810_v5 = vld [vmem:[%s219_s29 + $0x8] ss:$0 sps:$4 sm:$0x11]   ;;  %339 = vst [vmem:[#allocation2] sm:$0x1] %v338_v7  ;;  %784 = vmatprep.subr.bf16.mxu1 %v814_v11  ;;  %vm384_vm9 = vmand %vm382_vm7, %vm383_vm8 }
  0x10   : > { %774 = vmatprep.mubr.msk.bf16.mxu0 %vm276_vm0, %v809_v4  ;;  %v344_v9 = vsel %vm342_vm6, 0, %v343_v8  ;;  %v707_v13 = vld [vmem:[%s920_s2] ss:$0 sm:$0xff]  ;;  %vm356_vm10 = vsmask.f32 4368  ;;  %v815_v51 = vld [vmem:[%s921_s3 + $0x10] sm:$0xff]  }
  0x11   : > { %769 = vmatpush3.bf16.msra.mxu0 %v806_v1  ;;  %345 = vst [vmem:[#allocation2 + $0x8] sm:$0x2] %v344_v9  ;;  %vm357_vm11 = vmor %vm335_vm2, %vm356_vm10  ;;  %vm408_vm12 = vsmask.f32 7424  ;;  %vm545_vm14 = vcmask 1046528   ;;  %vm640_vm15 = vcmask 1040384  }
  0x12   : > { %770 = vmatprep.subr.bf16.mxu0 %v807_v2  ;;  %v734_v1 = vld [vmem:[%s922_s4] ss:$0 sm:$0xff]  ;;  %v642_v10 = vld [vmem:[%s224_s21 + $0x8] sm:$0x1] }
  0x15   : > { %771 = vmatpush3.bf16.msra.mxu0 %v807_v2 }
  0x16   : > { %772 = vmatprep.subr.bf16.mxu0 %v808_v3  ;;  %v385_v28 = vld [vmem:[#allocation2] sm:$0xf] }
  0x19   : > { %773 = vmatpush3.bf16.msra.mxu0 %v808_v3 }
  0x1c   : > { %775 = vmatmul.mubr.msk.bf16.vlgmr.msra.gmra.mxu0 %vm276_vm0, %v810_v5  ;;  %vm641_vm0 = vmand %vm640_vm15, %vm335_vm2 }
  0xdc   : > { %v776_v12 = vpop.f32.mrf.mxu0 }
  0xdd   : > { %v326_v17 = vadd.f32 %v776_v12, %v707_v13 }
  0xde   : > { %v317_v14 = vpop.f32.mrf.mxu0 }
  0xdf   : > { %v318_v15 = vadd.f32 %v707_v13, %v317_v14  ;;  %v333_v22 = vmax.f32 %v326_v17, 0.0 }
  0xe0   : > { %v777_v16 = vpop.f32.mrf.mxu0 }
  0xe1   : > { %v331_v18 = vmax.f32 %v318_v15, 0.0  ;;  %v742_v29 = vpack.c.bf16 %v333_v22, %v333_v22 }
  0xe2   : > { %v320_v19 = vpop.f32.mrf.mxu0 }
  0xe3   : > { %v740_v20 = vpack.c.bf16 %v331_v18, %v331_v18  ;;  %v321_v21 = vadd.f32 %v707_v13, %v320_v19  ;;  %v376_v35 = vshll.u32 %v742_v29, 16 }
  0xe5   : > { %v359_v23 = vshrl.u32 %v740_v20, 16  ;;  %v332_v24 = vmax.f32 %v321_v21, 0.0  ;;  %v362_v26 = vshll.u32 %v740_v20, 16 }
  0xe7   : > { %v361_v25 = vrot.slane %v359_v23, 7  ;;  %v741_v27 = vpack.c.bf16 %v332_v24, %v332_v24 }
  0xe9   : > { %v364_v30 = vor.u32 %v362_v26, %v361_v25  ;;  %v367_v31 = vshrl.u32 %v741_v27, 16  ;;  %v370_v34 = vshll.u32 %v741_v27, 16  ;;  %v365_v36 = vrot.slane %v361_v25, 4 }
  0xeb   : > { %v386_v32 = vsel %vm384_vm9, %v364_v30, %v385_v28  ;;  %v369_v33 = vrot.slane %v367_v31, 7 }
  0xec   : > { %387 = vst [vmem:[#allocation2] sm:$0xf] %v386_v32 }
  0xed   : > { %v372_v37 = vor.u32 %v370_v34, %v369_v33  ;;  %v374_v38 = vrot.slane %v369_v33, 4 }
  0xef   : > { %v373_v39 = vsel %vm357_vm11, %v365_v36, %v372_v37  ;;  %v378_v40 = vsel %vm357_vm11, %v374_v38, %v376_v35 }
  0xf0   : > { %389 = vst.msk [vmem:[#allocation2 + $0x4] sm:$0xf] %vm382_vm7, %v373_v39 }
  0xf1   : > { %391 = vst.msk [vmem:[#allocation2 + $0x8] sm:$0x1] %vm334_vm1, %v378_v40 }
  0xf7   : > { %v812_v41 = vld [vmem:[#allocation2] sm:$0xff]  }
  0xf8   : > { %v813_v42 = vld [vmem:[#allocation2 + $0x8] ss:$0 sps:$4 sm:$0x33]   ;;  %v412_v43 = vshll.u32 %v812_v41, 16  ;;  %v410_v45 = vshrl.u32 %v812_v41, 16  ;;  %v546_v52 = vrot.slane %v812_v41, 1 }
  0xf9   : > { %v417_v44 = vshll.u32 %v813_v42, 16  ;;  %v421_v50 = vshrl.u32 %v813_v42, 16  ;;  %v547_v53 = vrot.slane %v813_v42, 1 }
  0xfa   : > { %v414_v46 = vrot.slane %v412_v43, 1 }
  0xfb   : > { %v419_v48 = vrot.slane %v417_v44, 1  ;;  %v548_v54 = vsel %vm545_vm14, %v546_v52, %v547_v53 }
  0xfc   : > { %v415_v47 = vor.u32 %v414_v46, %v410_v45 }
  0xfe   : > { %v420_v49 = vsel %vm408_vm12, %v415_v47, %v419_v48 }
  0xff   : > { %780 = vmatprep.mubr.msk.bf16.mxu1 %vm429_vm13, %v420_v49 }
 0x100   : > { %781 = vmatmul.mubr.msk.bf16.vlgmr.msra.gmra.mxu1 %vm429_vm13, %v421_v50 }
 0x101   : > { %785 = vmatpush3.bf16.msra.mxu1 %v814_v11  ;;  %786 = vmatprep.mubr.msk.bf16.mxu1 %vm429_vm13, %v812_v41 }
 0x102   : > { %790 = vmatprep.subr.bf16.mxu1 %v815_v51 }
 0x108   : > { %787 = vmatmul.mubr.msk.bf16.vlgmr.msra.gmra.mxu1 %vm429_vm13, %v813_v42 }
 0x109   : > { %791 = vmatpush3.bf16.msra.mxu1 %v815_v51  ;;  %792 = vmatprep.mubr.msk.bf16.mxu1 %vm429_vm13, %v548_v54 }
 0x110   : > { %793 = vmatmul.mubr.msk.bf16.vlgmr.msra.gmra.mxu1 %vm429_vm13, %v547_v53 }
 0x1c0   : > { %v782_v55 = vpop.f32.mrf.mxu1 }
 0x1c2   : > { %v470_v56 = vpop.f32.mrf.mxu1 }
 0x1c4   : > { %v783_v57 = vpop.f32.mrf.mxu1 }
 0x1c6   : > { %v473_v58 = vpop.f32.mrf.mxu1 }
 0x1c8   : > { %v788_v59 = vpop.f32.mrf.mxu1 }
 0x1c9   : > { %v537_v63 = vadd.f32 %v788_v59, %v782_v55 }
 0x1ca   : > { %v528_v60 = vpop.f32.mrf.mxu1 }
 0x1cb   : > { %v529_v2 = vadd.f32 %v528_v60, %v470_v56 }
 0x1cc   : > { %v789_v61 = vpop.f32.mrf.mxu1 }
 0x1ce   : > { %v531_v62 = vpop.f32.mrf.mxu1 }
 0x1cf   : > { %v532_v8 = vadd.f32 %v531_v62, %v473_v58 }
 0x1d0   : > { %v794_v0 = vpop.f32.mrf.mxu1 }
 0x1d1   : > { %v611_v3 = vadd.f32 %v794_v0, %v537_v63 }
 0x1d2   : > { %v595_v4 = vpop.f32.mrf.mxu1 }
 0x1d3   : > { %v621_v5 = vadd.f32 %v734_v1, %v611_v3  ;;  %v609_v6 = vadd.f32 %v595_v4, %v529_v2 }
 0x1d4   : > { %v795_v7 = vpop.f32.mrf.mxu1 }
 0x1d5   : > { %v624_v9 = vmax.f32 %v621_v5, 0.0  ;;  %v619_v13 = vadd.f32 %v734_v1, %v609_v6 }
 0x1d6   : > { %v598_v11 = vpop.f32.mrf.mxu1 }
 0x1d7   : > { %v745_v12 = vpack.c.bf16 %v624_v9, %v624_v9  ;;  %v610_v14 = vadd.f32 %v598_v11, %v532_v8  ;;  %v622_v17 = vmax.f32 %v619_v13, 0.0 }
 0x1d9   : > { %v643_v15 = vsel %vm641_vm0, %v745_v12, %v642_v10  ;;  %v620_v16 = vadd.f32 %v734_v1, %v610_v14 }
 0x1da   : > { %644 = vst [vmem:[%s224_s21 + $0x8] sm:$0x1] %v643_v15 }
 0x1db   : > { %v623_v18 = vmax.f32 %v620_v16, 0.0 }
 0x1dd   : > { %v749_v19 = vpack.c.bf16 %v623_v18, %v622_v17 }
 0x1df   : > { %750 = vst [vmem:[%s224_s21] sm:$0xff] %v749_v19  }
 0x1e0 PF: > { %s15_s18 = sadd.s32 1, %s822_s18  }
 0x1e1   : > { %p12_p4 = scmp.ge.s32.totalorder %s15_s18, 4  }
 0x1e3   :  { %14 = sbr.rel (!%p12_p4) target bundleno = 1 (0x1), region = 72 }

// kernel: _lambda_.17
= control target key start
LH: loop header
LB: loop body
LE: loop exit
PB: predicated region body
PF: predicated region fallthrough
CT: control target
= control target key end

     0   :  { %s899_s18 = smov 0   ;;  %s975_s0 = inlined_call_operand.vmem [shape: bf16[2,17,128], index: 0, kind: input, shape index: {}]   ;;  %s976_s1 = inlined_call_operand.vmem [shape: bf16[128,16], index: 1, kind: input, shape index: {}]   ;;  %s977_s2 = inlined_call_operand.vmem [shape: f32[1,16], index: 2, kind: input, shape index: {}]   ;;  %s978_s3 = inlined_call_operand.vmem [shape: bf16[3,16,128], index: 3, kind: input, shape index: {}]   ;;  %s979_s4 = inlined_call_operand.vmem [shape: f32[1,128], index: 4, kind: input, shape index: {}]   ;;  %s980_s5 = inlined_call_operand.vmem [shape: bf16[2,17,128], index: 5, kind: output, shape index: {}]  }
   0x1 LB: > { %s727_s19 = sadd.s32 4294967295, %s867_s18   ;;  %p731_p0 = scmp.ge.s32.totalorder %s867_s18, 1  ;;  %s867_s18 = sphi %s899_s18, %s15_s18  }
   0x2   : > { %p187_p1 = scmp.lt.s32.totalorder %s867_s18, 3 }
   0x4   : > { %p188_p2 = pnand %p731_p0, %p187_p1 }
   0x5   : > { %p215_p3 = scmp.lt.s32.totalorder (!%p188_p2), %s727_s19, 1 }
   0x6   : > { %191 = sbr.rel (%p188_p2) target bundleno = 496 (0x1f0), region = 40 }
   0xb   : > { %v846_v0 = vld [vmem:[%s976_s1 + $0x38] sm:$0xff]   ;;  %v847_v1 = vld [vmem:[%s976_s1 + $0x30] sm:$0xff]   ;;  %s982_s19 = smov (!%p215_p3, %s727_s19), 1  ;;  %v848_v2 = vld [vmem:[%s976_s1 + $0x28] sm:$0xff]   ;;  %vm361_vm0 = vcmask 122880   ;;  %vm367_vm3 = vcmask 123905  }
   0xc   : > { %799 = vmatprep.subr.bf16.mxu0 %v846_v0  ;;  %s837_s26 = smul.u32 12, %s982_s19  ;;  %v849_v3 = vld [vmem:[%s976_s1 + $0x20] sm:$0xff]   ;;  %v850_v5 = vld [vmem:[%s976_s1 + $0x18] sm:$0xff]   ;;  %v851_v6 = vld [vmem:[%s976_s1 + $0x10] sm:$0xff]   ;;  %vm362_vm1 = vsmask.f32 256 }
   0xd   : > { %800 = vmatpush3.bf16.msra.mxu0 %v846_v0  ;;  %v852_v7 = vld [vmem:[%s976_s1 + $0x8] sm:$0xff]   ;;  %v853_v8 = vld [vmem:[%s976_s1] sm:$0xff]   ;;  %vm363_vm2 = vmand %vm361_vm0, %vm362_vm1  ;;  %vm368_vm4 = vsmask.f32 1280  ;;  %vm409_vm6 = vcmask 125952   ;;  %vm456_vm12 = vcmask 130048  }
   0xe   : > { %801 = vmatprep.subr.bf16.mxu0 %v847_v1  ;;  %s219_s29 = scalar_lea.vmem %s975_s0, %s837_s26  ;;  %v364_v10 = vld [vmem:[#allocation2] sm:$0x1]  ;;  %vm369_vm5 = vmand %vm367_vm3, %vm368_vm4  ;;  %v370_v12 = vld [vmem:[#allocation2 + $0x8] sm:$0x2]  ;;  %vm410_vm7 = vsmask.f32 7938  ;;  %s224_s30 = scalar_lea.vmem %s980_s5, %s837_s26 }
   0xf   : > { %v854_v4 = vld [vmem:[%s219_s29] sm:$0xff]   ;;  %v855_v9 = vld [vmem:[%s219_s29 + $0x8] ss:$0 sps:$4 sm:$0x11]   ;;  %v365_v11 = vsel %vm363_vm2, 0, %v364_v10  ;;  %v371_v13 = vsel %vm369_vm5, 0, %v370_v12  ;;  %vm411_vm8 = vmand %vm409_vm6, %vm410_vm7 }
  0x10   : > { %815 = vmatprep.mubr.bf16.mxu0 %v854_v4  ;;  %366 = vst [vmem:[#allocation2] sm:$0x1] %v365_v11  ;;  %v856_v14 = vld [vmem:[%s978_s3 + $0x8] sm:$0xff]   ;;  %372 = vst [vmem:[#allocation2 + $0x8] sm:$0x2] %v371_v13  ;;  %v859_v15 = vld [vmem:[%s978_s3] sm:$0xff]  }
  0x11   : > { %802 = vmatpush3.bf16.msra.mxu0 %v847_v1  ;;  %819 = vmatprep.subr.bf16.mxu1 %v856_v14  ;;  %v734_v17 = vld [vmem:[%s977_s2] ss:$0 sm:$0xff]  ;;  %vm383_vm9 = vsmask.f32 4368  ;;  %vm435_vm11 = vsmask.f32 7424 }
  0x12   : > { %803 = vmatprep.subr.bf16.mxu0 %v848_v2  ;;  %820 = vmatpush3.bf16.msra.mxu1 %v856_v14  ;;  %vm384_vm10 = vmor %vm362_vm1, %vm383_vm9  ;;  %v860_v55 = vld [vmem:[%s978_s3 + $0x10] sm:$0xff]   ;;  %vm572_vm13 = vcmask 1046528   ;;  %vm667_vm14 = vcmask 1040384   ;;  %v669_v14 = vld [vmem:[%s224_s30 + $0x8] sm:$0x1] }
  0x13   : > { %825 = vmatprep.subr.bf16.mxu1 %v859_v15  ;;  %vm668_vm15 = vmand %vm667_vm14, %vm362_vm1 }
  0x15   : > { %804 = vmatpush3.bf16.msra.mxu0 %v848_v2 }
  0x16   : > { %805 = vmatprep.subr.bf16.mxu0 %v849_v3 }
  0x17   : > { %v412_v32 = vld [vmem:[#allocation2] sm:$0xf] }
  0x19   : > { %806 = vmatpush3.bf16.msra.mxu0 %v849_v3 }
  0x1a   : > { %807 = vmatprep.subr.bf16.mxu0 %v850_v5 }
  0x1d   : > { %808 = vmatpush3.bf16.msra.mxu0 %v850_v5  ;;  %v763_v5 = vld [vmem:[%s979_s4] ss:$0 sm:$0xff] }
  0x1e   : > { %809 = vmatprep.subr.bf16.mxu0 %v851_v6 }
  0x21   : > { %810 = vmatpush3.bf16.msra.mxu0 %v851_v6 }
  0x22   : > { %811 = vmatprep.subr.bf16.mxu0 %v852_v7 }
  0x25   : > { %812 = vmatpush3.bf16.msra.mxu0 %v852_v7 }
  0x26   : > { %813 = vmatprep.subr.bf16.mxu0 %v853_v8 }
  0x29   : > { %814 = vmatpush3.bf16.msra.mxu0 %v853_v8 }
  0x2c   : > { %816 = vmatmul.mubr.bf16.vlgmr.msra.gmra.mxu0 %v855_v9 }
  0xec   : > { %v817_v16 = vpop.f32.mrf.mxu0 }
  0xed   : > { %v353_v21 = vadd.f32 %v817_v16, %v734_v17 }
  0xee   : > { %v344_v18 = vpop.f32.mrf.mxu0 }
  0xef   : > { %v345_v19 = vadd.f32 %v734_v17, %v344_v18  ;;  %v360_v26 = vmax.f32 %v353_v21, 0.0 }
  0xf0   : > { %v818_v20 = vpop.f32.mrf.mxu0 }
  0xf1   : > { %v358_v22 = vmax.f32 %v345_v19, 0.0  ;;  %v771_v33 = vpack.c.bf16 %v360_v26, %v360_v26 }
  0xf2   : > { %v347_v23 = vpop.f32.mrf.mxu0 }
  0xf3   : > { %v769_v24 = vpack.c.bf16 %v358_v22, %v358_v22  ;;  %v348_v25 = vadd.f32 %v734_v17, %v347_v23  ;;  %v403_v39 = vshll.u32 %v771_v33, 16 }
  0xf5   : > { %v386_v27 = vshrl.u32 %v769_v24, 16  ;;  %v359_v28 = vmax.f32 %v348_v25, 0.0  ;;  %v389_v30 = vshll.u32 %v769_v24, 16 }
  0xf7   : > { %v388_v29 = vrot.slane %v386_v27, 7  ;;  %v770_v31 = vpack.c.bf16 %v359_v28, %v359_v28 }
  0xf9   : > { %v391_v34 = vor.u32 %v389_v30, %v388_v29  ;;  %v394_v35 = vshrl.u32 %v770_v31, 16  ;;  %v397_v38 = vshll.u32 %v770_v31, 16  ;;  %v392_v40 = vrot.slane %v388_v29, 4 }
  0xfb   : > { %v413_v36 = vsel %vm411_vm8, %v391_v34, %v412_v32  ;;  %v396_v37 = vrot.slane %v394_v35, 7 }
  0xfc   : > { %414 = vst [vmem:[#allocation2] sm:$0xf] %v413_v36 }
  0xfd   : > { %v399_v41 = vor.u32 %v397_v38, %v396_v37  ;;  %v401_v42 = vrot.slane %v396_v37, 4 }
  0xff   : > { %v400_v43 = vsel %vm384_vm10, %v392_v40, %v399_v41  ;;  %v405_v44 = vsel %vm384_vm10, %v401_v42, %v403_v39 }
 0x100   : > { %416 = vst.msk [vmem:[#allocation2 + $0x4] sm:$0xf] %vm409_vm6, %v400_v43 }
 0x101   : > { %418 = vst.msk [vmem:[#allocation2 + $0x8] sm:$0x1] %vm361_vm0, %v405_v44 }
 0x107   : > { %v857_v45 = vld [vmem:[#allocation2] sm:$0xff]  }
 0x108   : > { %v858_v46 = vld [vmem:[#allocation2 + $0x8] ss:$0 sps:$4 sm:$0x33]   ;;  %v439_v47 = vshll.u32 %v857_v45, 16  ;;  %v437_v49 = vshrl.u32 %v857_v45, 16  ;;  %v573_v56 = vrot.slane %v857_v45, 1 }
 0x109   : > { %v444_v48 = vshll.u32 %v858_v46, 16  ;;  %v448_v54 = vshrl.u32 %v858_v46, 16  ;;  %v574_v57 = vrot.slane %v858_v46, 1 }
 0x10a   : > { %v441_v50 = vrot.slane %v439_v47, 1 }
 0x10b   : > { %v446_v52 = vrot.slane %v444_v48, 1  ;;  %v575_v58 = vsel %vm572_vm13, %v573_v56, %v574_v57 }
 0x10c   : > { %v442_v51 = vor.u32 %v441_v50, %v437_v49 }
 0x10e   : > { %v447_v53 = vsel %vm435_vm11, %v442_v51, %v446_v52 }
 0x10f   : > { %821 = vmatprep.mubr.msk.bf16.mxu1 %vm456_vm12, %v447_v53 }
 0x110   : > { %822 = vmatmul.mubr.msk.bf16.vlgmr.msra.gmra.mxu1 %vm456_vm12, %v448_v54 }
 0x111   : > { %826 = vmatpush3.bf16.msra.mxu1 %v859_v15  ;;  %827 = vmatprep.mubr.msk.bf16.mxu1 %vm456_vm12, %v857_v45 }
 0x112   : > { %831 = vmatprep.subr.bf16.mxu1 %v860_v55 }
 0x118   : > { %828 = vmatmul.mubr.msk.bf16.vlgmr.msra.gmra.mxu1 %vm456_vm12, %v858_v46 }
 0x119   : > { %832 = vmatpush3.bf16.msra.mxu1 %v860_v55  ;;  %833 = vmatprep.mubr.msk.bf16.mxu1 %vm456_vm12, %v575_v58 }
 0x120   : > { %834 = vmatmul.mubr.msk.bf16.vlgmr.msra.gmra.mxu1 %vm456_vm12, %v574_v57 }
 0x1d0   : > { %v823_v59 = vpop.f32.mrf.mxu1 }
 0x1d2   : > { %v497_v60 = vpop.f32.mrf.mxu1 }
 0x1d4   : > { %v824_v61 = vpop.f32.mrf.mxu1 }
 0x1d6   : > { %v500_v62 = vpop.f32.mrf.mxu1 }
 0x1d8   : > { %v829_v63 = vpop.f32.mrf.mxu1 }
 0x1d9   : > { %v564_v3 = vadd.f32 %v829_v63, %v823_v59 }
 0x1da   : > { %v555_v0 = vpop.f32.mrf.mxu1 }
 0x1db   : > { %v556_v6 = vadd.f32 %v555_v0, %v497_v60 }
 0x1dc   : > { %v830_v1 = vpop.f32.mrf.mxu1 }
 0x1de   : > { %v558_v2 = vpop.f32.mrf.mxu1 }
 0x1df   : > { %v559_v12 = vadd.f32 %v558_v2, %v500_v62 }
 0x1e0   : > { %v835_v4 = vpop.f32.mrf.mxu1 }
 0x1e1   : > { %v638_v7 = vadd.f32 %v835_v4, %v564_v3 }
 0x1e2   : > { %v622_v8 = vpop.f32.mrf.mxu1 }
 0x1e3   : > { %v648_v9 = vadd.f32 %v763_v5, %v638_v7  ;;  %v636_v10 = vadd.f32 %v622_v8, %v556_v6 }
 0x1e4   : > { %v836_v11 = vpop.f32.mrf.mxu1 }
 0x1e5   : > { %v651_v13 = vmax.f32 %v648_v9, 0.0  ;;  %v646_v17 = vadd.f32 %v763_v5, %v636_v10 }
 0x1e6   : > { %v625_v15 = vpop.f32.mrf.mxu1 }
 0x1e7   : > { %v774_v16 = vpack.c.bf16 %v651_v13, %v651_v13  ;;  %v637_v18 = vadd.f32 %v625_v15, %v559_v12  ;;  %v649_v21 = vmax.f32 %v646_v17, 0.0 }
 0x1e9   : > { %v670_v19 = vsel %vm668_vm15, %v774_v16, %v669_v14  ;;  %v647_v20 = vadd.f32 %v763_v5, %v637_v18 }
 0x1ea   : > { %671 = vst [vmem:[%s224_s30 + $0x8] sm:$0x1] %v670_v19 }
 0x1eb   : > { %v650_v22 = vmax.f32 %v647_v20, 0.0 }
 0x1ed   : > { %v778_v23 = vpack.c.bf16 %v650_v22, %v649_v21 }
 0x1ef   : > { %779 = vst [vmem:[%s224_s30] sm:$0xff] %v778_v23  }
 0x1f0 PF: > { %s15_s18 = sadd.s32 1, %s867_s18  }
 0x1f1   : > { %p12_p4 = scmp.ge.s32.totalorder %s15_s18, 4  }
 0x1f3   :  { %14 = sbr.rel (!%p12_p4) target bundleno = 1 (0x1), region = 72 }

// kernel: _lambda_.18
= control target key start
LH: loop header
LB: loop body
LE: loop exit
PB: predicated region body
PF: predicated region fallthrough
CT: control target
= control target key end

     0   :  { %s254_s6 = smov 0   ;;  %s271_s0 = inlined_call_operand.vmem [shape: bf16[2,10,256], index: 0, kind: input, shape index: {}]   ;;  %s272_s1 = inlined_call_operand.vmem [shape: bf16[2,9,128], index: 1, kind: output, shape index: {}]  }
   0x1 LB: > { %s214_s7 = sadd.s32 4294967295, %s242_s6   ;;  %p218_p0 = scmp.ge.s32.totalorder %s242_s6, 1  ;;  %s242_s6 = sphi %s254_s6, %s11_s6  }
   0x2   : > { %p87_p1 = scmp.lt.s32.totalorder %s242_s6, 3 }
   0x4   : > { %p88_p2 = pnand %p218_p0, %p87_p1 }
   0x5   : > { %p107_p3 = scmp.lt.s32.totalorder (!%p88_p2), %s214_s7, 1 }
   0x6   : > { %91 = sbr.rel (%p88_p2) target bundleno = 27 (0x1b), region = 24 }
   0xb   : > { %s274_s7 = smov (!%p107_p3, %s214_s7), 1  ;;  %vm153_vm0 = vcmask 1040384   ;;  %vm154_vm1 = vsmask.f32 256  ;;  %vm127_vm2 = vsmask.f32 3328 }
   0xc   : > { %s226_s8 = sshll.u32 %s274_s7, 4  ;;  %s227_s12 = sshll.u32 %s274_s7, 3  ;;  %vm128_vm3 = vsmask.f32 7440  ;;  %vm155_vm4 = vmand %vm153_vm0, %vm154_vm1 }
   0xd   : > { %s111_s11 = scalar_lea.vmem %s271_s0, %s226_s8  ;;  %s116_s15 = scalar_lea.vmem %s272_s1, %s227_s12  ;;  %vm129_vm5 = vmor %vm127_vm2, %vm128_vm3 }
   0xe   : > { %v117_v0 = vld [vmem:[%s111_s11] sm:$0xff]  ;;  %v118_v1 = vld [vmem:[%s111_s11 + $0x8] sm:$0x11] }
   0xf   : > { %v131_v2 = vshrl.u32 %v117_v0, 16  ;;  %v134_v3 = vshll.u32 %v117_v0, 16  ;;  %v140_v4 = vshll.u32 %v118_v1, 16  ;;  %v121_v5 = vrot.slane %v117_v0, 4  ;;  %v156_v13 = vld [vmem:[%s116_s15 + $0x4] sm:$0x1] }
  0x10   : > { %v122_v6 = vrot.slane %v118_v1, 4  ;;  %v144_v7 = vshrl.u32 %v118_v1, 16 }
  0x11   : > { %v133_v8 = vrot.slane %v131_v2, 4  ;;  %v136_v9 = vrot.slane %v134_v3, 5  ;;  %v142_v12 = vrot.slane %v140_v4, 5  ;;  %v125_v14 = vmax.bf16 %v121_v5, %v117_v0 }
  0x12   : > { %v126_v10 = vmax.bf16 %v122_v6, %v118_v1 }
  0x13   : > { %v137_v11 = vor.u32 %v136_v9, %v133_v8 }
  0x14   : > { %v151_v15 = vmax.bf16 %v144_v7, %v126_v10 }
  0x15   : > { %v138_v16 = vrot.slane %v137_v11, 4 }
  0x16   : > { %v157_v17 = vsel %vm155_vm4, %v151_v15, %v156_v13 }
  0x17   : > { %v143_v18 = vsel %vm129_vm5, %v138_v16, %v142_v12  ;;  %158 = vst [vmem:[%s116_s15 + $0x4] sm:$0x1] %v157_v17 }
  0x18   : > { %v150_v19 = vmax.bf16 %v143_v18, %v125_v14 }
  0x1a   : > { %152 = vst [vmem:[%s116_s15] sm:$0xf] %v150_v19 }
  0x1b PF: > { %s11_s6 = sadd.s32 1, %s242_s6  }
  0x1c   : > { %p8_p4 = scmp.ge.s32.totalorder %s11_s6, 4  }
  0x1e   :  { %10 = sbr.rel (!%p8_p4) target bundleno = 1 (0x1), region = 54 }

// kernel: _lambda_.19
= control target key start
LH: loop header
LB: loop body
LE: loop exit
PB: predicated region body
PF: predicated region fallthrough
CT: control target
= control target key end

     0   :  { %s882_s18 = smov 0   ;;  %s977_s0 = inlined_call_operand.vmem [shape: bf16[2,9,128], index: 0, kind: input, shape index: {}]   ;;  %s978_s1 = inlined_call_operand.vmem [shape: bf16[128,32], index: 1, kind: input, shape index: {}]   ;;  %s979_s2 = inlined_call_operand.vmem [shape: f32[1,32], index: 2, kind: input, shape index: {}]   ;;  %s980_s3 = inlined_call_operand.vmem [shape: bf16[3,32,256], index: 3, kind: input, shape index: {}]   ;;  %s981_s4 = inlined_call_operand.vmem [shape: f32[1,256], index: 4, kind: input, shape index: {}]   ;;  %s982_s5 = inlined_call_operand.vmem [shape: bf16[2,9,256], index: 5, kind: output, shape index: {}]  }
   0x1 LB: > { %s718_s19 = sadd.s32 4294967295, %s847_s18   ;;  %p722_p0 = scmp.ge.s32.totalorder %s847_s18, 1  ;;  %s847_s18 = sphi %s882_s18, %s15_s18  }
   0x2   : > { %p187_p1 = scmp.lt.s32.totalorder %s847_s18, 3 }
   0x4   : > { %p188_p2 = pnand %p722_p0, %p187_p1 }
   0x5   : > { %p215_p3 = scmp.lt.s32.totalorder (!%p188_p2), %s718_s19, 1 }
   0x6   : > { %191 = sbr.rel (%p188_p2) target bundleno = 489 (0x1e9), region = 40 }
   0xb   : > { %v813_v0 = vld [vmem:[%s978_s1 + $0x38] sm:$0xff]   ;;  %v849_v1 = vmov 0.0   ;;  %v814_v2 = vld [vmem:[%s978_s1 + $0x30] sm:$0xff]   ;;  %vm850_vm0 = vmmov 0   ;;  %s984_s19 = smov (!%p215_p3, %s718_s19), 1  ;;  %v815_v3 = vld [vmem:[%s978_s1 + $0x28] sm:$0xff]   ;;  %v623_v55 = vlaneseq }
   0xc   : > { %782 = vmatprep.subr.bf16.mxu0 %v849_v1  ;;  %798 = vmatprep.mubr.msk.bf16.mxu0 %vm850_vm0, %v849_v1  ;;  %s767_s26 = sshll.u32 %s984_s19, 3  ;;  %v816_v4 = vld [vmem:[%s978_s1 + $0x20] sm:$0xff]   ;;  %v817_v5 = vld [vmem:[%s978_s1 + $0x18] sm:$0xff]   ;;  %v818_v6 = vld [vmem:[%s978_s1 + $0x10] sm:$0xff]   ;;  %vm348_vm1 = vcmask 253952   ;;  %vm354_vm4 = vcmask 254977  }
   0xd   : > { %783 = vmatpush3.bf16.msra.mxu0 %v813_v0  ;;  %s219_s29 = scalar_lea.vmem %s977_s0, %s767_s26  ;;  %v819_v7 = vld [vmem:[%s978_s1 + $0x8] sm:$0xff]   ;;  %v820_v8 = vld [vmem:[%s978_s1] sm:$0xff]   ;;  %vm349_vm2 = vsmask.f32 256  ;;  %vm355_vm5 = vsmask.f32 1280 }
   0xe   : > { %784 = vmatprep.subr.bf16.mxu0 %v849_v1  ;;  %v821_v9 = vld [vmem:[%s219_s29] sm:$0x1f]   ;;  %vm350_vm3 = vmand %vm348_vm1, %vm349_vm2  ;;  %v357_v12 = vld [vmem:[#allocation2 + $0x4] sm:$0x2]  ;;  %v851_v16 = vmov 0   ;;  %vm382_vm8 = vcmask 257024  }
   0xf   : > { %v351_v10 = vld [vmem:[#allocation2] sm:$0x1]  ;;  %v822_v13 = vld [vmem:[%s980_s3 + $0x34] ss:$8 sps:$4 sm:$0xff]   ;;  %v824_v14 = vld [vmem:[%s980_s3 + $0x30] ss:$8 sps:$4 sm:$0xff]   ;;  %469 = vmatprep.mubr.bf16.mxu1 %v851_v16 }
  0x10   : > { %v352_v11 = vsel %vm350_vm3, 0, %v351_v10  ;;  %v825_v15 = vld [vmem:[%s980_s3 + $0x24] ss:$8 sps:$4 sm:$0xff]   ;;  %vm356_vm6 = vmand %vm354_vm4, %vm355_vm5  ;;  %449 = vmatprep.subr.bf16.mxu1 %v822_v13  ;;  %v827_v18 = vld [vmem:[%s980_s3 + $0x20] ss:$8 sps:$4 sm:$0xff]   ;;  %vm433_vm12 = vcmask 261120  }
  0x11   : > { %785 = vmatpush3.bf16.msra.mxu0 %v814_v2  ;;  %353 = vst [vmem:[#allocation2] sm:$0x1] %v352_v11  ;;  %v358_v17 = vsel %vm356_vm6, 0, %v357_v12  ;;  %450 = vmatpush1.bf16.msra.mxu1 %v824_v14  ;;  %v830_v19 = vld [vmem:[%s980_s3 + $0x14] ss:$8 sps:$4 sm:$0xff]   ;;  %v624_v58 = vshrl.u32 %v623_v55, 7 }
  0x12   : > { %786 = vmatprep.subr.bf16.mxu0 %v849_v1  ;;  %359 = vst [vmem:[#allocation2 + $0x4] sm:$0x2] %v358_v17  ;;  %451 = vmatprep.subr.bf16.mxu1 %v825_v15  ;;  %v727_v20 = vld [vmem:[%s979_s2] ss:$0 sm:$0xff]  ;;  %vm366_vm7 = vsmask.f32 4368 }
  0x13   : > { %vm383_vm9 = vsmask.f32 7938  ;;  %vm367_vm10 = vmor %vm349_vm2, %vm366_vm7  ;;  %v828_v44 = vld [vmem:[%s980_s3 + $0x10] ss:$8 sps:$4 sm:$0xff]   ;;  %v834_v46 = vld [vmem:[%s980_s3 + $0x4] ss:$8 sps:$4 sm:$0xff]  }
  0x14   : > { %vm384_vm11 = vmand %vm382_vm8, %vm383_vm9  ;;  %v832_v47 = vld [vmem:[%s980_s3] ss:$8 sps:$4 sm:$0xff]   ;;  %v837_v48 = vld [vmem:[%s980_s3 + $0x54] ss:$8 sps:$4 sm:$0xff]   ;;  %v625_v61 = vsub.s32 0, %v624_v58  ;;  %v629_v0 = vsub.s32 1, %v624_v58 }
  0x15   : > { %787 = vmatpush3.bf16.msra.mxu0 %v815_v3  ;;  %452 = vmatpush1.bf16.msra.mxu1 %v827_v18  ;;  %v835_v49 = vld [vmem:[%s980_s3 + $0x50] ss:$8 sps:$4 sm:$0xff]   ;;  %v840_v50 = vld [vmem:[%s980_s3 + $0x44] ss:$8 sps:$4 sm:$0xff]   ;;  %v838_v51 = vld [vmem:[%s980_s3 + $0x40] ss:$8 sps:$4 sm:$0xff]  }
  0x16   : > { %788 = vmatprep.subr.bf16.mxu0 %v849_v1  ;;  %514 = vmatprep.subr.bf16.mxu1 %v830_v19  ;;  %v621_v63 = vld [vmem:[%s981_s4] sm:$0x3]  ;;  %s768_s22 = sshll.u32 %s984_s19, 4  ;;  %vm654_vm13 = vcmask 1040384   ;;  %vm656_vm14 = vcmask 1044484  }
  0x17   : > { %v626_v3 = vrot.slane %v621_v63, %v625_v61  ;;  %vm657_vm15 = vsmask.f32 4352  ;;  %s224_s25 = scalar_lea.vmem %s982_s5, %s768_s22  ;;  %vm655_vm0 = vmand %vm654_vm13, %vm349_vm2 }
  0x18   : > { %v385_v34 = vld [vmem:[#allocation2] sm:$0xf] }
  0x19   : > { %789 = vmatpush3.bf16.msra.mxu0 %v816_v4 }
  0x1a   : > { %790 = vmatprep.subr.bf16.mxu0 %v849_v1 }
  0x1d   : > { %791 = vmatpush3.bf16.msra.mxu0 %v817_v5 }
  0x1e   : > { %792 = vmatprep.subr.bf16.mxu0 %v849_v1 }
  0x21   : > { %793 = vmatpush3.bf16.msra.mxu0 %v818_v6 }
  0x22   : > { %794 = vmatprep.subr.bf16.mxu0 %v849_v1 }
  0x25   : > { %795 = vmatpush3.bf16.msra.mxu0 %v819_v7  ;;  %v630_v7 = vrot.slane %v621_v63, %v629_v0 }
  0x26   : > { %796 = vmatprep.subr.bf16.mxu0 %v849_v1 }
  0x29   : > { %797 = vmatpush3.bf16.msra.mxu0 %v820_v8 }
  0x2c   : > { %799 = vmatmul.mubr.bf16.vlgmr.msra.gmra.mxu0 %v821_v9 }
  0xec   : > { %v339_v21 = vpop.f32.mrf.mxu0 }
  0xed   : > { %v340_v22 = vadd.f32 %v727_v20, %v339_v21 }
  0xee   : > { %v800_v23 = vpop.f32.mrf.mxu0 }
  0xef   : > { %v346_v24 = vmax.f32 %v340_v22, 0.0 }
  0xf0   : > { %v342_v25 = vpop.f32.mrf.mxu0 }
  0xf1   : > { %v769_v26 = vpack.c.bf16 %v346_v24, %v346_v24  ;;  %v343_v27 = vadd.f32 %v727_v20, %v342_v25  ;;  %v660_v25 = vld [vmem:[%s224_s25 + $0x8] sm:$0x11] }
  0xf2   : > { %v801_v28 = vpop.f32.mrf.mxu0 }
  0xf3   : > { %v369_v29 = vshrl.u32 %v769_v26, 16  ;;  %v347_v30 = vmax.f32 %v343_v27, 0.0  ;;  %v372_v32 = vshll.u32 %v769_v26, 16 }
  0xf5   : > { %v371_v31 = vrot.slane %v369_v29, 7  ;;  %v770_v33 = vpack.c.bf16 %v347_v30, %v347_v30 }
  0xf7   : > { %v374_v35 = vor.u32 %v372_v32, %v371_v31  ;;  %v375_v36 = vrot.slane %v371_v31, 4  ;;  %v377_v37 = vshll.u32 %v770_v33, 16 }
  0xf9   : > { %v379_v38 = vsel %vm367_vm10, %v375_v36, %v377_v37  ;;  %v386_v39 = vsel %vm384_vm11, %v374_v35, %v385_v34 }
  0xfa   : > { %387 = vst [vmem:[#allocation2] sm:$0xf] %v386_v39  ;;  %389 = vst.msk [vmem:[#allocation2 + $0x4] sm:$0x1] %vm348_vm1, %v379_v38 }
  0xfb   : > { %vm658_vm1 = vmand %vm656_vm14, %vm657_vm15 }
  0xfc   : > { %vm659_vm3 = vmor %vm658_vm1, %vm655_vm0 }
 0x101   : > { %v831_v40 = vld [vmem:[#allocation2] sm:$0x3f]  }
 0x102   : > { %v409_v41 = vshll.u32 %v831_v40, 16  ;;  %v407_v42 = vshrl.u32 %v831_v40, 16  ;;  %v550_v52 = vrot.slane %v831_v40, 1 }
 0x104   : > { %v411_v43 = vrot.slane %v409_v41, 1 }
 0x106   : > { %v412_v45 = vor.u32 %v411_v43, %v407_v42 }
 0x108   : > { %748 = vmatmul.mubr.msk.bf16.vlgmr.msra.gmra.mxu1 %vm433_vm12, %v412_v45 }
 0x109   : > { %515 = vmatpush1.bf16.msra.mxu1 %v828_v44  ;;  %534 = vmatprep.mubr.bf16.mxu1 %v851_v16 }
 0x10a   : > { %516 = vmatprep.subr.bf16.mxu1 %v834_v46 }
 0x10d   : > { %517 = vmatpush1.bf16.msra.mxu1 %v832_v47 }
 0x10e   : > { %586 = vmatprep.subr.bf16.mxu1 %v837_v48 }
 0x110   : > { %753 = vmatmul.mubr.msk.bf16.vlgmr.msra.gmra.mxu1 %vm433_vm12, %v831_v40 }
 0x111   : > { %587 = vmatpush1.bf16.msra.mxu1 %v835_v49  ;;  %606 = vmatprep.mubr.bf16.mxu1 %v851_v16 }
 0x112   : > { %588 = vmatprep.subr.bf16.mxu1 %v840_v50 }
 0x115   : > { %589 = vmatpush1.bf16.msra.mxu1 %v838_v51 }
 0x118   : > { %762 = vmatmul.mubr.msk.bf16.vlgmr.msra.gmra.mxu1 %vm433_vm12, %v550_v52 }
 0x1c8   : > { %v471_v53 = vpop.f32.mrf.mxu1 }
 0x1ca   : > { %v473_v54 = vpop.f32.mrf.mxu1 }
 0x1cc   : > { %v475_v56 = vpop.f32.mrf.mxu1 }
 0x1ce   : > { %v477_v57 = vpop.f32.mrf.mxu1 }
 0x1d0   : > { %v536_v59 = vpop.f32.mrf.mxu1 }
 0x1d1   : > { %v537_v2 = vadd.f32 %v536_v59, %v471_v53 }
 0x1d2   : > { %v538_v60 = vpop.f32.mrf.mxu1 }
 0x1d3   : > { %v539_v5 = vadd.f32 %v538_v60, %v473_v54 }
 0x1d4   : > { %v540_v62 = vpop.f32.mrf.mxu1 }
 0x1d5   : > { %v541_v9 = vadd.f32 %v540_v62, %v475_v56 }
 0x1d6   : > { %v542_v1 = vpop.f32.mrf.mxu1 }
 0x1d7   : > { %v543_v13 = vadd.f32 %v542_v1, %v477_v57 }
 0x1d8   : > { %v608_v4 = vpop.f32.mrf.mxu1 }
 0x1d9   : > { %v617_v6 = vadd.f32 %v608_v4, %v537_v2 }
 0x1da   : > { %v610_v8 = vpop.f32.mrf.mxu1 }
 0x1db   : > { %v633_v10 = vadd.f32 %v626_v3, %v617_v6  ;;  %v618_v11 = vadd.f32 %v610_v8, %v539_v5 }
 0x1dc   : > { %v612_v12 = vpop.f32.mrf.mxu1 }
 0x1dd   : > { %v634_v14 = vadd.f32 %v630_v7, %v618_v11  ;;  %v619_v15 = vadd.f32 %v612_v12, %v541_v9  ;;  %v637_v17 = vmax.f32 %v633_v10, 0.0 }
 0x1de   : > { %v614_v16 = vpop.f32.mrf.mxu1 }
 0x1df   : > { %v638_v18 = vmax.f32 %v634_v14, 0.0  ;;  %v635_v19 = vadd.f32 %v626_v3, %v619_v15  ;;  %v620_v20 = vadd.f32 %v614_v16, %v543_v13 }
 0x1e1   : > { %v771_v21 = vpack.c.bf16 %v638_v18, %v637_v17  ;;  %v636_v22 = vadd.f32 %v630_v7, %v620_v20  ;;  %v639_v23 = vmax.f32 %v635_v19, 0.0 }
 0x1e3   : > { %653 = vst [vmem:[%s224_s25] sm:$0xff] %v771_v21  ;;  %v640_v24 = vmax.f32 %v636_v22, 0.0 }
 0x1e5   : > { %v772_v26 = vpack.c.bf16 %v640_v24, %v639_v23 }
 0x1e7   : > { %v661_v27 = vsel %vm659_vm3, %v772_v26, %v660_v25 }
 0x1e8   : > { %662 = vst [vmem:[%s224_s25 + $0x8] sm:$0x11] %v661_v27 }
 0x1e9 PF: > { %s15_s18 = sadd.s32 1, %s847_s18  }
 0x1ea   : > { %p12_p4 = scmp.ge.s32.totalorder %s15_s18, 4  }
 0x1ec   :  { %14 = sbr.rel (!%p12_p4) target bundleno = 1 (0x1), region = 72 }

// kernel: _lambda_.21
= control target key start
LH: loop header
LB: loop body
LE: loop exit
PB: predicated region body
PF: predicated region fallthrough
CT: control target
= control target key end

     0   :  { %s235_s6 = smov 0   ;;  %s252_s0 = inlined_call_operand.vmem [shape: bf16[2,6,512], index: 0, kind: input, shape index: {}]   ;;  %s253_s1 = inlined_call_operand.vmem [shape: bf16[2,5,256], index: 1, kind: output, shape index: {}]  }
   0x1 LB: > { %s196_s7 = sadd.s32 4294967295, %s223_s6   ;;  %p200_p0 = scmp.ge.s32.totalorder %s223_s6, 1  ;;  %s223_s6 = sphi %s235_s6, %s11_s6  }
   0x2   : > { %p87_p1 = scmp.lt.s32.totalorder %s223_s6, 3 }
   0x4   : > { %p88_p2 = pnand %p200_p0, %p87_p1 }
   0x5   : > { %p107_p3 = scmp.lt.s32.totalorder (!%p88_p2), %s196_s7, 1 }
   0x6   : > { %91 = sbr.rel (%p88_p2) target bundleno = 27 (0x1b), region = 24 }
   0xb   : > { %s255_s7 = smov (!%p107_p3, %s196_s7), 1  ;;  %vm131_vm0 = vcmask 1042432   ;;  %vm132_vm1 = vsmask.f32 2304  ;;  %vm134_vm2 = vcmask 1046532  }
   0xc   : > { %s207_s8 = sshll.u32 %s255_s7, 4  ;;  %s208_s12 = sshll.u32 %s255_s7, 3  ;;  %vm135_vm3 = vsmask.f32 6400  ;;  %vm133_vm4 = vmand %vm131_vm0, %vm132_vm1 }
   0xd   : > { %s111_s11 = scalar_lea.vmem %s252_s0, %s207_s8  ;;  %s116_s15 = scalar_lea.vmem %s253_s1, %s208_s12  ;;  %vm136_vm5 = vmand %vm134_vm2, %vm135_vm3 }
   0xe   : > { %v117_v0 = vld [vmem:[%s111_s11] sm:$0x77]  ;;  %v118_v3 = vld [vmem:[%s111_s11 + $0x8] sm:$0x77]  ;;  %vm137_vm6 = vmor %vm136_vm5, %vm133_vm4 }
   0xf   : > { %v121_v1 = vshrl.u32 %v117_v0, 16  ;;  %v124_v2 = vshll.u32 %v117_v0, 16  ;;  %v119_v6 = vmax.bf16 %v118_v3, %v117_v0  ;;  %v138_v9 = vld [vmem:[%s116_s15] sm:$0x77] }
  0x11   : > { %v123_v4 = vrot.slane %v121_v1, 4  ;;  %v126_v5 = vrot.slane %v124_v2, 5 }
  0x13   : > { %v127_v7 = vor.u32 %v126_v5, %v123_v4 }
  0x15   : > { %v128_v8 = vrot.slane %v127_v7, 4 }
  0x17   : > { %v130_v10 = vmax.bf16 %v128_v8, %v119_v6 }
  0x19   : > { %v139_v11 = vsel %vm137_vm6, %v130_v10, %v138_v9 }
  0x1a   : > { %140 = vst [vmem:[%s116_s15] sm:$0x77] %v139_v11 }
  0x1b PF: > { %s11_s6 = sadd.s32 1, %s223_s6  }
  0x1c   : > { %p8_p4 = scmp.ge.s32.totalorder %s11_s6, 4  }
  0x1e   :  { %10 = sbr.rel (!%p8_p4) target bundleno = 1 (0x1), region = 54 }

// kernel: _lambda_.20
= control target key start
LH: loop header
LB: loop body
LE: loop exit
PB: predicated region body
PF: predicated region fallthrough
CT: control target
= control target key end

     0   :  { %s958_s18 = smov 0   ;;  %s1080_s0 = inlined_call_operand.vmem [shape: bf16[2,9,256], index: 0, kind: input, shape index: {}]   ;;  %s1081_s1 = inlined_call_operand.vmem [shape: bf16[256,32], index: 1, kind: input, shape index: {}]   ;;  %s1082_s2 = inlined_call_operand.vmem [shape: f32[1,32], index: 2, kind: input, shape index: {}]   ;;  %s1083_s3 = inlined_call_operand.vmem [shape: bf16[3,32,256], index: 3, kind: input, shape index: {}]   ;;  %s1084_s4 = inlined_call_operand.vmem [shape: f32[1,256], index: 4, kind: input, shape index: {}]   ;;  %s1085_s5 = inlined_call_operand.vmem [shape: bf16[2,9,256], index: 5, kind: output, shape index: {}]  }
   0x1 LB: > { %s786_s19 = sadd.s32 4294967295, %s925_s18   ;;  %p790_p0 = scmp.ge.s32.totalorder %s925_s18, 1  ;;  %s925_s18 = sphi %s958_s18, %s15_s18  }
   0x2   : > { %p187_p1 = scmp.lt.s32.totalorder %s925_s18, 3 }
   0x4   : > { %p188_p2 = pnand %p790_p0, %p187_p1 }
   0x5   : > { %p215_p3 = scmp.lt.s32.totalorder (!%p188_p2), %s786_s19, 1 }
   0x6   : > { %191 = sbr.rel (%p188_p2) target bundleno = 493 (0x1ed), region = 40 }
   0xb   : > { %v881_v0 = vld [vmem:[%s1081_s1 + $0x78] sm:$0xff]   ;;  %v883_v2 = vld [vmem:[%s1081_s1 + $0x70] sm:$0xff]   ;;  %v885_v4 = vld [vmem:[%s1081_s1 + $0x68] sm:$0xff]   ;;  %s1087_s19 = smov (!%p215_p3, %s786_s19), 1  ;;  %vm416_vm0 = vcmask 253952   ;;  %vm422_vm3 = vcmask 254977  }
   0xc   : > { %v882_v1 = vld [vmem:[%s1081_s1 + $0x38] sm:$0xff]   ;;  %850 = vmatprep.subr.bf16.mxu0 %v881_v0  ;;  %v884_v3 = vld [vmem:[%s1081_s1 + $0x30] sm:$0xff]   ;;  %v886_v5 = vld [vmem:[%s1081_s1 + $0x28] sm:$0xff]   ;;  %s844_s11 = sshll.u32 %s1087_s19, 4  ;;  %vm417_vm1 = vsmask.f32 256 }
   0xd   : > { %851 = vmatpush3.bf16.msra.mxu0 %v882_v1  ;;  %v887_v6 = vld [vmem:[%s1081_s1 + $0x60] sm:$0xff]   ;;  %v889_v8 = vld [vmem:[%s1081_s1 + $0x58] sm:$0xff]   ;;  %s219_s16 = scalar_lea.vmem %s1080_s0, %s844_s11  ;;  %v891_v10 = vld [vmem:[%s1081_s1 + $0x50] sm:$0xff]   ;;  %vm423_vm4 = vsmask.f32 1280  ;;  %v927_v24 = vmov 0   ;;  %v691_v1 = vlaneseq  ;;  %s224_s17 = scalar_lea.vmem %s1085_s5, %s844_s11 }
   0xe   : > { %852 = vmatprep.subr.bf16.mxu0 %v883_v2  ;;  %v888_v7 = vld [vmem:[%s1081_s1 + $0x20] sm:$0xff]   ;;  %v890_v9 = vld [vmem:[%s1081_s1 + $0x18] sm:$0xff]   ;;  %v892_v11 = vld [vmem:[%s1081_s1 + $0x10] sm:$0xff]   ;;  %537 = vmatprep.mubr.bf16.mxu1 %v927_v24  ;;  %vm434_vm6 = vsmask.f32 4368  ;;  %vm450_vm7 = vcmask 257024  }
   0xf   : > { %v899_v12 = vld [vmem:[%s219_s16 + $0x4] ss:$8 sps:$4 sm:$0x1f]   ;;  %v897_v17 = vld [vmem:[%s219_s16] ss:$8 sps:$4 sm:$0x1f]   ;;  %vm418_vm2 = vmand %vm416_vm0, %vm417_vm1 }
  0x10   : > { %v893_v13 = vld [vmem:[%s1081_s1 + $0x48] sm:$0xff]   ;;  %405 = vmatprep.mubr.bf16.mxu0 %v899_v12  ;;  %v895_v15 = vld [vmem:[%s1081_s1 + $0x40] sm:$0xff]   ;;  %v900_v21 = vld [vmem:[%s1083_s3 + $0x34] ss:$8 sps:$4 sm:$0xff]   ;;  %vm451_vm8 = vsmask.f32 7938 }
  0x11   : > { %853 = vmatpush3.bf16.msra.mxu0 %v884_v3  ;;  %v894_v14 = vld [vmem:[%s1081_s1 + $0x8] sm:$0xff]   ;;  %v896_v16 = vld [vmem:[%s1081_s1] sm:$0xff]   ;;  %v902_v22 = vld [vmem:[%s1083_s3 + $0x30] ss:$8 sps:$4 sm:$0xff]   ;;  %517 = vmatprep.subr.bf16.mxu1 %v900_v21  ;;  %vm501_vm11 = vcmask 261120   ;;  %vm722_vm12 = vcmask 1040384  }
  0x12   : > { %854 = vmatprep.subr.bf16.mxu0 %v885_v4  ;;  %v419_v18 = vld [vmem:[#allocation2] sm:$0x1]  ;;  %v425_v20 = vld [vmem:[#allocation2 + $0x4] sm:$0x2]  ;;  %vm424_vm5 = vmand %vm422_vm3, %vm423_vm4  ;;  %518 = vmatpush1.bf16.msra.mxu1 %v902_v22  ;;  %v692_v4 = vshrl.u32 %v691_v1, 7  ;;  %vm724_vm13 = vcmask 1044484  }
  0x13   : > { %v420_v19 = vsel %vm418_vm2, 0, %v419_v18  ;;  %v903_v23 = vld [vmem:[%s1083_s3 + $0x24] ss:$8 sps:$4 sm:$0xff]   ;;  %v426_v25 = vsel %vm424_vm5, 0, %v425_v20  ;;  %v905_v26 = vld [vmem:[%s1083_s3 + $0x20] ss:$8 sps:$4 sm:$0xff]   ;;  %vm435_vm9 = vmor %vm417_vm1, %vm434_vm6 }
  0x14   : > { %421 = vst [vmem:[#allocation2] sm:$0x1] %v420_v19  ;;  %427 = vst [vmem:[#allocation2 + $0x4] sm:$0x2] %v426_v25  ;;  %519 = vmatprep.subr.bf16.mxu1 %v903_v23  ;;  %v908_v27 = vld [vmem:[%s1083_s3 + $0x14] ss:$8 sps:$4 sm:$0xff]  }
  0x15   : > { %855 = vmatpush3.bf16.msra.mxu0 %v886_v5  ;;  %v795_v29 = vld [vmem:[%s1082_s2] ss:$0 sm:$0xff]  ;;  %vm452_vm10 = vmand %vm450_vm7, %vm451_vm8  ;;  %v906_v54 = vld [vmem:[%s1083_s3 + $0x10] ss:$8 sps:$4 sm:$0xff]   ;;  %vm725_vm14 = vsmask.f32 4352 }
  0x16   : > { %856 = vmatprep.subr.bf16.mxu0 %v887_v6  ;;  %520 = vmatpush1.bf16.msra.mxu1 %v905_v26  ;;  %v912_v56 = vld [vmem:[%s1083_s3 + $0x4] ss:$8 sps:$4 sm:$0xff]   ;;  %v910_v57 = vld [vmem:[%s1083_s3] ss:$8 sps:$4 sm:$0xff]   ;;  %v915_v58 = vld [vmem:[%s1083_s3 + $0x54] ss:$8 sps:$4 sm:$0xff]  }
  0x17   : > { %582 = vmatprep.subr.bf16.mxu1 %v908_v27  ;;  %v913_v59 = vld [vmem:[%s1083_s3 + $0x50] ss:$8 sps:$4 sm:$0xff]   ;;  %v918_v60 = vld [vmem:[%s1083_s3 + $0x44] ss:$8 sps:$4 sm:$0xff]   ;;  %v916_v61 = vld [vmem:[%s1083_s3 + $0x40] ss:$8 sps:$4 sm:$0xff]  }
  0x18   : > { %vm723_vm15 = vmand %vm722_vm12, %vm417_vm1 }
  0x19   : > { %857 = vmatpush3.bf16.msra.mxu0 %v888_v7  ;;  %v693_v7 = vsub.s32 0, %v692_v4 }
  0x1a   : > { %858 = vmatprep.subr.bf16.mxu0 %v889_v8 }
  0x1b   : > { %v453_v44 = vld [vmem:[#allocation2] sm:$0xf] }
  0x1d   : > { %859 = vmatpush3.bf16.msra.mxu0 %v890_v9  ;;  %v689_v9 = vld [vmem:[%s1084_s4] sm:$0x3] }
  0x1e   : > { %860 = vmatprep.subr.bf16.mxu0 %v891_v10  ;;  %v697_v10 = vsub.s32 1, %v692_v4 }
  0x21   : > { %861 = vmatpush3.bf16.msra.mxu0 %v892_v11 }
  0x22   : > { %862 = vmatprep.subr.bf16.mxu0 %v893_v13  ;;  %v694_v13 = vrot.slane %v689_v9, %v693_v7 }
  0x25   : > { %863 = vmatpush3.bf16.msra.mxu0 %v894_v14 }
  0x26   : > { %864 = vmatprep.subr.bf16.mxu0 %v895_v15 }
  0x29   : > { %865 = vmatpush3.bf16.msra.mxu0 %v896_v16 }
  0x2c   : > { %406 = vmatmul.mubr.bf16.vlgmr.msra.gmra.mxu0 %v897_v17  ;;  %v698_v17 = vrot.slane %v689_v9, %v697_v10 }
  0xec   : > { %v866_v28 = vpop.f32.mrf.mxu0 }
  0xee   : > { %v867_v30 = vpop.f32.mrf.mxu0 }
  0xef   : > { %v868_v31 = vadd.f32 %v867_v30, %v866_v28 }
  0xf0   : > { %v869_v32 = vpop.f32.mrf.mxu0 }
  0xf1   : > { %v408_v33 = vadd.f32 %v868_v31, %v795_v29 }
  0xf2   : > { %v870_v34 = vpop.f32.mrf.mxu0 }
  0xf3   : > { %v414_v35 = vmax.f32 %v408_v33, 0.0  ;;  %v871_v36 = vadd.f32 %v870_v34, %v869_v32 }
  0xf5   : > { %v846_v37 = vpack.c.bf16 %v414_v35, %v414_v35  ;;  %v411_v38 = vadd.f32 %v871_v36, %v795_v29  ;;  %v728_v35 = vld [vmem:[%s224_s17 + $0x8] sm:$0x11] }
  0xf7   : > { %v437_v39 = vshrl.u32 %v846_v37, 16  ;;  %v415_v40 = vmax.f32 %v411_v38, 0.0  ;;  %v440_v42 = vshll.u32 %v846_v37, 16 }
  0xf9   : > { %v439_v41 = vrot.slane %v437_v39, 7  ;;  %v847_v43 = vpack.c.bf16 %v415_v40, %v415_v40 }
  0xfb   : > { %v442_v45 = vor.u32 %v440_v42, %v439_v41  ;;  %v443_v46 = vrot.slane %v439_v41, 4  ;;  %v445_v47 = vshll.u32 %v847_v43, 16 }
  0xfd   : > { %v447_v48 = vsel %vm435_vm9, %v443_v46, %v445_v47  ;;  %v454_v49 = vsel %vm452_vm10, %v442_v45, %v453_v44 }
  0xfe   : > { %455 = vst [vmem:[#allocation2] sm:$0xf] %v454_v49  ;;  %457 = vst.msk [vmem:[#allocation2 + $0x4] sm:$0x1] %vm416_vm0, %v447_v48 }
  0xff   : > { %vm726_vm0 = vmand %vm724_vm13, %vm725_vm14 }
 0x100   : > { %vm727_vm2 = vmor %vm726_vm0, %vm723_vm15 }
 0x105   : > { %v909_v50 = vld [vmem:[#allocation2] sm:$0x3f]  }
 0x106   : > { %v477_v51 = vshll.u32 %v909_v50, 16  ;;  %v475_v52 = vshrl.u32 %v909_v50, 16  ;;  %v618_v62 = vrot.slane %v909_v50, 1 }
 0x108   : > { %v479_v53 = vrot.slane %v477_v51, 1 }
 0x10a   : > { %v480_v55 = vor.u32 %v479_v53, %v475_v52 }
 0x10c   : > { %825 = vmatmul.mubr.msk.bf16.vlgmr.msra.gmra.mxu1 %vm501_vm11, %v480_v55 }
 0x10d   : > { %583 = vmatpush1.bf16.msra.mxu1 %v906_v54  ;;  %602 = vmatprep.mubr.bf16.mxu1 %v927_v24 }
 0x10e   : > { %584 = vmatprep.subr.bf16.mxu1 %v912_v56 }
 0x111   : > { %585 = vmatpush1.bf16.msra.mxu1 %v910_v57 }
 0x112   : > { %654 = vmatprep.subr.bf16.mxu1 %v915_v58 }
 0x114   : > { %830 = vmatmul.mubr.msk.bf16.vlgmr.msra.gmra.mxu1 %vm501_vm11, %v909_v50 }
 0x115   : > { %655 = vmatpush1.bf16.msra.mxu1 %v913_v59  ;;  %674 = vmatprep.mubr.bf16.mxu1 %v927_v24 }
 0x116   : > { %656 = vmatprep.subr.bf16.mxu1 %v918_v60 }
 0x119   : > { %657 = vmatpush1.bf16.msra.mxu1 %v916_v61 }
 0x11c   : > { %839 = vmatmul.mubr.msk.bf16.vlgmr.msra.gmra.mxu1 %vm501_vm11, %v618_v62 }
 0x1cc   : > { %v539_v63 = vpop.f32.mrf.mxu1 }
 0x1ce   : > { %v541_v0 = vpop.f32.mrf.mxu1 }
 0x1d0   : > { %v543_v2 = vpop.f32.mrf.mxu1 }
 0x1d2   : > { %v545_v3 = vpop.f32.mrf.mxu1 }
 0x1d4   : > { %v604_v5 = vpop.f32.mrf.mxu1 }
 0x1d5   : > { %v605_v12 = vadd.f32 %v604_v5, %v539_v63 }
 0x1d6   : > { %v606_v6 = vpop.f32.mrf.mxu1 }
 0x1d7   : > { %v607_v15 = vadd.f32 %v606_v6, %v541_v0 }
 0x1d8   : > { %v608_v8 = vpop.f32.mrf.mxu1 }
 0x1d9   : > { %v609_v19 = vadd.f32 %v608_v8, %v543_v2 }
 0x1da   : > { %v610_v11 = vpop.f32.mrf.mxu1 }
 0x1db   : > { %v611_v23 = vadd.f32 %v610_v11, %v545_v3 }
 0x1dc   : > { %v676_v14 = vpop.f32.mrf.mxu1 }
 0x1dd   : > { %v685_v16 = vadd.f32 %v676_v14, %v605_v12 }
 0x1de   : > { %v678_v18 = vpop.f32.mrf.mxu1 }
 0x1df   : > { %v701_v20 = vadd.f32 %v694_v13, %v685_v16  ;;  %v686_v21 = vadd.f32 %v678_v18, %v607_v15 }
 0x1e0   : > { %v680_v22 = vpop.f32.mrf.mxu1 }
 0x1e1   : > { %v702_v24 = vadd.f32 %v698_v17, %v686_v21  ;;  %v687_v25 = vadd.f32 %v680_v22, %v609_v19  ;;  %v705_v27 = vmax.f32 %v701_v20, 0.0 }
 0x1e2   : > { %v682_v26 = vpop.f32.mrf.mxu1 }
 0x1e3   : > { %v706_v28 = vmax.f32 %v702_v24, 0.0  ;;  %v703_v29 = vadd.f32 %v694_v13, %v687_v25  ;;  %v688_v30 = vadd.f32 %v682_v26, %v611_v23 }
 0x1e5   : > { %v848_v31 = vpack.c.bf16 %v706_v28, %v705_v27  ;;  %v704_v32 = vadd.f32 %v698_v17, %v688_v30  ;;  %v707_v33 = vmax.f32 %v703_v29, 0.0 }
 0x1e7   : > { %721 = vst [vmem:[%s224_s17] sm:$0xff] %v848_v31  ;;  %v708_v34 = vmax.f32 %v704_v32, 0.0 }
 0x1e9   : > { %v849_v36 = vpack.c.bf16 %v708_v34, %v707_v33 }
 0x1eb   : > { %v729_v37 = vsel %vm727_vm2, %v849_v36, %v728_v35 }
 0x1ec   : > { %730 = vst [vmem:[%s224_s17 + $0x8] sm:$0x11] %v729_v37 }
 0x1ed PF: > { %s15_s18 = sadd.s32 1, %s925_s18  }
 0x1ee   : > { %p12_p4 = scmp.ge.s32.totalorder %s15_s18, 4  }
 0x1f0   :  { %14 = sbr.rel (!%p12_p4) target bundleno = 1 (0x1), region = 72 }

// kernel: _lambda_.22
= control target key start
LH: loop header
LB: loop body
LE: loop exit
PB: predicated region body
PF: predicated region fallthrough
CT: control target
= control target key end

     0   :  { %s1260_s18 = smov 0   ;;  %s1454_s0 = inlined_call_operand.vmem [shape: bf16[2,5,256], index: 0, kind: input, shape index: {}]   ;;  %s1455_s1 = inlined_call_operand.vmem [shape: bf16[256,48], index: 1, kind: input, shape index: {}]   ;;  %s1456_s2 = inlined_call_operand.vmem [shape: f32[1,48], index: 2, kind: input, shape index: {}]   ;;  %s1457_s3 = inlined_call_operand.vmem [shape: bf16[3,48,384], index: 3, kind: input, shape index: {}]   ;;  %s1458_s4 = inlined_call_operand.vmem [shape: f32[1,384], index: 4, kind: input, shape index: {}]   ;;  %s1459_s5 = inlined_call_operand.vmem [shape: bf16[2,5,384], index: 5, kind: output, shape index: {}]  }
   0x1 LB: > { %s994_s19 = sadd.s32 4294967295, %s1225_s18   ;;  %p998_p0 = scmp.ge.s32.totalorder %s1225_s18, 1  ;;  %s1225_s18 = sphi %s1260_s18, %s15_s18  }
   0x2   : > { %p187_p1 = scmp.lt.s32.totalorder %s1225_s18, 3 }
   0x4   : > { %p188_p2 = pnand %p998_p0, %p187_p1 }
   0x5   : > { %p215_p3 = scmp.lt.s32.totalorder (!%p188_p2), %s994_s19, 1 }
   0x6   : > { %191 = sbr.rel (%p188_p2) target bundleno = 511 (0x1ff), region = 40 }
   0xb   : > { %v1164_v0 = vld [vmem:[%s1455_s1 + $0x78] sm:$0xff]   ;;  %v1166_v2 = vld [vmem:[%s1455_s1 + $0x70] sm:$0xff]   ;;  %v1168_v4 = vld [vmem:[%s1455_s1 + $0x68] sm:$0xff]   ;;  %s1463_s19 = smov (!%p215_p3, %s994_s19), 1  ;;  %vm410_vm0 = vcmask 385024   ;;  %v1227_v22 = vmov 0.0  }
   0xc   : > { %v1165_v1 = vld [vmem:[%s1455_s1 + $0x38] sm:$0xff]   ;;  %1088 = vmatprep.subr.bf16.mxu0 %v1164_v0  ;;  %v1167_v3 = vld [vmem:[%s1455_s1 + $0x30] sm:$0xff]   ;;  %v1169_v5 = vld [vmem:[%s1455_s1 + $0x28] sm:$0xff]   ;;  %s1084_s9 = sshll.u32 %s1463_s19, 3  ;;  %vm411_vm1 = vsmask.f32 256 }
   0xd   : > { %1089 = vmatpush3.bf16.msra.mxu0 %v1165_v1  ;;  %v1170_v6 = vld [vmem:[%s1455_s1 + $0x60] sm:$0xff]   ;;  %v1172_v8 = vld [vmem:[%s1455_s1 + $0x58] sm:$0xff]   ;;  %s219_s16 = scalar_lea.vmem %s1454_s0, %s1084_s9  ;;  %v1174_v10 = vld [vmem:[%s1455_s1 + $0x50] sm:$0xff]   ;;  %vm416_vm3 = vcmask 388099   ;;  %vm417_vm4 = vsmask.f32 3328 }
   0xe   : > { %1090 = vmatprep.subr.bf16.mxu0 %v1166_v2  ;;  %v1171_v7 = vld [vmem:[%s1455_s1 + $0x20] sm:$0xff]   ;;  %v1173_v9 = vld [vmem:[%s1455_s1 + $0x18] sm:$0xff]   ;;  %v1175_v12 = vld [vmem:[%s1455_s1 + $0x10] sm:$0xff]   ;;  %vm1228_vm6 = vmmov 0   ;;  %v1229_v33 = vmov 0   ;;  %vm434_vm7 = vcmask 387072  }
   0xf   : > { %v226_v11 = vld [vmem:[%s219_s16] sm:$0x77]  ;;  %v1176_v14 = vld [vmem:[%s1455_s1 + $0x48] sm:$0xff]   ;;  %vm412_vm2 = vmand %vm410_vm0, %vm411_vm1  ;;  %560 = vmatprep.mubr.bf16.mxu1 %v1229_v33  ;;  %vm435_vm8 = vsmask.f32 7938  ;;  %vm524_vm10 = vcmask 392192  }
  0x10   : > { %v1004_v13 = vcombine.high %v226_v11, %v226_v11  ;;  %v1177_v15 = vld [vmem:[%s1455_s1 + $0x8] sm:$0xff]   ;;  %v1178_v16 = vld [vmem:[%s1455_s1 + $0x40] sm:$0xff]   ;;  %v1003_v18 = vcombine.low %v226_v11, %v226_v11  ;;  %vm418_vm5 = vmand %vm416_vm3, %vm417_vm4  ;;  %s1152_s22 = smul.u32 12, %s1463_s19  ;;  %vm926_vm11 = vcmask 1042432   ;;  %vm927_vm12 = vsmask.f32 2304 }
  0x11   : > { %1091 = vmatpush3.bf16.msra.mxu0 %v1167_v3  ;;  %v1179_v17 = vld [vmem:[%s1455_s1] sm:$0xff]   ;;  %v1184_v25 = vld [vmem:[%s1457_s3 + $0x7c] ss:$12 sps:$4 sm:$0xff]   ;;  %v1193_v31 = vld [vmem:[%s1457_s3 + $0x4c] ss:$12 sps:$4 sm:$0xff]   ;;  %vm929_vm14 = vcmask 1046532  }
  0x12   : > { %1092 = vmatprep.subr.bf16.mxu0 %v1168_v4  ;;  %401 = vmatprep.mubr.bf16.mxu0 %v1004_v13  ;;  %v413_v19 = vld [vmem:[#allocation2] sm:$0x1]  ;;  %v1182_v21 = vld [vmem:[%s1457_s3 + $0x38] ss:$12 sps:$4 sm:$0xff]   ;;  %v419_v24 = vld [vmem:[#allocation2] sm:$0x8]  ;;  %s1437_s25 = scalar_lea.vmem %s1459_s5, %s1152_s22 }
  0x13   : > { %v414_v20 = vsel %vm412_vm2, 0, %v413_v19  ;;  %v1183_v23 = vld [vmem:[%s1457_s3 + $0x20] ss:$12 sps:$4 sm:$0xff]   ;;  %v1186_v26 = vld [vmem:[%s1457_s3 + $0x78] ss:$12 sps:$4 sm:$0xff]   ;;  %v420_v29 = vsel %vm418_vm5, 0, %v419_v24  ;;  %538 = vmatprep.subr.bf16.mxu1 %v1184_v25  ;;  %vm436_vm9 = vmand %vm434_vm7, %vm435_vm8 }
  0x14   : > { %415 = vst [vmem:[#allocation2] sm:$0x1] %v414_v20  ;;  %v1187_v27 = vld [vmem:[%s1457_s3 + $0x8] ss:$12 sps:$4 sm:$0xff]   ;;  %v1188_v28 = vld [vmem:[%s1457_s3 + $0x64] ss:$12 sps:$4 sm:$0xff]   ;;  %539 = vmatpush1.bf16.msra.mxu1 %v1186_v26  ;;  %vm1440_vm13 = vmand %vm926_vm11, %vm927_vm12 }
  0x15   : > { %1093 = vmatpush3.bf16.msra.mxu0 %v1169_v5  ;;  %421 = vst [vmem:[#allocation2] sm:$0x8] %v420_v29  ;;  %v1190_v30 = vld [vmem:[%s1457_s3 + $0x60] ss:$12 sps:$4 sm:$0xff]   ;;  %540 = vmatprep.subr.bf16.mxu1 %v1188_v28  ;;  %v1195_v32 = vld [vmem:[%s1457_s3 + $0x48] ss:$12 sps:$4 sm:$0xff]  }
  0x16   : > { %1094 = vmatprep.subr.bf16.mxu0 %v1170_v6  ;;  %v1002_v35 = vld [vmem:[%s1456_s2] ss:$0 sm:$0xff]  ;;  %v1192_v49 = vld [vmem:[%s1457_s3 + $0xc8] ss:$12 sps:$4 sm:$0xff]   ;;  %v1196_v52 = vld [vmem:[%s1457_s3 + $0xb0] ss:$12 sps:$4 sm:$0xff]  }
  0x17   : > { %v1197_v56 = vld [vmem:[%s1457_s3 + $0x80] ss:$12 sps:$4 sm:$0xff]   ;;  %v1198_v57 = vld [vmem:[%s1457_s3 + $0x98] ss:$12 sps:$4 sm:$0xff]   ;;  %v1199_v59 = vld [vmem:[%s1457_s3 + $0x68] ss:$12 sps:$4 sm:$0xff]  }
  0x18   : > { %541 = vmatpush1.bf16.msra.mxu1 %v1190_v30  ;;  %v1200_v61 = vld [vmem:[%s1457_s3 + $0x50] ss:$12 sps:$4 sm:$0xff]   ;;  %v1203_v62 = vld [vmem:[%s1457_s3 + $0x34] ss:$12 sps:$4 sm:$0xff]   ;;  %v1204_v1 = vld [vmem:[%s1457_s3 + $0x18] ss:$12 sps:$4 sm:$0xff]  }
  0x19   : > { %1095 = vmatpush3.bf16.msra.mxu0 %v1171_v7  ;;  %542 = vmatprep.subr.bf16.mxu1 %v1193_v31  ;;  %v1201_v63 = vld [vmem:[%s1457_s3 + $0x30] ss:$12 sps:$4 sm:$0xff]   ;;  %v1207_v3 = vld [vmem:[%s1457_s3] ss:$12 sps:$4 sm:$0xff]   ;;  %v1213_v7 = vld [vmem:[%s1457_s3 + $0xa8] ss:$12 sps:$4 sm:$0xff]  }
  0x1a   : > { %1096 = vmatprep.subr.bf16.mxu0 %v1172_v8  ;;  %v1206_v0 = vld [vmem:[%s1457_s3 + $0x1c] ss:$12 sps:$4 sm:$0xff]   ;;  %v1209_v2 = vld [vmem:[%s1457_s3 + $0x4] ss:$12 sps:$4 sm:$0xff]   ;;  %v1210_v5 = vld [vmem:[%s1457_s3 + $0xc0] ss:$12 sps:$4 sm:$0xff]  }
  0x1b   : > { %v437_v46 = vld [vmem:[#allocation2] sm:$0x7]  ;;  %v1212_v4 = vld [vmem:[%s1457_s3 + $0xc4] ss:$12 sps:$4 sm:$0xff]   ;;  %v1215_v6 = vld [vmem:[%s1457_s3 + $0xac] ss:$12 sps:$4 sm:$0xff]  }
  0x1c   : > { %543 = vmatpush1.bf16.msra.mxu1 %v1195_v32  ;;  %v1218_v8 = vld [vmem:[%s1457_s3 + $0x94] ss:$12 sps:$4 sm:$0xff]   ;;  %vm930_vm15 = vsmask.f32 6400 }
  0x1d   : > { %1097 = vmatpush3.bf16.msra.mxu0 %v1173_v9  ;;  %1122 = vmatprep.subr.bf16.mxu1 %v1227_v22  ;;  %v1216_v9 = vld [vmem:[%s1457_s3 + $0x90] ss:$12 sps:$4 sm:$0xff]   ;;  %v890_v25 = vld [vmem:[%s1458_s4] sm:$0x7]  ;;  %vm931_vm0 = vmand %vm929_vm14, %vm930_vm15 }
  0x1e   : > { %1098 = vmatprep.subr.bf16.mxu0 %v1174_v10  ;;  %vm932_vm1 = vmor %vm931_vm0, %vm1440_vm13 }
  0x21   : > { %1099 = vmatpush3.bf16.msra.mxu0 %v1175_v12 }
  0x22   : > { %1100 = vmatprep.subr.bf16.mxu0 %v1176_v14 }
  0x25   : > { %1101 = vmatpush3.bf16.msra.mxu0 %v1177_v15  ;;  %v892_v15 = vlaneseq }
  0x26   : > { %1102 = vmatprep.subr.bf16.mxu0 %v1178_v16 }
  0x27   : > { %v893_v19 = vshrl.u32 %v892_v15, 7 }
  0x29   : > { %1103 = vmatpush3.bf16.msra.mxu0 %v1179_v17 }
  0x2a   : > { %1132 = vmatprep.subr.bf16.mxu0 %v1227_v22 }
  0x2c   : > { %402 = vmatmul.mubr.bf16.vlgmr.msra.gmra.mxu0 %v1003_v18 }
  0x2d   : > { %1133 = vmatpush3.bf16.msra.mxu0 %v1182_v21  ;;  %1138 = vmatprep.mubr.msk.bf16.mxu0 %vm1228_vm6, %v1227_v22 }
  0x2e   : > { %1134 = vmatprep.subr.bf16.mxu0 %v1227_v22 }
  0x31   : > { %1135 = vmatpush3.bf16.msra.mxu0 %v1183_v23  ;;  %v902_v23 = vsub.s32 2, %v893_v19 }
  0x32   : > { %1136 = vmatprep.subr.bf16.mxu0 %v1227_v22 }
  0x33   : > { %v903_v28 = vrot.slane %v890_v25, %v902_v23 }
  0x35   : > { %1137 = vmatpush3.bf16.msra.mxu0 %v1187_v27 }
  0x36   : > { %1142 = vmatprep.subr.bf16.mxu0 %v1227_v22 }
  0xec   : > { %v1104_v34 = vpop.f32.mrf.mxu0 }
  0xee   : > { %v1105_v36 = vpop.f32.mrf.mxu0 }
  0xef   : > { %v1106_v37 = vadd.f32 %v1105_v36, %v1104_v34 }
  0xf0   : > { %v1107_v38 = vpop.f32.mrf.mxu0 }
  0xf1   : > { %v404_v39 = vadd.f32 %v1106_v37, %v1002_v35  ;;  %v936_v35 = vld [vmem:[%s1437_s25 + $0x8] sm:$0x7] }
  0xf2   : > { %v1108_v40 = vpop.f32.mrf.mxu0 }
  0xf3   : > { %v409_v41 = vmax.f32 %v404_v39, 0.0 }
  0xf5   : > { %v1085_v42 = vpack.c.bf16 %v409_v41, %v409_v41 }
  0xf7   : > { %v427_v43 = vshrl.u32 %v1085_v42, 16  ;;  %v430_v45 = vshll.u32 %v1085_v42, 16 }
  0xf9   : > { %v429_v44 = vrot.slane %v427_v43, 7  ;;  %v894_v43 = vsub.s32 0, %v893_v19 }
  0xfb   : > { %v432_v47 = vor.u32 %v430_v45, %v429_v44  ;;  %v898_v44 = vsub.s32 1, %v893_v19 }
  0xfd   : > { %v438_v48 = vsel %vm436_vm9, %v432_v47, %v437_v46  ;;  %v895_v46 = vrot.slane %v890_v25, %v894_v43 }
  0xfe   : > { %439 = vst [vmem:[#allocation2] sm:$0x7] %v438_v48 }
 0x105   : > { %v440_v50 = vld [vmem:[#allocation2] sm:$0xf] }
 0x106   : > { %v1034_v51 = vcombine.low %v440_v50, %v440_v50  ;;  %1139 = vmatmul.mubr.msk.bf16.vlgmr.msra.gmra.mxu0 %vm524_vm10, %v440_v50 }
 0x107   : > { %1143 = vmatpush3.bf16.msra.mxu0 %v1192_v49  ;;  %1148 = vmatprep.mubr.msk.bf16.mxu0 %vm1228_vm6, %v1227_v22 }
 0x108   : > { %1144 = vmatprep.subr.bf16.mxu0 %v1227_v22  ;;  %v472_v53 = vshll.u32 %v1034_v51, 16  ;;  %v470_v54 = vshrl.u32 %v1034_v51, 16  ;;  %v754_v60 = vrot.slane %v1034_v51, 1 }
 0x10a   : > { %v474_v55 = vrot.slane %v472_v53, 1 }
 0x10b   : > { %1145 = vmatpush3.bf16.msra.mxu0 %v1196_v52 }
 0x10c   : > { %1146 = vmatprep.subr.bf16.mxu0 %v1227_v22  ;;  %v475_v58 = vor.u32 %v474_v55, %v470_v54 }
 0x10e   : > { %1044 = vmatmul.mubr.msk.bf16.vlgmr.msra.gmra.mxu1 %vm524_vm10, %v475_v58 }
 0x10f   : > { %1123 = vmatpush3.bf16.msra.mxu1 %v1197_v56  ;;  %1147 = vmatpush3.bf16.msra.mxu0 %v1198_v57 }
 0x110   : > { %1124 = vmatprep.subr.bf16.mxu1 %v1227_v22  ;;  %1128 = vmatprep.mubr.msk.bf16.mxu1 %vm1228_vm6, %v1227_v22 }
 0x112   : > { %1149 = vmatmul.mubr.msk.bf16.vlgmr.msra.gmra.mxu0 %vm524_vm10, %v754_v60 }
 0x113   : > { %1125 = vmatpush3.bf16.msra.mxu1 %v1199_v59  ;;  %v933_v59 = vld [vmem:[%s1437_s25] sm:$0x77] }
 0x114   : > { %1126 = vmatprep.subr.bf16.mxu1 %v1227_v22 }
 0x117   : > { %1127 = vmatpush3.bf16.msra.mxu1 %v1200_v61 }
 0x118   : > { %670 = vmatprep.subr.bf16.mxu1 %v1203_v62 }
 0x11a   : > { %1129 = vmatmul.mubr.msk.bf16.vlgmr.msra.gmra.mxu1 %vm524_vm10, %v475_v58 }
 0x11b   : > { %671 = vmatpush1.bf16.msra.mxu1 %v1201_v63  ;;  %692 = vmatprep.mubr.bf16.mxu1 %v1229_v33 }
 0x11c   : > { %672 = vmatprep.subr.bf16.mxu1 %v1206_v0 }
 0x11f   : > { %673 = vmatpush1.bf16.msra.mxu1 %v1204_v1 }
 0x120   : > { %674 = vmatprep.subr.bf16.mxu1 %v1209_v2 }
 0x123   : > { %675 = vmatpush1.bf16.msra.mxu1 %v1207_v3 }
 0x124   : > { %816 = vmatprep.subr.bf16.mxu1 %v1212_v4 }
 0x126   : > { %1055 = vmatmul.mubr.msk.bf16.vlgmr.msra.gmra.mxu1 %vm524_vm10, %v440_v50  ;;  %v899_v50 = vrot.slane %v890_v25, %v898_v44 }
 0x127   : > { %817 = vmatpush1.bf16.msra.mxu1 %v1210_v5  ;;  %838 = vmatprep.mubr.bf16.mxu1 %v1229_v33 }
 0x128   : > { %818 = vmatprep.subr.bf16.mxu1 %v1215_v6 }
 0x12b   : > { %819 = vmatpush1.bf16.msra.mxu1 %v1213_v7 }
 0x12c   : > { %820 = vmatprep.subr.bf16.mxu1 %v1218_v8 }
 0x12f   : > { %821 = vmatpush1.bf16.msra.mxu1 %v1216_v9 }
 0x132   : > { %1078 = vmatmul.mubr.msk.bf16.vlgmr.msra.gmra.mxu1 %vm524_vm10, %v754_v60 }
 0x1c6   : > { %v735_v10 = vpop.f32.mrf.mxu0 }
 0x1c8   : > { %v1140_v11 = vpop.f32.mrf.mxu0 }
 0x1ca   : > { %v738_v12 = vpop.f32.mrf.mxu0 }
 0x1cc   : > { %v1141_v13 = vpop.f32.mrf.mxu0 }
 0x1ce   : > { %v562_v14 = vpop.f32.mrf.mxu1 }
 0x1d0   : > { %v564_v16 = vpop.f32.mrf.mxu1 }
 0x1d2   : > { %v881_v17 = vpop.f32.mrf.mxu0  ;;  %v566_v18 = vpop.f32.mrf.mxu1 }
 0x1d4   : > { %v1150_v20 = vpop.f32.mrf.mxu0  ;;  %v567_v21 = vpop.f32.mrf.mxu1 }
 0x1d6   : > { %v884_v22 = vpop.f32.mrf.mxu0 }
 0x1d8   : > { %v1151_v24 = vpop.f32.mrf.mxu0 }
 0x1da   : > { %v603_v26 = vpop.f32.mrf.mxu1 }
 0x1db   : > { %v736_v27 = vadd.f32 %v735_v10, %v603_v26 }
 0x1dc   : > { %v1130_v29 = vpop.f32.mrf.mxu1 }
 0x1dd   : > { %v889_v30 = vadd.f32 %v881_v17, %v736_v27 }
 0x1de   : > { %v606_v31 = vpop.f32.mrf.mxu1 }
 0x1df   : > { %v909_v32 = vadd.f32 %v903_v28, %v889_v30 }
 0x1e0   : > { %v1131_v33 = vpop.f32.mrf.mxu1 }
 0x1e1   : > { %v912_v34 = vmax.f32 %v909_v32, 0.0 }
 0x1e3   : > { %v1087_v37 = vpack.c.bf16 %v912_v34, %v912_v34 }
 0x1e5   : > { %v937_v38 = vsel %vm1440_vm13, %v1087_v37, %v936_v35 }
 0x1e6   : > { %938 = vst [vmem:[%s1437_s25 + $0x8] sm:$0x7] %v937_v38  ;;  %v694_v39 = vpop.f32.mrf.mxu1 }
 0x1e7   : > { %v695_v45 = vadd.f32 %v694_v39, %v562_v14 }
 0x1e8   : > { %v696_v40 = vpop.f32.mrf.mxu1 }
 0x1e9   : > { %v697_v48 = vadd.f32 %v696_v40, %v564_v16 }
 0x1ea   : > { %v698_v41 = vpop.f32.mrf.mxu1 }
 0x1ec   : > { %v699_v42 = vpop.f32.mrf.mxu1 }
 0x1f2   : > { %v840_v47 = vpop.f32.mrf.mxu1 }
 0x1f3   : > { %v887_v49 = vadd.f32 %v840_v47, %v695_v45 }
 0x1f4   : > { %v842_v51 = vpop.f32.mrf.mxu1 }
 0x1f5   : > { %v907_v52 = vadd.f32 %v895_v46, %v887_v49  ;;  %v888_v53 = vadd.f32 %v842_v51, %v697_v48 }
 0x1f6   : > { %v844_v54 = vpop.f32.mrf.mxu1 }
 0x1f7   : > { %v908_v55 = vadd.f32 %v899_v50, %v888_v53  ;;  %v910_v57 = vmax.f32 %v907_v52, 0.0 }
 0x1f8   : > { %v845_v56 = vpop.f32.mrf.mxu1 }
 0x1f9   : > { %v911_v58 = vmax.f32 %v908_v55, 0.0 }
 0x1fb   : > { %v1086_v60 = vpack.c.bf16 %v911_v58, %v910_v57 }
 0x1fd   : > { %v934_v61 = vsel %vm932_vm1, %v1086_v60, %v933_v59 }
 0x1fe   : > { %935 = vst [vmem:[%s1437_s25] sm:$0x77] %v934_v61 }
 0x1ff PF: > { %s15_s18 = sadd.s32 1, %s1225_s18  }
 0x200   : > { %p12_p4 = scmp.ge.s32.totalorder %s15_s18, 4  }
 0x202   :  { %14 = sbr.rel (!%p12_p4) target bundleno = 1 (0x1), region = 72 }

// kernel: _lambda_.24
= control target key start
LH: loop header
LB: loop body
LE: loop exit
PB: predicated region body
PF: predicated region fallthrough
CT: control target
= control target key end

     0   :  { %s1561_s18 = smov 0   ;;  %s1833_s0 = inlined_call_operand.vmem [shape: bf16[2,5,384], index: 0, kind: input, shape index: {}]   ;;  %s1834_s1 = inlined_call_operand.vmem [shape: bf16[384,64], index: 1, kind: input, shape index: {}]   ;;  %s1835_s2 = inlined_call_operand.vmem [shape: f32[1,64], index: 2, kind: input, shape index: {}]   ;;  %s1836_s3 = inlined_call_operand.vmem [shape: bf16[3,64,512], index: 3, kind: input, shape index: {}]   ;;  %s1837_s4 = inlined_call_operand.vmem [shape: f32[1,512], index: 4, kind: input, shape index: {}]   ;;  %s1838_s5 = inlined_call_operand.vmem [shape: bf16[2,5,512], index: 5, kind: output, shape index: {}]  }
   0x1 LB: > { %s1225_s19 = sadd.s32 4294967295, %s1526_s18   ;;  %p1229_p0 = scmp.ge.s32.totalorder %s1526_s18, 1  ;;  %s1526_s18 = sphi %s1561_s18, %s15_s18  }
   0x2   : > { %p187_p1 = scmp.lt.s32.totalorder %s1526_s18, 3 }
   0x4   : > { %p188_p2 = pnand %p1229_p0, %p187_p1 }
   0x5   : > { %p215_p3 = scmp.lt.s32.totalorder (!%p188_p2), %s1225_s19, 1 }
   0x6   : > { %191 = sbr.rel (%p188_p2) target bundleno = 509 (0x1fd), region = 40 }
   0xb   : > { %v1420_v0 = vld [vmem:[%s1834_s1 + $0x78] sm:$0xff]   ;;  %v1528_v1 = vmov 0.0   ;;  %v1423_v4 = vld [vmem:[%s1834_s1 + $0x70] sm:$0xff]   ;;  %vm1529_vm0 = vmmov 0   ;;  %v1426_v7 = vld [vmem:[%s1834_s1 + $0x68] sm:$0xff]   ;;  %s1842_s19 = smov (!%p215_p3, %s1225_s19), 1 }
   0xc   : > { %1388 = vmatprep.subr.bf16.mxu1 %v1528_v1  ;;  %v1421_v2 = vld [vmem:[%s1834_s1 + $0x38] sm:$0xff]   ;;  %1357 = vmatprep.subr.bf16.mxu0 %v1420_v0  ;;  %v1424_v5 = vld [vmem:[%s1834_s1 + $0x30] sm:$0xff]   ;;  %v1427_v8 = vld [vmem:[%s1834_s1 + $0x28] sm:$0xff]   ;;  %s1408_s29 = smul.u32 12, %s1842_s19  ;;  %vm519_vm1 = vcmask 516096   ;;  %vm525_vm4 = vcmask 519171  }
   0xd   : > { %v1422_v3 = vld [vmem:[%s1834_s1 + $0xb8] sm:$0xff]   ;;  %1358 = vmatpush3.bf16.msra.mxu0 %v1421_v2  ;;  %1404 = vmatprep.mubr.msk.bf16.mxu1 %vm1529_vm0, %v1528_v1  ;;  %v1425_v6 = vld [vmem:[%s1834_s1 + $0xb0] sm:$0xff]   ;;  %v1428_v9 = vld [vmem:[%s1834_s1 + $0xa8] sm:$0xff]   ;;  %vm520_vm2 = vsmask.f32 256  ;;  %v1530_v46 = vmov 0  }
   0xe   : > { %1389 = vmatpush3.bf16.msra.mxu1 %v1422_v3  ;;  %1359 = vmatprep.subr.bf16.mxu0 %v1423_v4  ;;  %v1429_v10 = vld [vmem:[%s1834_s1 + $0x60] sm:$0xff]   ;;  %v1432_v13 = vld [vmem:[%s1834_s1 + $0x58] sm:$0xff]   ;;  %v1435_v16 = vld [vmem:[%s1834_s1 + $0x50] sm:$0xff]   ;;  %s219_s13 = scalar_lea.vmem %s1833_s0, %s1408_s29  ;;  %vm526_vm5 = vsmask.f32 3328  ;;  %vm543_vm7 = vcmask 518144  }
   0xf   : > { %1390 = vmatprep.subr.bf16.mxu1 %v1528_v1  ;;  %v1430_v11 = vld [vmem:[%s1834_s1 + $0x20] sm:$0xff]   ;;  %v1433_v14 = vld [vmem:[%s1834_s1 + $0x18] sm:$0xff]   ;;  %v1436_v17 = vld [vmem:[%s1834_s1 + $0x10] sm:$0xff]   ;;  %vm544_vm8 = vsmask.f32 7938  ;;  %vm673_vm10 = vcmask 523264  }
  0x10   : > { %v1431_v12 = vld [vmem:[%s1834_s1 + $0xa0] sm:$0xff]   ;;  %v1434_v15 = vld [vmem:[%s1834_s1 + $0x98] sm:$0xff]   ;;  %v1437_v18 = vld [vmem:[%s1834_s1 + $0x90] sm:$0xff]   ;;  %vm1157_vm11 = vcmask 1042432   ;;  %vm1158_vm12 = vsmask.f32 2304 }
  0x11   : > { %1360 = vmatpush3.bf16.msra.mxu0 %v1424_v5  ;;  %v1438_v19 = vld [vmem:[%s1834_s1 + $0x48] sm:$0xff]   ;;  %v1441_v22 = vld [vmem:[%s1834_s1 + $0x40] sm:$0xff]   ;;  %vm521_vm3 = vmand %vm519_vm1, %vm520_vm2  ;;  %s1353_s9 = sshll.u32 %s1842_s19, 4  ;;  %vm1160_vm13 = vcmask 1046532   ;;  %vm1161_vm14 = vsmask.f32 6400 }
  0x12   : > { %1391 = vmatpush3.bf16.msra.mxu1 %v1425_v6  ;;  %1361 = vmatprep.subr.bf16.mxu0 %v1426_v7  ;;  %v1439_v20 = vld [vmem:[%s1834_s1 + $0x8] sm:$0xff]   ;;  %v226_v23 = vld [vmem:[%s219_s13] sm:$0x77]  ;;  %vm527_vm6 = vmand %vm525_vm4, %vm526_vm5  ;;  %s224_s19 = scalar_lea.vmem %s1838_s5, %s1353_s9 }
  0x13   : > { %1392 = vmatprep.subr.bf16.mxu1 %v1528_v1  ;;  %v1440_v21 = vld [vmem:[%s1834_s1 + $0x88] sm:$0xff]   ;;  %v1442_v24 = vld [vmem:[%s1834_s1] sm:$0xff]   ;;  %v1235_v25 = vcombine.high %v226_v23, %v226_v23  ;;  %v1234_v28 = vcombine.low %v226_v23, %v226_v23  ;;  %vm545_vm9 = vmand %vm543_vm7, %vm544_vm8 }
  0x14   : > { %v1443_v26 = vld [vmem:[%s1834_s1 + $0x80] sm:$0xff]   ;;  %v1446_v27 = vld [vmem:[%s219_s13 + $0x8] ss:$0 sps:$4 sm:$0x77]   ;;  %v1452_v32 = vld [vmem:[%s1836_s3 + $0xec] ss:$16 sps:$4 sm:$0xff]  }
  0x15   : > { %1362 = vmatpush3.bf16.msra.mxu0 %v1427_v8  ;;  %470 = vmatprep.mubr.bf16.mxu0 %v1235_v25  ;;  %v522_v29 = vld [vmem:[#allocation2] sm:$0x1]  ;;  %v1449_v31 = vld [vmem:[%s1836_s3 + $0xe4] ss:$16 sps:$4 sm:$0xff]   ;;  %v1450_v34 = vld [vmem:[%s1836_s3 + $0xe8] ss:$16 sps:$4 sm:$0xff]  }
  0x16   : > { %1393 = vmatpush3.bf16.msra.mxu1 %v1428_v9  ;;  %1363 = vmatprep.subr.bf16.mxu0 %v1429_v10  ;;  %v523_v30 = vsel %vm521_vm3, 0, %v522_v29  ;;  %v1447_v33 = vld [vmem:[%s1836_s3 + $0xe0] ss:$16 sps:$4 sm:$0xff]   ;;  %v1455_v35 = vld [vmem:[%s1836_s3 + $0xc4] ss:$16 sps:$4 sm:$0xff]   ;;  %vm1821_vm15 = vmand %vm1157_vm11, %vm1158_vm12 }
  0x17   : > { %1394 = vmatprep.subr.bf16.mxu1 %v1528_v1  ;;  %524 = vst [vmem:[#allocation2] sm:$0x1] %v523_v30  ;;  %v1453_v36 = vld [vmem:[%s1836_s3 + $0xc0] ss:$16 sps:$4 sm:$0xff]   ;;  %v1456_v37 = vld [vmem:[%s1836_s3 + $0xc8] ss:$16 sps:$4 sm:$0xff]   ;;  %vm1162_vm0 = vmand %vm1160_vm13, %vm1161_vm14 }
  0x18   : > { %v1458_v38 = vld [vmem:[%s1836_s3 + $0xcc] ss:$16 sps:$4 sm:$0xff]   ;;  %v1461_v39 = vld [vmem:[%s1836_s3 + $0xa4] ss:$16 sps:$4 sm:$0xff]   ;;  %v1459_v41 = vld [vmem:[%s1836_s3 + $0xa0] ss:$16 sps:$4 sm:$0xff]  }
  0x19   : > { %1364 = vmatpush3.bf16.msra.mxu0 %v1430_v11  ;;  %v1464_v40 = vld [vmem:[%s1836_s3 + $0xac] ss:$16 sps:$4 sm:$0xff]   ;;  %v1462_v42 = vld [vmem:[%s1836_s3 + $0xa8] ss:$16 sps:$4 sm:$0xff]   ;;  %v1467_v43 = vld [vmem:[%s1836_s3 + $0x84] ss:$16 sps:$4 sm:$0xff]  }
  0x1a   : > { %1395 = vmatpush3.bf16.msra.mxu1 %v1431_v12  ;;  %1365 = vmatprep.subr.bf16.mxu0 %v1432_v13  ;;  %v1470_v44 = vld [vmem:[%s1836_s3 + $0x8c] ss:$16 sps:$4 sm:$0xff]   ;;  %v528_v45 = vld [vmem:[#allocation2] sm:$0x8]  ;;  %v1468_v49 = vld [vmem:[%s1836_s3 + $0x88] ss:$16 sps:$4 sm:$0xff]  }
  0x1b   : > { %1396 = vmatprep.subr.bf16.mxu1 %v1528_v1  ;;  %v529_v47 = vsel %vm527_vm6, 0, %v528_v45  ;;  %v1465_v48 = vld [vmem:[%s1836_s3 + $0x80] ss:$16 sps:$4 sm:$0xff]   ;;  %v1473_v50 = vld [vmem:[%s1836_s3 + $0x64] ss:$16 sps:$4 sm:$0xff]   ;;  %vm1163_vm1 = vmor %vm1162_vm0, %vm1821_vm15 }
  0x1c   : > { %530 = vst [vmem:[#allocation2] sm:$0x8] %v529_v47  ;;  %v1476_v51 = vld [vmem:[%s1836_s3 + $0x6c] ss:$16 sps:$4 sm:$0xff]   ;;  %v1233_v54 = vld [vmem:[%s1835_s2] ss:$0 sm:$0xff] }
  0x1d   : > { %1366 = vmatpush3.bf16.msra.mxu0 %v1433_v14  ;;  %v1471_v13 = vld [vmem:[%s1836_s3 + $0x60] ss:$16 sps:$4 sm:$0xff]   ;;  %v1474_v14 = vld [vmem:[%s1836_s3 + $0x68] ss:$16 sps:$4 sm:$0xff]   ;;  %v1495_v25 = vld [vmem:[%s1836_s3 + $0xc] ss:$16 sps:$4 sm:$0xff]  }
  0x1e   : > { %1397 = vmatpush3.bf16.msra.mxu1 %v1434_v15  ;;  %1367 = vmatprep.subr.bf16.mxu0 %v1435_v16  ;;  %v546_v5 = vld [vmem:[#allocation2] sm:$0x7]  ;;  %v1480_v16 = vld [vmem:[%s1836_s3 + $0x44] ss:$16 sps:$4 sm:$0xff]   ;;  %v1487_v23 = vld [vmem:[%s1836_s3 + $0x28] ss:$16 sps:$4 sm:$0xff]  }
  0x1f   : > { %1398 = vmatprep.subr.bf16.mxu1 %v1528_v1  ;;  %v1501_v29 = vld [vmem:[%s1836_s3 + $0x16c] ss:$16 sps:$4 sm:$0xff]   ;;  %v1496_v30 = vld [vmem:[%s1836_s3 + $0x160] ss:$16 sps:$4 sm:$0xff]  }
  0x21   : > { %1368 = vmatpush3.bf16.msra.mxu0 %v1436_v17  ;;  %v1483_v17 = vld [vmem:[%s1836_s3 + $0x4c] ss:$16 sps:$4 sm:$0xff]  }
  0x22   : > { %1399 = vmatpush3.bf16.msra.mxu1 %v1437_v18  ;;  %1369 = vmatprep.subr.bf16.mxu0 %v1438_v19  ;;  %v1478_v18 = vld [vmem:[%s1836_s3 + $0x40] ss:$16 sps:$4 sm:$0xff]   ;;  %v1481_v19 = vld [vmem:[%s1836_s3 + $0x48] ss:$16 sps:$4 sm:$0xff]  }
  0x23   : > { %1400 = vmatprep.subr.bf16.mxu1 %v1528_v1 }
  0x25   : > { %1370 = vmatpush3.bf16.msra.mxu0 %v1439_v20  ;;  %v1486_v20 = vld [vmem:[%s1836_s3 + $0x24] ss:$16 sps:$4 sm:$0xff]  }
  0x26   : > { %1401 = vmatpush3.bf16.msra.mxu1 %v1440_v21  ;;  %1371 = vmatprep.subr.bf16.mxu0 %v1441_v22  ;;  %v1489_v21 = vld [vmem:[%s1836_s3 + $0x2c] ss:$16 sps:$4 sm:$0xff]   ;;  %v1484_v22 = vld [vmem:[%s1836_s3 + $0x20] ss:$16 sps:$4 sm:$0xff]  }
  0x27   : > { %1402 = vmatprep.subr.bf16.mxu1 %v1528_v1 }
  0x29   : > { %1372 = vmatpush3.bf16.msra.mxu0 %v1442_v24  ;;  %v1492_v24 = vld [vmem:[%s1836_s3 + $0x4] ss:$16 sps:$4 sm:$0xff]  }
  0x2a   : > { %1403 = vmatpush3.bf16.msra.mxu1 %v1443_v26  ;;  %685 = vmatprep.subr.bf16.mxu0 %v1449_v31  ;;  %v1490_v26 = vld [vmem:[%s1836_s3] ss:$16 sps:$4 sm:$0xff]   ;;  %v1499_v31 = vld [vmem:[%s1836_s3 + $0x168] ss:$16 sps:$4 sm:$0xff]  }
  0x2b   : > { %726 = vmatprep.subr.bf16.mxu1 %v1452_v32  ;;  %v1504_v32 = vld [vmem:[%s1836_s3 + $0x144] ss:$16 sps:$4 sm:$0xff]  }
  0x2c   : > { %471 = vmatmul.mubr.bf16.vlgmr.msra.gmra.mxu0 %v1234_v28  ;;  %v1498_v28 = vld [vmem:[%s1836_s3 + $0x164] ss:$16 sps:$4 sm:$0xff]  }
  0x2d   : > { %1405 = vmatmul.mubr.bf16.vlgmr.msra.gmra.mxu1 %v1446_v27  ;;  %686 = vmatpush1.bf16.msra.mxu0 %v1447_v33  ;;  %v1493_v27 = vld [vmem:[%s1836_s3 + $0x8] ss:$16 sps:$4 sm:$0xff]   ;;  %v1507_v33 = vld [vmem:[%s1836_s3 + $0x14c] ss:$16 sps:$4 sm:$0xff]  }
  0x2e   : > { %727 = vmatpush1.bf16.msra.mxu1 %v1450_v34  ;;  %687 = vmatprep.subr.bf16.mxu0 %v1455_v35  ;;  %v1502_v34 = vld [vmem:[%s1836_s3 + $0x140] ss:$16 sps:$4 sm:$0xff]   ;;  %v1505_v35 = vld [vmem:[%s1836_s3 + $0x148] ss:$16 sps:$4 sm:$0xff]  }
  0x2f   : > { %728 = vmatprep.subr.bf16.mxu1 %v1458_v38  ;;  %709 = vmatprep.mubr.bf16.mxu0 %v1530_v46  ;;  %v1508_v38 = vld [vmem:[%s1836_s3 + $0x120] ss:$16 sps:$4 sm:$0xff]  }
  0x30   : > { %750 = vmatprep.mubr.bf16.mxu1 %v1530_v46 }
  0x31   : > { %688 = vmatpush1.bf16.msra.mxu0 %v1453_v36  ;;  %v1510_v36 = vld [vmem:[%s1836_s3 + $0x124] ss:$16 sps:$4 sm:$0xff]  }
  0x32   : > { %729 = vmatpush1.bf16.msra.mxu1 %v1456_v37  ;;  %689 = vmatprep.subr.bf16.mxu0 %v1461_v39  ;;  %v1513_v37 = vld [vmem:[%s1836_s3 + $0x12c] ss:$16 sps:$4 sm:$0xff]   ;;  %v1511_v39 = vld [vmem:[%s1836_s3 + $0x128] ss:$16 sps:$4 sm:$0xff]  }
  0x33   : > { %730 = vmatprep.subr.bf16.mxu1 %v1464_v40  ;;  %v1516_v40 = vld [vmem:[%s1836_s3 + $0x104] ss:$16 sps:$4 sm:$0xff]  }
  0x35   : > { %690 = vmatpush1.bf16.msra.mxu0 %v1459_v41  ;;  %v1519_v41 = vld [vmem:[%s1836_s3 + $0x10c] ss:$16 sps:$4 sm:$0xff]  }
  0x36   : > { %731 = vmatpush1.bf16.msra.mxu1 %v1462_v42  ;;  %691 = vmatprep.subr.bf16.mxu0 %v1467_v43  ;;  %v1514_v42 = vld [vmem:[%s1836_s3 + $0x100] ss:$16 sps:$4 sm:$0xff]   ;;  %v1517_v43 = vld [vmem:[%s1836_s3 + $0x108] ss:$16 sps:$4 sm:$0xff]  }
  0x37   : > { %732 = vmatprep.subr.bf16.mxu1 %v1470_v44 }
  0x39   : > { %692 = vmatpush1.bf16.msra.mxu0 %v1465_v48 }
  0x3a   : > { %733 = vmatpush1.bf16.msra.mxu1 %v1468_v49  ;;  %850 = vmatprep.subr.bf16.mxu0 %v1473_v50 }
  0x3b   : > { %891 = vmatprep.subr.bf16.mxu1 %v1476_v51 }
  0xec   : > { %v1373_v52 = vpop.f32.mrf.mxu0 }
  0xed   : > { %v512_v53 = vpop.f32.mrf.mxu1 }
  0xee   : > { %v1374_v55 = vpop.f32.mrf.mxu0 }
  0xef   : > { %v1375_v56 = vadd.f32 %v1374_v55, %v1373_v52  ;;  %v1406_v57 = vpop.f32.mrf.mxu1 }
  0xf0   : > { %v1376_v58 = vpop.f32.mrf.mxu0  ;;  %v1113_v57 = vlaneseq }
  0xf1   : > { %v473_v59 = vadd.f32 %v1375_v56, %v1233_v54  ;;  %v515_v60 = vpop.f32.mrf.mxu1 }
  0xf2   : > { %v1377_v61 = vpop.f32.mrf.mxu0 }
  0xf3   : > { %v513_v62 = vadd.f32 %v512_v53, %v473_v59  ;;  %v1407_v63 = vpop.f32.mrf.mxu1 }
  0xf5   : > { %v518_v0 = vmax.f32 %v513_v62, 0.0  ;;  %v1114_v62 = vshrl.u32 %v1113_v57, 7 }
  0xf7   : > { %v1354_v1 = vpack.c.bf16 %v518_v0, %v518_v0  ;;  %v1115_v63 = vsub.s32 0, %v1114_v62  ;;  %v1123_v0 = vsub.s32 2, %v1114_v62 }
  0xf9   : > { %v536_v2 = vshrl.u32 %v1354_v1, 16  ;;  %v539_v4 = vshll.u32 %v1354_v1, 16  ;;  %v1111_v1 = vld [vmem:[%s1837_s4] sm:$0xf] }
  0xfb   : > { %v538_v3 = vrot.slane %v536_v2, 7  ;;  %v1119_v2 = vsub.s32 1, %v1114_v62 }
  0xfd   : > { %v541_v6 = vor.u32 %v539_v4, %v538_v3  ;;  %v1127_v3 = vsub.s32 3, %v1114_v62 }
  0xff   : > { %v547_v7 = vsel %vm545_vm9, %v541_v6, %v546_v5  ;;  %v1116_v6 = vrot.slane %v1111_v1, %v1115_v63 }
 0x100   : > { %548 = vst [vmem:[#allocation2] sm:$0x7] %v547_v7  ;;  %v1124_v7 = vrot.slane %v1111_v1, %v1123_v0 }
 0x107   : > { %v549_v8 = vld [vmem:[#allocation2] sm:$0xf] }
 0x108   : > { %v1710_v9 = vcombine.low %v549_v8, %v549_v8 }
 0x10a   : > { %v589_v10 = vshll.u32 %v1710_v9, 16  ;;  %v587_v11 = vshrl.u32 %v1710_v9, 16  ;;  %v941_v44 = vrot.slane %v1710_v9, 1 }
 0x10c   : > { %v591_v12 = vrot.slane %v589_v10, 1  ;;  %v1120_v10 = vrot.slane %v1111_v1, %v1119_v2 }
 0x10e   : > { %v592_v15 = vor.u32 %v591_v12, %v587_v11  ;;  %v1128_v11 = vrot.slane %v1111_v1, %v1127_v3 }
 0x110   : > { %1295 = vmatmul.mubr.msk.bf16.vlgmr.msra.gmra.mxu0 %vm673_vm10, %v592_v15  ;;  %1296 = vmatmul.mubr.msk.bf16.vlgmr.msra.gmra.mxu1 %vm673_vm10, %v592_v15 }
 0x111   : > { %851 = vmatpush1.bf16.msra.mxu0 %v1471_v13  ;;  %892 = vmatpush1.bf16.msra.mxu1 %v1474_v14 }
 0x112   : > { %852 = vmatprep.subr.bf16.mxu0 %v1480_v16  ;;  %893 = vmatprep.subr.bf16.mxu1 %v1483_v17 }
 0x113   : > { %874 = vmatprep.mubr.bf16.mxu0 %v1530_v46  ;;  %915 = vmatprep.mubr.bf16.mxu1 %v1530_v46 }
 0x115   : > { %853 = vmatpush1.bf16.msra.mxu0 %v1478_v18  ;;  %894 = vmatpush1.bf16.msra.mxu1 %v1481_v19 }
 0x116   : > { %854 = vmatprep.subr.bf16.mxu0 %v1486_v20  ;;  %895 = vmatprep.subr.bf16.mxu1 %v1489_v21 }
 0x119   : > { %855 = vmatpush1.bf16.msra.mxu0 %v1484_v22  ;;  %896 = vmatpush1.bf16.msra.mxu1 %v1487_v23 }
 0x11a   : > { %856 = vmatprep.subr.bf16.mxu0 %v1492_v24  ;;  %897 = vmatprep.subr.bf16.mxu1 %v1495_v25 }
 0x11d   : > { %857 = vmatpush1.bf16.msra.mxu0 %v1490_v26  ;;  %898 = vmatpush1.bf16.msra.mxu1 %v1493_v27 }
 0x11e   : > { %1033 = vmatprep.subr.bf16.mxu0 %v1498_v28  ;;  %1074 = vmatprep.subr.bf16.mxu1 %v1501_v29 }
 0x120   : > { %1313 = vmatmul.mubr.msk.bf16.vlgmr.msra.gmra.mxu0 %vm673_vm10, %v549_v8  ;;  %1314 = vmatmul.mubr.msk.bf16.vlgmr.msra.gmra.mxu1 %vm673_vm10, %v549_v8 }
 0x121   : > { %1034 = vmatpush1.bf16.msra.mxu0 %v1496_v30  ;;  %1075 = vmatpush1.bf16.msra.mxu1 %v1499_v31 }
 0x122   : > { %1035 = vmatprep.subr.bf16.mxu0 %v1504_v32  ;;  %1076 = vmatprep.subr.bf16.mxu1 %v1507_v33  ;;  %v1164_v33 = vld [vmem:[%s224_s19] sm:$0x77] }
 0x123   : > { %1057 = vmatprep.mubr.bf16.mxu0 %v1530_v46  ;;  %1098 = vmatprep.mubr.bf16.mxu1 %v1530_v46 }
 0x125   : > { %1036 = vmatpush1.bf16.msra.mxu0 %v1502_v34  ;;  %1077 = vmatpush1.bf16.msra.mxu1 %v1505_v35  ;;  %v1167_v34 = vld [vmem:[%s224_s19 + $0x8] sm:$0x77] }
 0x126   : > { %1037 = vmatprep.subr.bf16.mxu0 %v1510_v36  ;;  %1078 = vmatprep.subr.bf16.mxu1 %v1513_v37 }
 0x129   : > { %1038 = vmatpush1.bf16.msra.mxu0 %v1508_v38  ;;  %1079 = vmatpush1.bf16.msra.mxu1 %v1511_v39 }
 0x12a   : > { %1039 = vmatprep.subr.bf16.mxu0 %v1516_v40  ;;  %1080 = vmatprep.subr.bf16.mxu1 %v1519_v41 }
 0x12d   : > { %1040 = vmatpush1.bf16.msra.mxu0 %v1514_v42  ;;  %1081 = vmatpush1.bf16.msra.mxu1 %v1517_v43 }
 0x130   : > { %1347 = vmatmul.mubr.msk.bf16.vlgmr.msra.gmra.mxu0 %vm673_vm10, %v941_v44  ;;  %1348 = vmatmul.mubr.msk.bf16.vlgmr.msra.gmra.mxu1 %vm673_vm10, %v941_v44 }
 0x1d0   : > { %v711_v45 = vpop.f32.mrf.mxu0  ;;  %v752_v46 = vpop.f32.mrf.mxu1 }
 0x1d2   : > { %v713_v47 = vpop.f32.mrf.mxu0  ;;  %v754_v48 = vpop.f32.mrf.mxu1 }
 0x1d4   : > { %v715_v49 = vpop.f32.mrf.mxu0  ;;  %v756_v50 = vpop.f32.mrf.mxu1 }
 0x1d6   : > { %v716_v51 = vpop.f32.mrf.mxu0  ;;  %v757_v52 = vpop.f32.mrf.mxu1 }
 0x1e0   : > { %v876_v53 = vpop.f32.mrf.mxu0  ;;  %v917_v54 = vpop.f32.mrf.mxu1 }
 0x1e1   : > { %v877_v4 = vadd.f32 %v876_v53, %v711_v45  ;;  %v918_v5 = vadd.f32 %v917_v54, %v752_v46 }
 0x1e2   : > { %v878_v55 = vpop.f32.mrf.mxu0  ;;  %v919_v56 = vpop.f32.mrf.mxu1 }
 0x1e3   : > { %v879_v12 = vadd.f32 %v878_v55, %v713_v47  ;;  %v920_v13 = vadd.f32 %v919_v56, %v754_v48 }
 0x1e4   : > { %v880_v58 = vpop.f32.mrf.mxu0  ;;  %v921_v59 = vpop.f32.mrf.mxu1 }
 0x1e6   : > { %v881_v60 = vpop.f32.mrf.mxu0  ;;  %v922_v61 = vpop.f32.mrf.mxu1 }
 0x1f0   : > { %v1059_v8 = vpop.f32.mrf.mxu0  ;;  %v1100_v9 = vpop.f32.mrf.mxu1 }
 0x1f1   : > { %v1107_v14 = vadd.f32 %v1059_v8, %v877_v4  ;;  %v1109_v15 = vadd.f32 %v1100_v9, %v918_v5 }
 0x1f2   : > { %v1061_v16 = vpop.f32.mrf.mxu0  ;;  %v1102_v17 = vpop.f32.mrf.mxu1 }
 0x1f3   : > { %v1133_v18 = vadd.f32 %v1116_v6, %v1107_v14  ;;  %v1135_v19 = vadd.f32 %v1124_v7, %v1109_v15  ;;  %v1108_v20 = vadd.f32 %v1061_v16, %v879_v12  ;;  %v1110_v21 = vadd.f32 %v1102_v17, %v920_v13 }
 0x1f4   : > { %v1063_v23 = vpop.f32.mrf.mxu0  ;;  %v1104_v24 = vpop.f32.mrf.mxu1 }
 0x1f5   : > { %v1134_v25 = vadd.f32 %v1120_v10, %v1108_v20  ;;  %v1136_v26 = vadd.f32 %v1128_v11, %v1110_v21  ;;  %v1137_v29 = vmax.f32 %v1133_v18, 0.0  ;;  %v1139_v30 = vmax.f32 %v1135_v19, 0.0 }
 0x1f6   : > { %v1064_v27 = vpop.f32.mrf.mxu0  ;;  %v1105_v28 = vpop.f32.mrf.mxu1 }
 0x1f7   : > { %v1138_v31 = vmax.f32 %v1134_v25, 0.0  ;;  %v1140_v32 = vmax.f32 %v1136_v26, 0.0 }
 0x1f9   : > { %v1355_v35 = vpack.c.bf16 %v1138_v31, %v1137_v29  ;;  %v1356_v36 = vpack.c.bf16 %v1140_v32, %v1139_v30 }
 0x1fb   : > { %v1165_v37 = vsel %vm1163_vm1, %v1355_v35, %v1164_v33  ;;  %v1168_v38 = vsel %vm1163_vm1, %v1356_v36, %v1167_v34 }
 0x1fc   : > { %1166 = vst [vmem:[%s224_s19] sm:$0x77] %v1165_v37  ;;  %1169 = vst [vmem:[%s224_s19 + $0x8] sm:$0x77] %v1168_v38 }
 0x1fd PF: > { %s15_s18 = sadd.s32 1, %s1526_s18  }
 0x1fe   : > { %p12_p4 = scmp.ge.s32.totalorder %s15_s18, 4  }
 0x200   :  { %14 = sbr.rel (!%p12_p4) target bundleno = 1 (0x1), region = 72 }

// kernel: _lambda_.23
= control target key start
LH: loop header
LB: loop body
LE: loop exit
PB: predicated region body
PF: predicated region fallthrough
CT: control target
= control target key end

     0   :  { %s1414_s18 = smov 0   ;;  %s1649_s0 = inlined_call_operand.vmem [shape: bf16[2,5,384], index: 0, kind: input, shape index: {}]   ;;  %s1650_s1 = inlined_call_operand.vmem [shape: bf16[384,48], index: 1, kind: input, shape index: {}]   ;;  %s1651_s2 = inlined_call_operand.vmem [shape: f32[1,48], index: 2, kind: input, shape index: {}]   ;;  %s1652_s3 = inlined_call_operand.vmem [shape: bf16[3,48,384], index: 3, kind: input, shape index: {}]   ;;  %s1653_s4 = inlined_call_operand.vmem [shape: f32[1,384], index: 4, kind: input, shape index: {}]   ;;  %s1654_s5 = inlined_call_operand.vmem [shape: bf16[2,5,384], index: 5, kind: output, shape index: {}]  }
   0x1 LB: > { %s1103_s19 = sadd.s32 4294967295, %s1379_s18   ;;  %p1107_p0 = scmp.ge.s32.totalorder %s1379_s18, 1  ;;  %s1379_s18 = sphi %s1414_s18, %s15_s18  }
   0x2   : > { %p187_p1 = scmp.lt.s32.totalorder %s1379_s18, 3 }
   0x4   : > { %p188_p2 = pnand %p1107_p0, %p187_p1 }
   0x5   : > { %p215_p3 = scmp.lt.s32.totalorder (!%p188_p2), %s1103_s19, 1 }
   0x6   : > { %191 = sbr.rel (%p188_p2) target bundleno = 501 (0x1f5), region = 40 }
   0xb   : > { %v1309_v0 = vld [vmem:[%s1650_s1 + $0x78] sm:$0xff]   ;;  %v1381_v1 = vmov 0.0   ;;  %v1312_v4 = vld [vmem:[%s1650_s1 + $0x70] sm:$0xff]   ;;  %vm1382_vm0 = vmmov 0   ;;  %v1315_v7 = vld [vmem:[%s1650_s1 + $0x68] sm:$0xff]   ;;  %s1660_s19 = smov (!%p215_p3, %s1103_s19), 1 }
   0xc   : > { %1247 = vmatprep.subr.bf16.mxu1 %v1381_v1  ;;  %v1310_v2 = vld [vmem:[%s1650_s1 + $0x38] sm:$0xff]   ;;  %1204 = vmatprep.subr.bf16.mxu0 %v1309_v0  ;;  %v1313_v5 = vld [vmem:[%s1650_s1 + $0x30] sm:$0xff]   ;;  %v1316_v8 = vld [vmem:[%s1650_s1 + $0x28] sm:$0xff]   ;;  %s1297_s29 = smul.u32 12, %s1660_s19  ;;  %vm519_vm1 = vcmask 385024   ;;  %vm525_vm4 = vcmask 388099  }
   0xd   : > { %v1311_v3 = vld [vmem:[%s1650_s1 + $0xb8] sm:$0xff]   ;;  %1205 = vmatpush3.bf16.msra.mxu0 %v1310_v2  ;;  %1263 = vmatprep.mubr.msk.bf16.mxu1 %vm1382_vm0, %v1381_v1  ;;  %v1314_v6 = vld [vmem:[%s1650_s1 + $0xb0] sm:$0xff]   ;;  %v1317_v9 = vld [vmem:[%s1650_s1 + $0xa8] sm:$0xff]   ;;  %vm520_vm2 = vsmask.f32 256  ;;  %v1383_v41 = vmov 0  }
   0xe   : > { %1248 = vmatpush3.bf16.msra.mxu1 %v1311_v3  ;;  %1206 = vmatprep.subr.bf16.mxu0 %v1312_v4  ;;  %v1318_v10 = vld [vmem:[%s1650_s1 + $0x60] sm:$0xff]   ;;  %v1321_v13 = vld [vmem:[%s1650_s1 + $0x58] sm:$0xff]   ;;  %v1324_v16 = vld [vmem:[%s1650_s1 + $0x50] sm:$0xff]   ;;  %s219_s13 = scalar_lea.vmem %s1649_s0, %s1297_s29  ;;  %vm526_vm5 = vsmask.f32 3328  ;;  %vm543_vm7 = vcmask 387072   ;;  %s224_s20 = scalar_lea.vmem %s1654_s5, %s1297_s29 }
   0xf   : > { %1249 = vmatprep.subr.bf16.mxu1 %v1381_v1  ;;  %v1319_v11 = vld [vmem:[%s1650_s1 + $0x20] sm:$0xff]   ;;  %v1322_v14 = vld [vmem:[%s1650_s1 + $0x18] sm:$0xff]   ;;  %v1325_v17 = vld [vmem:[%s1650_s1 + $0x10] sm:$0xff]   ;;  %vm544_vm8 = vsmask.f32 7938  ;;  %vm633_vm10 = vcmask 392192  }
  0x10   : > { %v1320_v12 = vld [vmem:[%s1650_s1 + $0xa0] sm:$0xff]   ;;  %v1323_v15 = vld [vmem:[%s1650_s1 + $0x98] sm:$0xff]   ;;  %v1326_v18 = vld [vmem:[%s1650_s1 + $0x90] sm:$0xff]   ;;  %vm1035_vm11 = vcmask 1042432   ;;  %vm1036_vm12 = vsmask.f32 2304 }
  0x11   : > { %1207 = vmatpush3.bf16.msra.mxu0 %v1313_v5  ;;  %v1327_v19 = vld [vmem:[%s1650_s1 + $0x48] sm:$0xff]   ;;  %v1330_v22 = vld [vmem:[%s1650_s1 + $0x40] sm:$0xff]   ;;  %vm521_vm3 = vmand %vm519_vm1, %vm520_vm2  ;;  %vm1038_vm13 = vcmask 1046532   ;;  %vm1039_vm14 = vsmask.f32 6400 }
  0x12   : > { %1250 = vmatpush3.bf16.msra.mxu1 %v1314_v6  ;;  %1208 = vmatprep.subr.bf16.mxu0 %v1315_v7  ;;  %v1328_v20 = vld [vmem:[%s1650_s1 + $0x8] sm:$0xff]   ;;  %v226_v23 = vld [vmem:[%s219_s13] sm:$0x77]  ;;  %vm1519_vm6 = vmand %vm525_vm4, %vm526_vm5 }
  0x13   : > { %1251 = vmatprep.subr.bf16.mxu1 %v1381_v1  ;;  %v1329_v21 = vld [vmem:[%s1650_s1 + $0x88] sm:$0xff]   ;;  %v1331_v24 = vld [vmem:[%s1650_s1] sm:$0xff]   ;;  %v1112_v25 = vcombine.high %v226_v23, %v226_v23  ;;  %v1111_v28 = vcombine.low %v226_v23, %v226_v23  ;;  %v1347_v42 = vld [vmem:[%s1652_s3 + $0x50] ss:$12 sps:$4 sm:$0xff]  }
  0x14   : > { %v1332_v26 = vld [vmem:[%s1650_s1 + $0x80] sm:$0xff]   ;;  %v1335_v27 = vld [vmem:[%s219_s13 + $0x8] ss:$0 sps:$4 sm:$0x77]   ;;  %v1346_v40 = vld [vmem:[%s1652_s3 + $0x4c] ss:$12 sps:$4 sm:$0xff]  }
  0x15   : > { %1209 = vmatpush3.bf16.msra.mxu0 %v1316_v8  ;;  %470 = vmatprep.mubr.bf16.mxu0 %v1112_v25  ;;  %v522_v29 = vld [vmem:[#allocation2] sm:$0x1]  ;;  %v528_v32 = vld [vmem:[#allocation2] sm:$0x8]  ;;  %v1336_v33 = vld [vmem:[%s1652_s3 + $0x78] ss:$12 sps:$4 sm:$0xff]  }
  0x16   : > { %1252 = vmatpush3.bf16.msra.mxu1 %v1317_v9  ;;  %1210 = vmatprep.subr.bf16.mxu0 %v1318_v10  ;;  %v523_v30 = vsel %vm521_vm3, 0, %v522_v29  ;;  %v1338_v34 = vld [vmem:[%s1652_s3 + $0x7c] ss:$12 sps:$4 sm:$0xff]   ;;  %v1339_v35 = vld [vmem:[%s1652_s3 + $0x80] ss:$12 sps:$4 sm:$0xff]   ;;  %v529_v39 = vsel %vm1519_vm6, 0, %v528_v32  ;;  %vm545_vm9 = vmand %vm543_vm7, %vm544_vm8 }
  0x17   : > { %1253 = vmatprep.subr.bf16.mxu1 %v1381_v1  ;;  %524 = vst [vmem:[#allocation2] sm:$0x1] %v523_v30  ;;  %v1342_v36 = vld [vmem:[%s1652_s3 + $0x64] ss:$12 sps:$4 sm:$0xff]   ;;  %v1343_v37 = vld [vmem:[%s1652_s3 + $0x68] ss:$12 sps:$4 sm:$0xff]   ;;  %vm1638_vm15 = vmand %vm1035_vm11, %vm1036_vm12 }
  0x18   : > { %v1340_v38 = vld [vmem:[%s1652_s3 + $0x60] ss:$12 sps:$4 sm:$0xff]   ;;  %530 = vst [vmem:[#allocation2] sm:$0x8] %v529_v39  ;;  %v1344_v43 = vld [vmem:[%s1652_s3 + $0x48] ss:$12 sps:$4 sm:$0xff]  }
  0x19   : > { %1211 = vmatpush3.bf16.msra.mxu0 %v1319_v11  ;;  %v1350_v44 = vld [vmem:[%s1652_s3 + $0x34] ss:$12 sps:$4 sm:$0xff]   ;;  %v1348_v7 = vld [vmem:[%s1652_s3 + $0x30] ss:$12 sps:$4 sm:$0xff]   ;;  %v1352_v8 = vld [vmem:[%s1652_s3 + $0x38] ss:$12 sps:$4 sm:$0xff]  }
  0x1a   : > { %1254 = vmatpush3.bf16.msra.mxu1 %v1320_v12  ;;  %1212 = vmatprep.subr.bf16.mxu0 %v1321_v13  ;;  %v1110_v47 = vld [vmem:[%s1651_s2] ss:$0 sm:$0xff]  ;;  %v1355_v10 = vld [vmem:[%s1652_s3 + $0x1c] ss:$12 sps:$4 sm:$0xff]   ;;  %v1353_v11 = vld [vmem:[%s1652_s3 + $0x18] ss:$12 sps:$4 sm:$0xff]  }
  0x1b   : > { %1255 = vmatprep.subr.bf16.mxu1 %v1381_v1  ;;  %v1356_v12 = vld [vmem:[%s1652_s3 + $0x20] ss:$12 sps:$4 sm:$0xff]   ;;  %v1359_v13 = vld [vmem:[%s1652_s3 + $0x4] ss:$12 sps:$4 sm:$0xff]  }
  0x1c   : > { %v1369_v23 = vld [vmem:[%s1652_s3 + $0x90] ss:$12 sps:$4 sm:$0xff]  }
  0x1d   : > { %1213 = vmatpush3.bf16.msra.mxu0 %v1322_v14  ;;  %v1357_v14 = vld [vmem:[%s1652_s3] ss:$12 sps:$4 sm:$0xff]  }
  0x1e   : > { %1256 = vmatpush3.bf16.msra.mxu1 %v1323_v15  ;;  %1214 = vmatprep.subr.bf16.mxu0 %v1324_v16  ;;  %v546_v62 = vld [vmem:[#allocation2] sm:$0x7]  ;;  %v1360_v15 = vld [vmem:[%s1652_s3 + $0x8] ss:$12 sps:$4 sm:$0xff]   ;;  %v1363_v16 = vld [vmem:[%s1652_s3 + $0xc4] ss:$12 sps:$4 sm:$0xff]  }
  0x1f   : > { %1257 = vmatprep.subr.bf16.mxu1 %v1381_v1 }
  0x21   : > { %1215 = vmatpush3.bf16.msra.mxu0 %v1325_v17  ;;  %v1361_v17 = vld [vmem:[%s1652_s3 + $0xc0] ss:$12 sps:$4 sm:$0xff]  }
  0x22   : > { %1258 = vmatpush3.bf16.msra.mxu1 %v1326_v18  ;;  %1216 = vmatprep.subr.bf16.mxu0 %v1327_v19  ;;  %v1364_v18 = vld [vmem:[%s1652_s3 + $0xc8] ss:$12 sps:$4 sm:$0xff]   ;;  %v1367_v19 = vld [vmem:[%s1652_s3 + $0xac] ss:$12 sps:$4 sm:$0xff]  }
  0x23   : > { %1259 = vmatprep.subr.bf16.mxu1 %v1381_v1 }
  0x25   : > { %1217 = vmatpush3.bf16.msra.mxu0 %v1328_v20  ;;  %v1365_v20 = vld [vmem:[%s1652_s3 + $0xa8] ss:$12 sps:$4 sm:$0xff]  }
  0x26   : > { %1260 = vmatpush3.bf16.msra.mxu1 %v1329_v21  ;;  %1218 = vmatprep.subr.bf16.mxu0 %v1330_v22  ;;  %v1368_v21 = vld [vmem:[%s1652_s3 + $0xb0] ss:$12 sps:$4 sm:$0xff]   ;;  %v1371_v22 = vld [vmem:[%s1652_s3 + $0x94] ss:$12 sps:$4 sm:$0xff]  }
  0x27   : > { %1261 = vmatprep.subr.bf16.mxu1 %v1381_v1 }
  0x29   : > { %1219 = vmatpush3.bf16.msra.mxu0 %v1331_v24  ;;  %v1372_v24 = vld [vmem:[%s1652_s3 + $0x98] ss:$12 sps:$4 sm:$0xff]  }
  0x2a   : > { %1262 = vmatpush3.bf16.msra.mxu1 %v1332_v26  ;;  %647 = vmatprep.subr.bf16.mxu0 %v1338_v34  ;;  %v1001_v34 = vlaneseq }
  0x2b   : > { %1267 = vmatprep.subr.bf16.mxu1 %v1381_v1 }
  0x2c   : > { %471 = vmatmul.mubr.bf16.vlgmr.msra.gmra.mxu0 %v1111_v28 }
  0x2d   : > { %1264 = vmatmul.mubr.bf16.vlgmr.msra.gmra.mxu1 %v1335_v27  ;;  %648 = vmatpush1.bf16.msra.mxu0 %v1336_v33 }
  0x2e   : > { %1273 = vmatprep.mubr.msk.bf16.mxu1 %vm1382_vm0, %v1381_v1  ;;  %1268 = vmatpush3.bf16.msra.mxu1 %v1339_v35 }
  0x2f   : > { %1269 = vmatprep.subr.bf16.mxu1 %v1381_v1  ;;  %649 = vmatprep.subr.bf16.mxu0 %v1342_v36 }
  0x30   : > { %669 = vmatprep.mubr.bf16.mxu0 %v1383_v41 }
  0x31   : > { %650 = vmatpush1.bf16.msra.mxu0 %v1340_v38  ;;  %v1002_v38 = vshrl.u32 %v1001_v34, 7 }
  0x32   : > { %1270 = vmatpush3.bf16.msra.mxu1 %v1343_v37  ;;  %651 = vmatprep.subr.bf16.mxu0 %v1346_v40 }
  0x33   : > { %1271 = vmatprep.subr.bf16.mxu1 %v1381_v1 }
  0x35   : > { %652 = vmatpush1.bf16.msra.mxu0 %v1344_v43  ;;  %v1003_v43 = vsub.s32 0, %v1002_v38 }
  0x36   : > { %1272 = vmatpush3.bf16.msra.mxu1 %v1347_v42  ;;  %779 = vmatprep.subr.bf16.mxu0 %v1350_v44  ;;  %v1011_v44 = vsub.s32 2, %v1002_v38 }
  0x37   : > { %1277 = vmatprep.subr.bf16.mxu1 %v1381_v1 }
  0xec   : > { %v1220_v45 = vpop.f32.mrf.mxu0 }
  0xed   : > { %v512_v46 = vpop.f32.mrf.mxu1 }
  0xee   : > { %v1221_v48 = vpop.f32.mrf.mxu0 }
  0xef   : > { %v1222_v49 = vadd.f32 %v1221_v48, %v1220_v45  ;;  %v1265_v50 = vpop.f32.mrf.mxu1  ;;  %v999_v45 = vld [vmem:[%s1653_s4] sm:$0x7] }
  0xf0   : > { %v1223_v51 = vpop.f32.mrf.mxu0  ;;  %v1012_v50 = vrot.slane %v999_v45, %v1011_v44 }
  0xf1   : > { %v473_v52 = vadd.f32 %v1222_v49, %v1110_v47  ;;  %v515_v53 = vpop.f32.mrf.mxu1  ;;  %v1004_v49 = vrot.slane %v999_v45, %v1003_v43 }
  0xf2   : > { %v1224_v54 = vpop.f32.mrf.mxu0 }
  0xf3   : > { %v513_v55 = vadd.f32 %v512_v46, %v473_v52  ;;  %v1266_v56 = vpop.f32.mrf.mxu1  ;;  %v1007_v46 = vsub.s32 1, %v1002_v38 }
  0xf5   : > { %v518_v57 = vmax.f32 %v513_v55, 0.0  ;;  %v1008_v53 = vrot.slane %v999_v45, %v1007_v46 }
  0xf7   : > { %v1201_v58 = vpack.c.bf16 %v518_v57, %v518_v57 }
  0xf9   : > { %v536_v59 = vshrl.u32 %v1201_v58, 16  ;;  %v539_v61 = vshll.u32 %v1201_v58, 16 }
  0xfb   : > { %v538_v60 = vrot.slane %v536_v59, 7 }
  0xfd   : > { %v541_v63 = vor.u32 %v539_v61, %v538_v60 }
  0xff   : > { %v547_v0 = vsel %vm545_vm9, %v541_v63, %v546_v62 }
 0x100   : > { %548 = vst [vmem:[#allocation2] sm:$0x7] %v547_v0 }
 0x107   : > { %v549_v2 = vld [vmem:[#allocation2] sm:$0xf] }
 0x108   : > { %v1151_v3 = vcombine.low %v549_v2, %v549_v2 }
 0x10a   : > { %v581_v4 = vshll.u32 %v1151_v3, 16  ;;  %v579_v5 = vshrl.u32 %v1151_v3, 16  ;;  %v863_v25 = vrot.slane %v1151_v3, 1 }
 0x10c   : > { %v583_v6 = vrot.slane %v581_v4, 1  ;;  %v1045_v4 = vld [vmem:[%s224_s20 + $0x8] sm:$0x7] }
 0x10e   : > { %v584_v9 = vor.u32 %v583_v6, %v579_v5 }
 0x110   : > { %1161 = vmatmul.mubr.msk.bf16.vlgmr.msra.gmra.mxu0 %vm633_vm10, %v584_v9  ;;  %1274 = vmatmul.mubr.msk.bf16.vlgmr.msra.gmra.mxu1 %vm633_vm10, %v584_v9 }
 0x111   : > { %780 = vmatpush1.bf16.msra.mxu0 %v1348_v7  ;;  %1278 = vmatpush3.bf16.msra.mxu1 %v1352_v8 }
 0x112   : > { %781 = vmatprep.subr.bf16.mxu0 %v1355_v10  ;;  %1279 = vmatprep.subr.bf16.mxu1 %v1381_v1  ;;  %v1042_v10 = vld [vmem:[%s224_s20] sm:$0x77] }
 0x113   : > { %801 = vmatprep.mubr.bf16.mxu0 %v1383_v41  ;;  %1283 = vmatprep.mubr.msk.bf16.mxu1 %vm1382_vm0, %v1381_v1 }
 0x115   : > { %782 = vmatpush1.bf16.msra.mxu0 %v1353_v11  ;;  %1280 = vmatpush3.bf16.msra.mxu1 %v1356_v12 }
 0x116   : > { %783 = vmatprep.subr.bf16.mxu0 %v1359_v13  ;;  %1281 = vmatprep.subr.bf16.mxu1 %v1381_v1 }
 0x119   : > { %784 = vmatpush1.bf16.msra.mxu0 %v1357_v14  ;;  %1282 = vmatpush3.bf16.msra.mxu1 %v1360_v15 }
 0x11a   : > { %925 = vmatprep.subr.bf16.mxu0 %v1363_v16  ;;  %1287 = vmatprep.subr.bf16.mxu1 %v1381_v1 }
 0x11c   : > { %1172 = vmatmul.mubr.msk.bf16.vlgmr.msra.gmra.mxu0 %vm633_vm10, %v549_v2  ;;  %1284 = vmatmul.mubr.msk.bf16.vlgmr.msra.gmra.mxu1 %vm633_vm10, %v549_v2 }
 0x11d   : > { %926 = vmatpush1.bf16.msra.mxu0 %v1361_v17  ;;  %1288 = vmatpush3.bf16.msra.mxu1 %v1364_v18 }
 0x11e   : > { %927 = vmatprep.subr.bf16.mxu0 %v1367_v19  ;;  %1289 = vmatprep.subr.bf16.mxu1 %v1381_v1 }
 0x11f   : > { %947 = vmatprep.mubr.bf16.mxu0 %v1383_v41  ;;  %1293 = vmatprep.mubr.msk.bf16.mxu1 %vm1382_vm0, %v1381_v1  ;;  %vm1040_vm0 = vmand %vm1038_vm13, %vm1039_vm14 }
 0x120   : > { %vm1041_vm1 = vmor %vm1040_vm0, %vm1638_vm15 }
 0x121   : > { %928 = vmatpush1.bf16.msra.mxu0 %v1365_v20  ;;  %1290 = vmatpush3.bf16.msra.mxu1 %v1368_v21 }
 0x122   : > { %929 = vmatprep.subr.bf16.mxu0 %v1371_v22  ;;  %1291 = vmatprep.subr.bf16.mxu1 %v1381_v1 }
 0x125   : > { %930 = vmatpush1.bf16.msra.mxu0 %v1369_v23  ;;  %1292 = vmatpush3.bf16.msra.mxu1 %v1372_v24 }
 0x128   : > { %1195 = vmatmul.mubr.msk.bf16.vlgmr.msra.gmra.mxu0 %vm633_vm10, %v863_v25  ;;  %1294 = vmatmul.mubr.msk.bf16.vlgmr.msra.gmra.mxu1 %vm633_vm10, %v863_v25 }
 0x1d0   : > { %v671_v26 = vpop.f32.mrf.mxu0  ;;  %v712_v27 = vpop.f32.mrf.mxu1 }
 0x1d2   : > { %v673_v28 = vpop.f32.mrf.mxu0  ;;  %v1275_v29 = vpop.f32.mrf.mxu1 }
 0x1d4   : > { %v675_v30 = vpop.f32.mrf.mxu0  ;;  %v715_v31 = vpop.f32.mrf.mxu1 }
 0x1d6   : > { %v676_v32 = vpop.f32.mrf.mxu0  ;;  %v1276_v33 = vpop.f32.mrf.mxu1 }
 0x1dc   : > { %v803_v35 = vpop.f32.mrf.mxu0  ;;  %v844_v36 = vpop.f32.mrf.mxu1 }
 0x1dd   : > { %v804_v47 = vadd.f32 %v803_v35, %v671_v26  ;;  %v845_v48 = vadd.f32 %v844_v36, %v712_v27 }
 0x1de   : > { %v805_v37 = vpop.f32.mrf.mxu0  ;;  %v1285_v1 = vpop.f32.mrf.mxu1 }
 0x1df   : > { %v806_v54 = vadd.f32 %v805_v37, %v673_v28 }
 0x1e0   : > { %v807_v39 = vpop.f32.mrf.mxu0  ;;  %v847_v40 = vpop.f32.mrf.mxu1 }
 0x1e2   : > { %v808_v41 = vpop.f32.mrf.mxu0  ;;  %v1286_v42 = vpop.f32.mrf.mxu1 }
 0x1e8   : > { %v949_v51 = vpop.f32.mrf.mxu0  ;;  %v990_v52 = vpop.f32.mrf.mxu1 }
 0x1e9   : > { %v996_v55 = vadd.f32 %v949_v51, %v804_v47  ;;  %v998_v56 = vadd.f32 %v990_v52, %v845_v48 }
 0x1ea   : > { %v951_v57 = vpop.f32.mrf.mxu0  ;;  %v1295_v58 = vpop.f32.mrf.mxu1 }
 0x1eb   : > { %v1016_v59 = vadd.f32 %v1004_v49, %v996_v55  ;;  %v1018_v60 = vadd.f32 %v1012_v50, %v998_v56  ;;  %v997_v61 = vadd.f32 %v951_v57, %v806_v54 }
 0x1ec   : > { %v953_v63 = vpop.f32.mrf.mxu0  ;;  %v993_v0 = vpop.f32.mrf.mxu1 }
 0x1ed   : > { %v1021_v2 = vmax.f32 %v1018_v60, 0.0  ;;  %v1017_v3 = vadd.f32 %v1008_v53, %v997_v61  ;;  %v1019_v7 = vmax.f32 %v1016_v59, 0.0 }
 0x1ee   : > { %v954_v5 = vpop.f32.mrf.mxu0  ;;  %v1296_v6 = vpop.f32.mrf.mxu1 }
 0x1ef   : > { %v1203_v8 = vpack.c.bf16 %v1021_v2, %v1021_v2  ;;  %v1020_v9 = vmax.f32 %v1017_v3, 0.0 }
 0x1f1   : > { %v1046_v11 = vsel %vm1638_vm15, %v1203_v8, %v1045_v4  ;;  %v1202_v12 = vpack.c.bf16 %v1020_v9, %v1019_v7 }
 0x1f2   : > { %1047 = vst [vmem:[%s224_s20 + $0x8] sm:$0x7] %v1046_v11 }
 0x1f3   : > { %v1043_v13 = vsel %vm1041_vm1, %v1202_v12, %v1042_v10 }
 0x1f4   : > { %1044 = vst [vmem:[%s224_s20] sm:$0x77] %v1043_v13 }
 0x1f5 PF: > { %s15_s18 = sadd.s32 1, %s1379_s18  }
 0x1f6   : > { %p12_p4 = scmp.ge.s32.totalorder %s15_s18, 4  }
 0x1f8   :  { %14 = sbr.rel (!%p12_p4) target bundleno = 1 (0x1), region = 72 }

// kernel: _lambda_.25
= control target key start
LH: loop header
LB: loop body
LE: loop exit
PB: predicated region body
PF: predicated region fallthrough
CT: control target
= control target key end

     0   :  { %s1636_s18 = smov 0   ;;  %s1934_s0 = inlined_call_operand.vmem [shape: bf16[2,5,512], index: 0, kind: input, shape index: {}]   ;;  %s1935_s1 = inlined_call_operand.vmem [shape: bf16[512,64], index: 1, kind: input, shape index: {}]   ;;  %s1936_s2 = inlined_call_operand.vmem [shape: f32[1,64], index: 2, kind: input, shape index: {}]   ;;  %s1937_s3 = inlined_call_operand.vmem [shape: bf16[3,64,512], index: 3, kind: input, shape index: {}]   ;;  %s1938_s4 = inlined_call_operand.vmem [shape: f32[1,512], index: 4, kind: input, shape index: {}]   ;;  %s1939_s5 = inlined_call_operand.vmem [shape: bf16[2,5,512], index: 5, kind: output, shape index: {}]  }
   0x1 LB: > { %s1292_s19 = sadd.s32 4294967295, %s1603_s18   ;;  %p1296_p0 = scmp.ge.s32.totalorder %s1603_s18, 1  ;;  %s1603_s18 = sphi %s1636_s18, %s15_s18  }
   0x2   : > { %p187_p1 = scmp.lt.s32.totalorder %s1603_s18, 3 }
   0x4   : > { %p188_p2 = pnand %p1296_p0, %p187_p1 }
   0x5   : > { %p215_p3 = scmp.lt.s32.totalorder (!%p188_p2), %s1292_s19, 1 }
   0x6   : > { %191 = sbr.rel (%p188_p2) target bundleno = 510 (0x1fe), region = 40 }
   0xb   : > { %v1488_v0 = vld [vmem:[%s1935_s1 + $0x78] sm:$0xff]   ;;  %v1492_v4 = vld [vmem:[%s1935_s1 + $0x70] sm:$0xff]   ;;  %v1496_v8 = vld [vmem:[%s1935_s1 + $0x68] sm:$0xff]   ;;  %s1943_s19 = smov (!%p215_p3, %s1292_s19), 1  ;;  %vm586_vm0 = vcmask 516096   ;;  %vm592_vm3 = vcmask 519171  }
   0xc   : > { %v1489_v1 = vld [vmem:[%s1935_s1 + $0xf8] sm:$0xff]   ;;  %1435 = vmatprep.subr.bf16.mxu0 %v1488_v0  ;;  %v1493_v5 = vld [vmem:[%s1935_s1 + $0xf0] sm:$0xff]   ;;  %v1497_v9 = vld [vmem:[%s1935_s1 + $0xe8] sm:$0xff]   ;;  %s1430_s28 = sshll.u32 %s1943_s19, 4  ;;  %vm587_vm1 = vsmask.f32 256 }
   0xd   : > { %v1490_v2 = vld [vmem:[%s1935_s1 + $0x38] sm:$0xff]   ;;  %1457 = vmatprep.subr.bf16.mxu1 %v1489_v1  ;;  %v1494_v6 = vld [vmem:[%s1935_s1 + $0x30] sm:$0xff]   ;;  %v1498_v10 = vld [vmem:[%s1935_s1 + $0x28] sm:$0xff]   ;;  %s219_s12 = scalar_lea.vmem %s1934_s0, %s1430_s28  ;;  %vm593_vm4 = vsmask.f32 3328  ;;  %v1605_v55 = vmov 0   ;;  %s224_s9 = scalar_lea.vmem %s1939_s5, %s1430_s28 }
   0xe   : > { %v1491_v3 = vld [vmem:[%s1935_s1 + $0xb8] sm:$0xff]   ;;  %1436 = vmatpush3.bf16.msra.mxu0 %v1490_v2  ;;  %v1495_v7 = vld [vmem:[%s1935_s1 + $0xb0] sm:$0xff]   ;;  %v1499_v11 = vld [vmem:[%s1935_s1 + $0xa8] sm:$0xff]   ;;  %vm610_vm6 = vcmask 518144   ;;  %vm611_vm7 = vsmask.f32 7938 }
   0xf   : > { %1458 = vmatpush3.bf16.msra.mxu1 %v1491_v3  ;;  %1437 = vmatprep.subr.bf16.mxu0 %v1492_v4  ;;  %v1500_v12 = vld [vmem:[%s1935_s1 + $0x60] sm:$0xff]   ;;  %v1504_v16 = vld [vmem:[%s1935_s1 + $0x58] sm:$0xff]   ;;  %v1508_v20 = vld [vmem:[%s1935_s1 + $0x50] sm:$0xff]   ;;  %vm740_vm9 = vcmask 523264   ;;  %vm1224_vm10 = vcmask 1042432   ;;  %vm1227_vm12 = vcmask 1046532  }
  0x10   : > { %1459 = vmatprep.subr.bf16.mxu1 %v1493_v5  ;;  %v1501_v13 = vld [vmem:[%s1935_s1 + $0xe0] sm:$0xff]   ;;  %v1505_v17 = vld [vmem:[%s1935_s1 + $0xd8] sm:$0xff]   ;;  %v1509_v21 = vld [vmem:[%s1935_s1 + $0xd0] sm:$0xff]   ;;  %vm1225_vm11 = vsmask.f32 2304 }
  0x11   : > { %v1502_v14 = vld [vmem:[%s1935_s1 + $0x20] sm:$0xff]   ;;  %v1506_v18 = vld [vmem:[%s1935_s1 + $0x18] sm:$0xff]   ;;  %v1510_v22 = vld [vmem:[%s1935_s1 + $0x10] sm:$0xff]   ;;  %vm1228_vm13 = vsmask.f32 6400 }
  0x12   : > { %1438 = vmatpush3.bf16.msra.mxu0 %v1494_v6  ;;  %v1503_v15 = vld [vmem:[%s1935_s1 + $0xa0] sm:$0xff]   ;;  %v1507_v19 = vld [vmem:[%s1935_s1 + $0x98] sm:$0xff]   ;;  %v1511_v23 = vld [vmem:[%s1935_s1 + $0x90] sm:$0xff]  }
  0x13   : > { %1460 = vmatpush3.bf16.msra.mxu1 %v1495_v7  ;;  %1439 = vmatprep.subr.bf16.mxu0 %v1496_v8  ;;  %v1512_v24 = vld [vmem:[%s1935_s1 + $0x48] sm:$0xff]   ;;  %v1516_v28 = vld [vmem:[%s1935_s1 + $0x40] sm:$0xff]   ;;  %vm588_vm2 = vmand %vm586_vm0, %vm587_vm1 }
  0x14   : > { %1461 = vmatprep.subr.bf16.mxu1 %v1497_v9  ;;  %v1513_v25 = vld [vmem:[%s1935_s1 + $0xc8] sm:$0xff]   ;;  %v1517_v29 = vld [vmem:[%s1935_s1 + $0xc0] sm:$0xff]   ;;  %vm594_vm5 = vmand %vm592_vm3, %vm593_vm4 }
  0x15   : > { %v1514_v26 = vld [vmem:[%s1935_s1 + $0x8] sm:$0xff]   ;;  %v1518_v30 = vld [vmem:[%s1935_s1] sm:$0xff]   ;;  %vm612_vm8 = vmand %vm610_vm6, %vm611_vm7 }
  0x16   : > { %1440 = vmatpush3.bf16.msra.mxu0 %v1498_v10  ;;  %v1515_v27 = vld [vmem:[%s1935_s1 + $0x88] sm:$0xff]   ;;  %v1519_v31 = vld [vmem:[%s1935_s1 + $0x80] sm:$0xff]   ;;  %vm1920_vm14 = vmand %vm1224_vm10, %vm1225_vm11 }
  0x17   : > { %1462 = vmatpush3.bf16.msra.mxu1 %v1499_v11  ;;  %1441 = vmatprep.subr.bf16.mxu0 %v1500_v12  ;;  %v226_v32 = vld [vmem:[%s219_s12] sm:$0x77]  ;;  %v227_v35 = vld [vmem:[%s219_s12 + $0x8] sm:$0x77]  ;;  %v595_v54 = vld [vmem:[#allocation2] sm:$0x8] }
  0x18   : > { %1463 = vmatprep.subr.bf16.mxu1 %v1501_v13  ;;  %v1302_v33 = vcombine.low %v226_v32, %v226_v32  ;;  %v1303_v34 = vcombine.high %v226_v32, %v226_v32  ;;  %v1304_v36 = vcombine.low %v227_v35, %v227_v35  ;;  %v1305_v37 = vcombine.high %v227_v35, %v227_v35  ;;  %v589_v38 = vld [vmem:[#allocation2] sm:$0x1]  ;;  %v1526_v40 = vld [vmem:[%s1937_s3 + $0xe4] ss:$16 sps:$4 sm:$0xff]   ;;  %v1529_v41 = vld [vmem:[%s1937_s3 + $0xec] ss:$16 sps:$4 sm:$0xff]  }
  0x19   : > { %v590_v39 = vsel %vm588_vm2, 0, %v589_v38  ;;  %v1524_v42 = vld [vmem:[%s1937_s3 + $0xe0] ss:$16 sps:$4 sm:$0xff]   ;;  %v1527_v43 = vld [vmem:[%s1937_s3 + $0xe8] ss:$16 sps:$4 sm:$0xff]   ;;  %v596_v56 = vsel %vm594_vm5, 0, %v595_v54  ;;  %vm1229_vm15 = vmand %vm1227_vm12, %vm1228_vm13 }
  0x1a   : > { %1442 = vmatpush3.bf16.msra.mxu0 %v1502_v14  ;;  %537 = vmatprep.mubr.bf16.mxu0 %v1303_v34  ;;  %591 = vst [vmem:[#allocation2] sm:$0x1] %v590_v39  ;;  %v1532_v44 = vld [vmem:[%s1937_s3 + $0xc4] ss:$16 sps:$4 sm:$0xff]   ;;  %v1530_v45 = vld [vmem:[%s1937_s3 + $0xc0] ss:$16 sps:$4 sm:$0xff]   ;;  %vm1230_vm0 = vmor %vm1229_vm15, %vm1920_vm14 }
  0x1b   : > { %1464 = vmatpush3.bf16.msra.mxu1 %v1503_v15  ;;  %1443 = vmatprep.subr.bf16.mxu0 %v1504_v16  ;;  %v1533_v46 = vld [vmem:[%s1937_s3 + $0xc8] ss:$16 sps:$4 sm:$0xff]   ;;  %v1535_v47 = vld [vmem:[%s1937_s3 + $0xcc] ss:$16 sps:$4 sm:$0xff]   ;;  %v1538_v48 = vld [vmem:[%s1937_s3 + $0xa4] ss:$16 sps:$4 sm:$0xff]  }
  0x1c   : > { %1465 = vmatprep.subr.bf16.mxu1 %v1505_v17  ;;  %577 = vmatprep.mubr.bf16.mxu1 %v1305_v37  ;;  %v1541_v49 = vld [vmem:[%s1937_s3 + $0xac] ss:$16 sps:$4 sm:$0xff]   ;;  %v1536_v50 = vld [vmem:[%s1937_s3 + $0xa0] ss:$16 sps:$4 sm:$0xff]   ;;  %v1539_v51 = vld [vmem:[%s1937_s3 + $0xa8] ss:$16 sps:$4 sm:$0xff]  }
  0x1d   : > { %v1544_v52 = vld [vmem:[%s1937_s3 + $0x84] ss:$16 sps:$4 sm:$0xff]   ;;  %v1547_v53 = vld [vmem:[%s1937_s3 + $0x8c] ss:$16 sps:$4 sm:$0xff]   ;;  %597 = vst [vmem:[#allocation2] sm:$0x8] %v596_v56 }
  0x1e   : > { %1444 = vmatpush3.bf16.msra.mxu0 %v1506_v18  ;;  %v1542_v57 = vld [vmem:[%s1937_s3 + $0x80] ss:$16 sps:$4 sm:$0xff]   ;;  %v1545_v58 = vld [vmem:[%s1937_s3 + $0x88] ss:$16 sps:$4 sm:$0xff]   ;;  %v1550_v59 = vld [vmem:[%s1937_s3 + $0x64] ss:$16 sps:$4 sm:$0xff]  }
  0x1f   : > { %1466 = vmatpush3.bf16.msra.mxu1 %v1507_v19  ;;  %1445 = vmatprep.subr.bf16.mxu0 %v1508_v20  ;;  %v1553_v60 = vld [vmem:[%s1937_s3 + $0x6c] ss:$16 sps:$4 sm:$0xff]   ;;  %v1301_v63 = vld [vmem:[%s1936_s2] ss:$0 sm:$0xff]  ;;  %v1569_v34 = vld [vmem:[%s1937_s3 + $0x4] ss:$16 sps:$4 sm:$0xff]  }
  0x20   : > { %1467 = vmatprep.subr.bf16.mxu1 %v1509_v21  ;;  %v1561_v32 = vld [vmem:[%s1937_s3 + $0x20] ss:$16 sps:$4 sm:$0xff]   ;;  %v1572_v35 = vld [vmem:[%s1937_s3 + $0xc] ss:$16 sps:$4 sm:$0xff]   ;;  %v1570_v37 = vld [vmem:[%s1937_s3 + $0x8] ss:$16 sps:$4 sm:$0xff]  }
  0x21   : > { %v613_v15 = vld [vmem:[#allocation2] sm:$0x7]  ;;  %v1575_v38 = vld [vmem:[%s1937_s3 + $0x164] ss:$16 sps:$4 sm:$0xff]   ;;  %v1578_v39 = vld [vmem:[%s1937_s3 + $0x16c] ss:$16 sps:$4 sm:$0xff]  }
  0x22   : > { %1446 = vmatpush3.bf16.msra.mxu0 %v1510_v22 }
  0x23   : > { %1468 = vmatpush3.bf16.msra.mxu1 %v1511_v23  ;;  %1447 = vmatprep.subr.bf16.mxu0 %v1512_v24  ;;  %v1548_v23 = vld [vmem:[%s1937_s3 + $0x60] ss:$16 sps:$4 sm:$0xff]   ;;  %v1551_v24 = vld [vmem:[%s1937_s3 + $0x68] ss:$16 sps:$4 sm:$0xff]  }
  0x24   : > { %1469 = vmatprep.subr.bf16.mxu1 %v1513_v25 }
  0x26   : > { %1448 = vmatpush3.bf16.msra.mxu0 %v1514_v26  ;;  %v1557_v26 = vld [vmem:[%s1937_s3 + $0x44] ss:$16 sps:$4 sm:$0xff]  }
  0x27   : > { %1470 = vmatpush3.bf16.msra.mxu1 %v1515_v27  ;;  %1449 = vmatprep.subr.bf16.mxu0 %v1516_v28  ;;  %v1560_v27 = vld [vmem:[%s1937_s3 + $0x4c] ss:$16 sps:$4 sm:$0xff]   ;;  %v1555_v28 = vld [vmem:[%s1937_s3 + $0x40] ss:$16 sps:$4 sm:$0xff]  }
  0x28   : > { %1471 = vmatprep.subr.bf16.mxu1 %v1517_v29  ;;  %v1558_v29 = vld [vmem:[%s1937_s3 + $0x48] ss:$16 sps:$4 sm:$0xff]  }
  0x2a   : > { %1450 = vmatpush3.bf16.msra.mxu0 %v1518_v30  ;;  %v1563_v30 = vld [vmem:[%s1937_s3 + $0x24] ss:$16 sps:$4 sm:$0xff]  }
  0x2b   : > { %1472 = vmatpush3.bf16.msra.mxu1 %v1519_v31  ;;  %752 = vmatprep.subr.bf16.mxu0 %v1526_v40  ;;  %v1566_v31 = vld [vmem:[%s1937_s3 + $0x2c] ss:$16 sps:$4 sm:$0xff]   ;;  %v1573_v40 = vld [vmem:[%s1937_s3 + $0x160] ss:$16 sps:$4 sm:$0xff]  }
  0x2c   : > { %793 = vmatprep.subr.bf16.mxu1 %v1529_v41  ;;  %v1576_v41 = vld [vmem:[%s1937_s3 + $0x168] ss:$16 sps:$4 sm:$0xff]  }
  0x2d   : > { %538 = vmatmul.mubr.bf16.vlgmr.msra.gmra.mxu0 %v1302_v33  ;;  %v1564_v33 = vld [vmem:[%s1937_s3 + $0x28] ss:$16 sps:$4 sm:$0xff]  }
  0x2e   : > { %578 = vmatmul.mubr.bf16.vlgmr.msra.gmra.mxu1 %v1304_v36  ;;  %753 = vmatpush1.bf16.msra.mxu0 %v1524_v42  ;;  %v1567_v36 = vld [vmem:[%s1937_s3] ss:$16 sps:$4 sm:$0xff]   ;;  %v1581_v42 = vld [vmem:[%s1937_s3 + $0x144] ss:$16 sps:$4 sm:$0xff]  }
  0x2f   : > { %794 = vmatpush1.bf16.msra.mxu1 %v1527_v43  ;;  %754 = vmatprep.subr.bf16.mxu0 %v1532_v44  ;;  %v1584_v43 = vld [vmem:[%s1937_s3 + $0x14c] ss:$16 sps:$4 sm:$0xff]   ;;  %v1579_v44 = vld [vmem:[%s1937_s3 + $0x140] ss:$16 sps:$4 sm:$0xff]  }
  0x30   : > { %795 = vmatprep.subr.bf16.mxu1 %v1535_v47  ;;  %776 = vmatprep.mubr.bf16.mxu0 %v1605_v55  ;;  %v1590_v47 = vld [vmem:[%s1937_s3 + $0x12c] ss:$16 sps:$4 sm:$0xff]  }
  0x31   : > { %817 = vmatprep.mubr.bf16.mxu1 %v1605_v55 }
  0x32   : > { %755 = vmatpush1.bf16.msra.mxu0 %v1530_v45  ;;  %v1582_v45 = vld [vmem:[%s1937_s3 + $0x148] ss:$16 sps:$4 sm:$0xff]  }
  0x33   : > { %796 = vmatpush1.bf16.msra.mxu1 %v1533_v46  ;;  %756 = vmatprep.subr.bf16.mxu0 %v1538_v48  ;;  %v1587_v46 = vld [vmem:[%s1937_s3 + $0x124] ss:$16 sps:$4 sm:$0xff]   ;;  %v1585_v48 = vld [vmem:[%s1937_s3 + $0x120] ss:$16 sps:$4 sm:$0xff]  }
  0x34   : > { %797 = vmatprep.subr.bf16.mxu1 %v1541_v49  ;;  %v1588_v49 = vld [vmem:[%s1937_s3 + $0x128] ss:$16 sps:$4 sm:$0xff]  }
  0x36   : > { %757 = vmatpush1.bf16.msra.mxu0 %v1536_v50  ;;  %v1593_v50 = vld [vmem:[%s1937_s3 + $0x104] ss:$16 sps:$4 sm:$0xff]  }
  0x37   : > { %798 = vmatpush1.bf16.msra.mxu1 %v1539_v51  ;;  %758 = vmatprep.subr.bf16.mxu0 %v1544_v52  ;;  %v1596_v51 = vld [vmem:[%s1937_s3 + $0x10c] ss:$16 sps:$4 sm:$0xff]   ;;  %v1591_v52 = vld [vmem:[%s1937_s3 + $0x100] ss:$16 sps:$4 sm:$0xff]  }
  0x38   : > { %799 = vmatprep.subr.bf16.mxu1 %v1547_v53  ;;  %v1594_v53 = vld [vmem:[%s1937_s3 + $0x108] ss:$16 sps:$4 sm:$0xff]  }
  0x3a   : > { %759 = vmatpush1.bf16.msra.mxu0 %v1542_v57 }
  0x3b   : > { %800 = vmatpush1.bf16.msra.mxu1 %v1545_v58  ;;  %917 = vmatprep.subr.bf16.mxu0 %v1550_v59 }
  0x3c   : > { %958 = vmatprep.subr.bf16.mxu1 %v1553_v60 }
  0xed   : > { %v1451_v61 = vpop.f32.mrf.mxu0 }
  0xee   : > { %v1473_v62 = vpop.f32.mrf.mxu1 }
  0xef   : > { %v1452_v0 = vpop.f32.mrf.mxu0 }
  0xf0   : > { %v1453_v1 = vadd.f32 %v1452_v0, %v1451_v61  ;;  %v1474_v2 = vpop.f32.mrf.mxu1 }
  0xf1   : > { %v1454_v3 = vpop.f32.mrf.mxu0  ;;  %v1475_v5 = vadd.f32 %v1474_v2, %v1473_v62 }
  0xf2   : > { %v540_v4 = vadd.f32 %v1453_v1, %v1301_v63  ;;  %v1476_v6 = vpop.f32.mrf.mxu1  ;;  %v1180_v3 = vlaneseq }
  0xf3   : > { %v1455_v7 = vpop.f32.mrf.mxu0 }
  0xf4   : > { %v580_v8 = vadd.f32 %v1475_v5, %v540_v4  ;;  %v1477_v9 = vpop.f32.mrf.mxu1 }
  0xf6   : > { %v585_v10 = vmax.f32 %v580_v8, 0.0  ;;  %v1181_v8 = vshrl.u32 %v1180_v3, 7 }
  0xf8   : > { %v1432_v11 = vpack.c.bf16 %v585_v10, %v585_v10  ;;  %v1182_v9 = vsub.s32 0, %v1181_v8  ;;  %v1190_v10 = vsub.s32 2, %v1181_v8 }
  0xfa   : > { %v603_v12 = vshrl.u32 %v1432_v11, 16  ;;  %v606_v14 = vshll.u32 %v1432_v11, 16  ;;  %v1178_v11 = vld [vmem:[%s1938_s4] sm:$0xf] }
  0xfc   : > { %v605_v13 = vrot.slane %v603_v12, 7  ;;  %v1186_v12 = vsub.s32 1, %v1181_v8 }
  0xfe   : > { %v608_v16 = vor.u32 %v606_v14, %v605_v13  ;;  %v1194_v13 = vsub.s32 3, %v1181_v8 }
 0x100   : > { %v614_v17 = vsel %vm612_vm8, %v608_v16, %v613_v15  ;;  %v1183_v16 = vrot.slane %v1178_v11, %v1182_v9 }
 0x101   : > { %615 = vst [vmem:[#allocation2] sm:$0x7] %v614_v17  ;;  %v1191_v17 = vrot.slane %v1178_v11, %v1190_v10 }
 0x108   : > { %v616_v18 = vld [vmem:[#allocation2] sm:$0xf] }
 0x109   : > { %v1811_v19 = vcombine.low %v616_v18, %v616_v18 }
 0x10b   : > { %v656_v20 = vshll.u32 %v1811_v19, 16  ;;  %v654_v21 = vshrl.u32 %v1811_v19, 16  ;;  %v1008_v54 = vrot.slane %v1811_v19, 1 }
 0x10d   : > { %v658_v22 = vrot.slane %v656_v20, 1  ;;  %v1187_v20 = vrot.slane %v1178_v11, %v1186_v12 }
 0x10f   : > { %v659_v25 = vor.u32 %v658_v22, %v654_v21  ;;  %v1195_v21 = vrot.slane %v1178_v11, %v1194_v13 }
 0x111   : > { %1372 = vmatmul.mubr.msk.bf16.vlgmr.msra.gmra.mxu0 %vm740_vm9, %v659_v25  ;;  %1373 = vmatmul.mubr.msk.bf16.vlgmr.msra.gmra.mxu1 %vm740_vm9, %v659_v25 }
 0x112   : > { %918 = vmatpush1.bf16.msra.mxu0 %v1548_v23  ;;  %959 = vmatpush1.bf16.msra.mxu1 %v1551_v24 }
 0x113   : > { %919 = vmatprep.subr.bf16.mxu0 %v1557_v26  ;;  %960 = vmatprep.subr.bf16.mxu1 %v1560_v27 }
 0x114   : > { %941 = vmatprep.mubr.bf16.mxu0 %v1605_v55  ;;  %982 = vmatprep.mubr.bf16.mxu1 %v1605_v55 }
 0x116   : > { %920 = vmatpush1.bf16.msra.mxu0 %v1555_v28  ;;  %961 = vmatpush1.bf16.msra.mxu1 %v1558_v29 }
 0x117   : > { %921 = vmatprep.subr.bf16.mxu0 %v1563_v30  ;;  %962 = vmatprep.subr.bf16.mxu1 %v1566_v31 }
 0x11a   : > { %922 = vmatpush1.bf16.msra.mxu0 %v1561_v32  ;;  %963 = vmatpush1.bf16.msra.mxu1 %v1564_v33 }
 0x11b   : > { %923 = vmatprep.subr.bf16.mxu0 %v1569_v34  ;;  %964 = vmatprep.subr.bf16.mxu1 %v1572_v35 }
 0x11e   : > { %924 = vmatpush1.bf16.msra.mxu0 %v1567_v36  ;;  %965 = vmatpush1.bf16.msra.mxu1 %v1570_v37 }
 0x11f   : > { %1100 = vmatprep.subr.bf16.mxu0 %v1575_v38  ;;  %1141 = vmatprep.subr.bf16.mxu1 %v1578_v39 }
 0x121   : > { %1390 = vmatmul.mubr.msk.bf16.vlgmr.msra.gmra.mxu0 %vm740_vm9, %v616_v18  ;;  %1391 = vmatmul.mubr.msk.bf16.vlgmr.msra.gmra.mxu1 %vm740_vm9, %v616_v18 }
 0x122   : > { %1101 = vmatpush1.bf16.msra.mxu0 %v1573_v40  ;;  %1142 = vmatpush1.bf16.msra.mxu1 %v1576_v41 }
 0x123   : > { %1102 = vmatprep.subr.bf16.mxu0 %v1581_v42  ;;  %1143 = vmatprep.subr.bf16.mxu1 %v1584_v43  ;;  %v1231_v43 = vld [vmem:[%s224_s9] sm:$0x77] }
 0x124   : > { %1124 = vmatprep.mubr.bf16.mxu0 %v1605_v55  ;;  %1165 = vmatprep.mubr.bf16.mxu1 %v1605_v55 }
 0x126   : > { %1103 = vmatpush1.bf16.msra.mxu0 %v1579_v44  ;;  %1144 = vmatpush1.bf16.msra.mxu1 %v1582_v45  ;;  %v1234_v44 = vld [vmem:[%s224_s9 + $0x8] sm:$0x77] }
 0x127   : > { %1104 = vmatprep.subr.bf16.mxu0 %v1587_v46  ;;  %1145 = vmatprep.subr.bf16.mxu1 %v1590_v47 }
 0x12a   : > { %1105 = vmatpush1.bf16.msra.mxu0 %v1585_v48  ;;  %1146 = vmatpush1.bf16.msra.mxu1 %v1588_v49 }
 0x12b   : > { %1106 = vmatprep.subr.bf16.mxu0 %v1593_v50  ;;  %1147 = vmatprep.subr.bf16.mxu1 %v1596_v51 }
 0x12e   : > { %1107 = vmatpush1.bf16.msra.mxu0 %v1591_v52  ;;  %1148 = vmatpush1.bf16.msra.mxu1 %v1594_v53 }
 0x131   : > { %1424 = vmatmul.mubr.msk.bf16.vlgmr.msra.gmra.mxu0 %vm740_vm9, %v1008_v54  ;;  %1425 = vmatmul.mubr.msk.bf16.vlgmr.msra.gmra.mxu1 %vm740_vm9, %v1008_v54 }
 0x1d1   : > { %v778_v55 = vpop.f32.mrf.mxu0  ;;  %v819_v56 = vpop.f32.mrf.mxu1 }
 0x1d3   : > { %v780_v57 = vpop.f32.mrf.mxu0  ;;  %v821_v58 = vpop.f32.mrf.mxu1 }
 0x1d5   : > { %v782_v59 = vpop.f32.mrf.mxu0  ;;  %v823_v60 = vpop.f32.mrf.mxu1 }
 0x1d7   : > { %v783_v61 = vpop.f32.mrf.mxu0  ;;  %v824_v62 = vpop.f32.mrf.mxu1 }
 0x1e1   : > { %v943_v63 = vpop.f32.mrf.mxu0  ;;  %v984_v0 = vpop.f32.mrf.mxu1 }
 0x1e2   : > { %v944_v14 = vadd.f32 %v943_v63, %v778_v55  ;;  %v985_v15 = vadd.f32 %v984_v0, %v819_v56 }
 0x1e3   : > { %v945_v1 = vpop.f32.mrf.mxu0  ;;  %v986_v2 = vpop.f32.mrf.mxu1 }
 0x1e4   : > { %v946_v22 = vadd.f32 %v945_v1, %v780_v57  ;;  %v987_v23 = vadd.f32 %v986_v2, %v821_v58 }
 0x1e5   : > { %v947_v4 = vpop.f32.mrf.mxu0  ;;  %v988_v5 = vpop.f32.mrf.mxu1 }
 0x1e7   : > { %v948_v6 = vpop.f32.mrf.mxu0  ;;  %v989_v7 = vpop.f32.mrf.mxu1 }
 0x1f1   : > { %v1126_v18 = vpop.f32.mrf.mxu0  ;;  %v1167_v19 = vpop.f32.mrf.mxu1 }
 0x1f2   : > { %v1174_v24 = vadd.f32 %v1126_v18, %v944_v14  ;;  %v1176_v25 = vadd.f32 %v1167_v19, %v985_v15 }
 0x1f3   : > { %v1128_v26 = vpop.f32.mrf.mxu0  ;;  %v1169_v27 = vpop.f32.mrf.mxu1 }
 0x1f4   : > { %v1200_v28 = vadd.f32 %v1183_v16, %v1174_v24  ;;  %v1202_v29 = vadd.f32 %v1191_v17, %v1176_v25  ;;  %v1175_v30 = vadd.f32 %v1128_v26, %v946_v22  ;;  %v1177_v31 = vadd.f32 %v1169_v27, %v987_v23 }
 0x1f5   : > { %v1130_v33 = vpop.f32.mrf.mxu0  ;;  %v1171_v34 = vpop.f32.mrf.mxu1 }
 0x1f6   : > { %v1201_v35 = vadd.f32 %v1187_v20, %v1175_v30  ;;  %v1203_v36 = vadd.f32 %v1195_v21, %v1177_v31  ;;  %v1204_v39 = vmax.f32 %v1200_v28, 0.0  ;;  %v1206_v40 = vmax.f32 %v1202_v29, 0.0 }
 0x1f7   : > { %v1131_v37 = vpop.f32.mrf.mxu0  ;;  %v1172_v38 = vpop.f32.mrf.mxu1 }
 0x1f8   : > { %v1205_v41 = vmax.f32 %v1201_v35, 0.0  ;;  %v1207_v42 = vmax.f32 %v1203_v36, 0.0 }
 0x1fa   : > { %v1433_v45 = vpack.c.bf16 %v1205_v41, %v1204_v39  ;;  %v1434_v46 = vpack.c.bf16 %v1207_v42, %v1206_v40 }
 0x1fc   : > { %v1232_v47 = vsel %vm1230_vm0, %v1433_v45, %v1231_v43  ;;  %v1235_v48 = vsel %vm1230_vm0, %v1434_v46, %v1234_v44 }
 0x1fd   : > { %1233 = vst [vmem:[%s224_s9] sm:$0x77] %v1232_v47  ;;  %1236 = vst [vmem:[%s224_s9 + $0x8] sm:$0x77] %v1235_v48 }
 0x1fe PF: > { %s15_s18 = sadd.s32 1, %s1603_s18  }
 0x1ff   : > { %p12_p4 = scmp.ge.s32.totalorder %s15_s18, 4  }
 0x201   :  { %14 = sbr.rel (!%p12_p4) target bundleno = 1 (0x1), region = 72 }

// kernel: _lambda_.27
= control target key start
LH: loop header
LB: loop body
LE: loop exit
PB: predicated region body
PF: predicated region fallthrough
CT: control target
= control target key end

     0   :  { %v238_v0 = vmov 0   ;;  %vm145_vm0 = vcmask 793600   ;;  %vm149_vm1 = vcmask 1040384   ;;  %vm195_vm2 = vcmask 613376   ;;  %s313_s1 = inlined_call_operand.vmem [shape: bf16[225,75], index: 1, kind: input, shape index: {}]   ;;  %s314_s0 = inlined_call_operand.vmem [shape: bf16[8,225], index: 0, kind: input, shape index: {}]   ;;  %s315_s2 = inlined_call_operand.vmem [shape: f32[1,75], index: 2, kind: input, shape index: {}]   ;;  %s316_s3 = inlined_call_operand.vmem [shape: f32[8,75], index: 3, kind: output, shape index: {}]  }
   0x1   :  { %155 = vmatprep.subr.bf16.mxu0 %v238_v0  ;;  %v221_v1 = vld [vmem:[%s313_s1 + $0x38] sm:$0xff]   ;;  %v222_v2 = vld [vmem:[%s313_s1 + $0x30] sm:$0xff]   ;;  %v223_v3 = vld [vmem:[%s313_s1 + $0x28] sm:$0xff]   ;;  %v151_v12 = vsel %vm149_vm1, 65535, %v238_v0 }
   0x2   :  { %156 = vmatpush1.bf16.msra.mxu0 %v221_v1  ;;  %v224_v4 = vld [vmem:[%s313_s1 + $0x20] sm:$0xff]   ;;  %v225_v5 = vld [vmem:[%s313_s1 + $0x18] sm:$0xff]   ;;  %v226_v8 = vld [vmem:[%s313_s1 + $0x10] sm:$0xff]  }
   0x3   :  { %157 = vmatprep.subr.bf16.mxu0 %v238_v0  ;;  %v15_v6 = vld [vmem:[%s314_s0] sm:$0xff]  ;;  %v227_v9 = vld [vmem:[%s313_s1 + $0x8] sm:$0xff]   ;;  %v229_v11 = vld [vmem:[%s313_s1 + $0x70] ss:$0 sps:$4 sm:$0x11]  }
   0x4   :  { %v203_v7 = vcombine.high %v15_v6, %v15_v6  ;;  %v228_v10 = vld [vmem:[%s313_s1] sm:$0xff]   ;;  %v153_v13 = vand.u32 %v229_v11, %v151_v12  ;;  %v230_v14 = vld [vmem:[%s313_s1 + $0x68] sm:$0xff]   ;;  %v232_v16 = vld [vmem:[%s313_s1 + $0x58] sm:$0xff]   ;;  %v202_v20 = vcombine.low %v15_v6, %v15_v6 }
   0x5   :  { %v231_v15 = vld [vmem:[%s313_s1 + $0x60] sm:$0xff]   ;;  %v233_v17 = vld [vmem:[%s313_s1 + $0x50] sm:$0xff]   ;;  %v234_v18 = vld [vmem:[%s313_s1 + $0x48] sm:$0xff]  }
   0x6   :  { %158 = vmatpush1.bf16.msra.mxu0 %v222_v2  ;;  %219 = vmatprep.mubr.msk.bf16.mxu0 %vm145_vm0, %v203_v7  ;;  %v235_v19 = vld [vmem:[%s313_s1 + $0x40] sm:$0xff]  }
   0x7   :  { %159 = vmatprep.subr.bf16.mxu0 %v238_v0  ;;  %v201_v21 = vld [vmem:[%s315_s2] ss:$0 sm:$0xff] }
   0xa   :  { %160 = vmatpush1.bf16.msra.mxu0 %v223_v3 }
   0xb   :  { %161 = vmatprep.subr.bf16.mxu0 %v238_v0 }
   0xe   :  { %162 = vmatpush1.bf16.msra.mxu0 %v224_v4 }
   0xf   :  { %163 = vmatprep.subr.bf16.mxu0 %v238_v0 }
  0x12   :  { %164 = vmatpush1.bf16.msra.mxu0 %v225_v5 }
  0x13   :  { %165 = vmatprep.subr.bf16.mxu0 %v238_v0 }
  0x16   :  { %166 = vmatpush1.bf16.msra.mxu0 %v226_v8 }
  0x17   :  { %167 = vmatprep.subr.bf16.mxu0 %v238_v0 }
  0x1a   :  { %168 = vmatpush1.bf16.msra.mxu0 %v227_v9 }
  0x1b   :  { %169 = vmatprep.subr.bf16.mxu0 %v238_v0 }
  0x1e   :  { %170 = vmatpush1.bf16.msra.mxu0 %v228_v10 }
  0x1f   :  { %173 = vmatprep.subr.bf16.mxu0 %v238_v0 }
  0x22   :  { %174 = vmatpush2.bf16.msra.mxu0 %v153_v13 }
  0x23   :  { %175 = vmatprep.subr.bf16.mxu0 %v238_v0 }
  0x26   :  { %176 = vmatpush2.bf16.msra.mxu0 %v230_v14 }
  0x27   :  { %177 = vmatprep.subr.bf16.mxu0 %v238_v0 }
  0x2a   :  { %178 = vmatpush2.bf16.msra.mxu0 %v231_v15 }
  0x2b   :  { %179 = vmatprep.subr.bf16.mxu0 %v238_v0 }
  0x2e   :  { %180 = vmatpush2.bf16.msra.mxu0 %v232_v16 }
  0x2f   :  { %181 = vmatprep.subr.bf16.mxu0 %v238_v0 }
  0x32   :  { %182 = vmatpush2.bf16.msra.mxu0 %v233_v17 }
  0x33   :  { %183 = vmatprep.subr.bf16.mxu0 %v238_v0 }
  0x36   :  { %184 = vmatpush2.bf16.msra.mxu0 %v234_v18 }
  0x37   :  { %185 = vmatprep.subr.bf16.mxu0 %v238_v0 }
  0x3a   :  { %186 = vmatpush2.bf16.msra.mxu0 %v235_v19 }
  0x3d   :  { %188 = vmatmul.mubr.bf16.vlgmr.msra.gmra.mxu0 %v202_v20 }
  0xfd   :  { %v189_v22 = vpop.f32.mrf.mxu0 }
  0xfe   :  { %v190_v23 = vadd.f32 %v201_v21, %v189_v22 }
  0xff   :  { %v191_v24 = vpop.f32.mrf.mxu0 }
 0x100   :  { %196 = vst.msk [vmem:[%s316_s3] sm:$0xff] %vm195_vm2, %v190_v23 }
 0x101   :  { %v192_v25 = vpop.f32.mrf.mxu0 }
 0x103   :  { %v193_v26 = vpop.f32.mrf.mxu0 }

// kernel: _lambda_.26
= control target key start
LH: loop header
LB: loop body
LE: loop exit
PB: predicated region body
PF: predicated region fallthrough
CT: control target
= control target key end

     0   :  { %vm1080_vm0 = vcmask 609280   ;;  %s1767_s1 = inlined_call_operand.vmem [shape: bf16[1536,75], index: 1, kind: input, shape index: {}]   ;;  %s1768_s0 = inlined_call_operand.vmem [shape: bf16[8,1536], index: 0, kind: input, shape index: {}]   ;;  %s1769_s2 = inlined_call_operand.vmem [shape: f32[1,75], index: 2, kind: input, shape index: {}]   ;;  %s1770_s3 = inlined_call_operand.vmem [shape: bf16[8,75], index: 3, kind: output, shape index: {}]  }
   0x1   :  { %v1327_v0 = vld [vmem:[%s1767_s1 + $0x78] sm:$0xff]   ;;  %v1331_v4 = vld [vmem:[%s1767_s1 + $0x70] sm:$0xff]   ;;  %v1335_v8 = vld [vmem:[%s1767_s1 + $0x68] sm:$0xff]  }
   0x2   :  { %v1328_v1 = vld [vmem:[%s1767_s1 + $0xf8] sm:$0xff]   ;;  %1195 = vmatprep.subr.bf16.mxu0 %v1327_v0  ;;  %v1332_v5 = vld [vmem:[%s1767_s1 + $0xf0] sm:$0xff]   ;;  %v1336_v9 = vld [vmem:[%s1767_s1 + $0xe8] sm:$0xff]  }
   0x3   :  { %v1329_v2 = vld [vmem:[%s1767_s1 + $0x38] sm:$0xff]   ;;  %1217 = vmatprep.subr.bf16.mxu1 %v1328_v1  ;;  %v1333_v6 = vld [vmem:[%s1767_s1 + $0x30] sm:$0xff]   ;;  %v1337_v10 = vld [vmem:[%s1767_s1 + $0x28] sm:$0xff]  }
   0x4   :  { %v1330_v3 = vld [vmem:[%s1767_s1 + $0xb8] sm:$0xff]   ;;  %1196 = vmatpush3.bf16.msra.mxu0 %v1329_v2  ;;  %v1334_v7 = vld [vmem:[%s1767_s1 + $0xb0] sm:$0xff]   ;;  %v1338_v11 = vld [vmem:[%s1767_s1 + $0xa8] sm:$0xff]  }
   0x5   :  { %1218 = vmatpush3.bf16.msra.mxu1 %v1330_v3  ;;  %1197 = vmatprep.subr.bf16.mxu0 %v1331_v4  ;;  %v1339_v12 = vld [vmem:[%s1767_s1 + $0x60] sm:$0xff]   ;;  %v1343_v16 = vld [vmem:[%s1767_s1 + $0x58] sm:$0xff]   ;;  %v1347_v20 = vld [vmem:[%s1767_s1 + $0x50] sm:$0xff]  }
   0x6   :  { %1219 = vmatprep.subr.bf16.mxu1 %v1332_v5  ;;  %v1340_v13 = vld [vmem:[%s1767_s1 + $0xe0] sm:$0xff]   ;;  %v1344_v17 = vld [vmem:[%s1767_s1 + $0xd8] sm:$0xff]   ;;  %v1348_v21 = vld [vmem:[%s1767_s1 + $0xd0] sm:$0xff]  }
   0x7   :  { %v1341_v14 = vld [vmem:[%s1767_s1 + $0x20] sm:$0xff]   ;;  %v1345_v18 = vld [vmem:[%s1767_s1 + $0x18] sm:$0xff]   ;;  %v1349_v22 = vld [vmem:[%s1767_s1 + $0x10] sm:$0xff]  }
   0x8   :  { %1198 = vmatpush3.bf16.msra.mxu0 %v1333_v6  ;;  %v1342_v15 = vld [vmem:[%s1767_s1 + $0xa0] sm:$0xff]   ;;  %v1346_v19 = vld [vmem:[%s1767_s1 + $0x98] sm:$0xff]   ;;  %v1350_v23 = vld [vmem:[%s1767_s1 + $0x90] sm:$0xff]  }
   0x9   :  { %1220 = vmatpush3.bf16.msra.mxu1 %v1334_v7  ;;  %1199 = vmatprep.subr.bf16.mxu0 %v1335_v8  ;;  %v1351_v24 = vld [vmem:[%s1767_s1 + $0x48] sm:$0xff]   ;;  %v1355_v28 = vld [vmem:[%s1767_s1 + $0x40] sm:$0xff]   ;;  %v1363_v38 = vld [vmem:[%s1767_s1 + $0x178] sm:$0xff]  }
   0xa   :  { %1221 = vmatprep.subr.bf16.mxu1 %v1336_v9  ;;  %v1352_v25 = vld [vmem:[%s1767_s1 + $0xc8] sm:$0xff]   ;;  %v1356_v29 = vld [vmem:[%s1767_s1 + $0xc0] sm:$0xff]   ;;  %v1364_v39 = vld [vmem:[%s1767_s1 + $0x1f8] sm:$0xff]  }
   0xb   :  { %v1353_v26 = vld [vmem:[%s1767_s1 + $0x8] sm:$0xff]   ;;  %v1357_v30 = vld [vmem:[%s1767_s1] sm:$0xff]   ;;  %v1365_v40 = vld [vmem:[%s1767_s1 + $0x138] sm:$0xff]  }
   0xc   :  { %1200 = vmatpush3.bf16.msra.mxu0 %v1337_v10  ;;  %v1354_v27 = vld [vmem:[%s1767_s1 + $0x88] sm:$0xff]   ;;  %v1358_v31 = vld [vmem:[%s1767_s1 + $0x80] sm:$0xff]   ;;  %v1366_v41 = vld [vmem:[%s1767_s1 + $0x1b8] sm:$0xff]  }
   0xd   :  { %1222 = vmatpush3.bf16.msra.mxu1 %v1338_v11  ;;  %1201 = vmatprep.subr.bf16.mxu0 %v1339_v12  ;;  %v15_v32 = vld [vmem:[%s1768_s0] sm:$0xff]  ;;  %v16_v33 = vld [vmem:[%s1768_s0 + $0x8] sm:$0xff]  ;;  %v1367_v42 = vld [vmem:[%s1767_s1 + $0x170] sm:$0xff]  }
   0xe   :  { %1223 = vmatprep.subr.bf16.mxu1 %v1340_v13  ;;  %v1087_v34 = vcombine.low %v15_v32, %v15_v32  ;;  %v1088_v35 = vcombine.high %v15_v32, %v15_v32  ;;  %v1089_v36 = vcombine.low %v16_v33, %v16_v33  ;;  %v1090_v37 = vcombine.high %v16_v33, %v16_v33  ;;  %v1368_v43 = vld [vmem:[%s1767_s1 + $0x1f0] sm:$0xff]   ;;  %v1371_v46 = vld [vmem:[%s1767_s1 + $0x168] sm:$0xff]   ;;  %v1375_v50 = vld [vmem:[%s1767_s1 + $0x160] sm:$0xff]  }
   0xf   :  { %v1369_v44 = vld [vmem:[%s1767_s1 + $0x130] sm:$0xff]   ;;  %v1372_v47 = vld [vmem:[%s1767_s1 + $0x1e8] sm:$0xff]   ;;  %v1376_v51 = vld [vmem:[%s1767_s1 + $0x1e0] sm:$0xff]  }
  0x10   :  { %1202 = vmatpush3.bf16.msra.mxu0 %v1341_v14  ;;  %870 = vmatprep.mubr.bf16.mxu0 %v1088_v35  ;;  %v1370_v45 = vld [vmem:[%s1767_s1 + $0x1b0] sm:$0xff]   ;;  %v1373_v48 = vld [vmem:[%s1767_s1 + $0x128] sm:$0xff]   ;;  %v1377_v52 = vld [vmem:[%s1767_s1 + $0x120] sm:$0xff]  }
  0x11   :  { %1224 = vmatpush3.bf16.msra.mxu1 %v1342_v15  ;;  %1203 = vmatprep.subr.bf16.mxu0 %v1343_v16  ;;  %v1374_v49 = vld [vmem:[%s1767_s1 + $0x1a8] sm:$0xff]   ;;  %v1378_v53 = vld [vmem:[%s1767_s1 + $0x1a0] sm:$0xff]   ;;  %v1379_v54 = vld [vmem:[%s1767_s1 + $0x158] sm:$0xff]  }
  0x12   :  { %1225 = vmatprep.subr.bf16.mxu1 %v1344_v17  ;;  %910 = vmatprep.mubr.bf16.mxu1 %v1090_v37  ;;  %v1380_v55 = vld [vmem:[%s1767_s1 + $0x1d8] sm:$0xff]   ;;  %v1383_v58 = vld [vmem:[%s1767_s1 + $0x150] sm:$0xff]   ;;  %v1387_v62 = vld [vmem:[%s1767_s1 + $0x148] sm:$0xff]  }
  0x13   :  { %v1381_v56 = vld [vmem:[%s1767_s1 + $0x118] sm:$0xff]   ;;  %v1384_v59 = vld [vmem:[%s1767_s1 + $0x1d0] sm:$0xff]   ;;  %v1388_v63 = vld [vmem:[%s1767_s1 + $0x1c8] sm:$0xff]  }
  0x14   :  { %1204 = vmatpush3.bf16.msra.mxu0 %v1345_v18  ;;  %v1382_v57 = vld [vmem:[%s1767_s1 + $0x198] sm:$0xff]   ;;  %v1385_v60 = vld [vmem:[%s1767_s1 + $0x110] sm:$0xff]   ;;  %v1389_v0 = vld [vmem:[%s1767_s1 + $0x108] sm:$0xff]  }
  0x15   :  { %1226 = vmatpush3.bf16.msra.mxu1 %v1346_v19  ;;  %1205 = vmatprep.subr.bf16.mxu0 %v1347_v20  ;;  %v1386_v61 = vld [vmem:[%s1767_s1 + $0x190] sm:$0xff]   ;;  %v1390_v1 = vld [vmem:[%s1767_s1 + $0x188] sm:$0xff]   ;;  %v1391_v2 = vld [vmem:[%s1767_s1 + $0x140] sm:$0xff]  }
  0x16   :  { %1227 = vmatprep.subr.bf16.mxu1 %v1348_v21  ;;  %v1392_v3 = vld [vmem:[%s1767_s1 + $0x1c0] sm:$0xff]   ;;  %v17_v6 = vld [vmem:[%s1768_s0 + $0x10] sm:$0xff]  ;;  %v18_v9 = vld [vmem:[%s1768_s0 + $0x18] sm:$0xff] }
  0x17   :  { %v1393_v4 = vld [vmem:[%s1767_s1 + $0x100] sm:$0xff]   ;;  %v1091_v7 = vcombine.low %v17_v6, %v17_v6  ;;  %v1092_v8 = vcombine.high %v17_v6, %v17_v6  ;;  %v1093_v10 = vcombine.low %v18_v9, %v18_v9  ;;  %v1094_v11 = vcombine.high %v18_v9, %v18_v9  ;;  %v1399_v12 = vld [vmem:[%s1767_s1 + $0x278] sm:$0xff]   ;;  %v1403_v16 = vld [vmem:[%s1767_s1 + $0x270] sm:$0xff]  }
  0x18   :  { %1206 = vmatpush3.bf16.msra.mxu0 %v1349_v22  ;;  %v1394_v5 = vld [vmem:[%s1767_s1 + $0x180] sm:$0xff]   ;;  %v1400_v13 = vld [vmem:[%s1767_s1 + $0x2f8] sm:$0xff]   ;;  %v1404_v17 = vld [vmem:[%s1767_s1 + $0x2f0] sm:$0xff]  }
  0x19   :  { %1228 = vmatpush3.bf16.msra.mxu1 %v1350_v23  ;;  %1207 = vmatprep.subr.bf16.mxu0 %v1351_v24  ;;  %v1401_v14 = vld [vmem:[%s1767_s1 + $0x238] sm:$0xff]   ;;  %v1405_v18 = vld [vmem:[%s1767_s1 + $0x230] sm:$0xff]   ;;  %v1407_v20 = vld [vmem:[%s1767_s1 + $0x268] sm:$0xff]  }
  0x1a   :  { %1229 = vmatprep.subr.bf16.mxu1 %v1352_v25  ;;  %v1402_v15 = vld [vmem:[%s1767_s1 + $0x2b8] sm:$0xff]   ;;  %v1406_v19 = vld [vmem:[%s1767_s1 + $0x2b0] sm:$0xff]   ;;  %v1408_v21 = vld [vmem:[%s1767_s1 + $0x2e8] sm:$0xff]  }
  0x1b   :  { %v1409_v22 = vld [vmem:[%s1767_s1 + $0x228] sm:$0xff]   ;;  %v1411_v24 = vld [vmem:[%s1767_s1 + $0x260] sm:$0xff]   ;;  %v1419_v32 = vld [vmem:[%s1767_s1 + $0x250] sm:$0xff]  }
  0x1c   :  { %1208 = vmatpush3.bf16.msra.mxu0 %v1353_v26  ;;  %v1410_v23 = vld [vmem:[%s1767_s1 + $0x2a8] sm:$0xff]   ;;  %v1412_v25 = vld [vmem:[%s1767_s1 + $0x2e0] sm:$0xff]   ;;  %v1420_v33 = vld [vmem:[%s1767_s1 + $0x2d0] sm:$0xff]  }
  0x1d   :  { %1230 = vmatpush3.bf16.msra.mxu1 %v1354_v27  ;;  %1209 = vmatprep.subr.bf16.mxu0 %v1355_v28  ;;  %v1413_v26 = vld [vmem:[%s1767_s1 + $0x220] sm:$0xff]   ;;  %v1415_v28 = vld [vmem:[%s1767_s1 + $0x258] sm:$0xff]   ;;  %v1422_v35 = vld [vmem:[%s1767_s1 + $0x290] sm:$0xff]  }
  0x1e   :  { %1231 = vmatprep.subr.bf16.mxu1 %v1356_v29  ;;  %v1414_v27 = vld [vmem:[%s1767_s1 + $0x2a0] sm:$0xff]   ;;  %v1416_v29 = vld [vmem:[%s1767_s1 + $0x2d8] sm:$0xff]   ;;  %v1424_v37 = vld [vmem:[%s1767_s1 + $0x2c8] sm:$0xff]  }
  0x20   :  { %1210 = vmatpush3.bf16.msra.mxu0 %v1357_v30  ;;  %v1417_v30 = vld [vmem:[%s1767_s1 + $0x218] sm:$0xff]  }
  0x21   :  { %1232 = vmatpush3.bf16.msra.mxu1 %v1358_v31  ;;  %1239 = vmatprep.subr.bf16.mxu0 %v1363_v38  ;;  %v1418_v31 = vld [vmem:[%s1767_s1 + $0x298] sm:$0xff]   ;;  %v1425_v38 = vld [vmem:[%s1767_s1 + $0x208] sm:$0xff]  }
  0x22   :  { %1261 = vmatprep.subr.bf16.mxu1 %v1364_v39  ;;  %v1426_v39 = vld [vmem:[%s1767_s1 + $0x288] sm:$0xff]  }
  0x23   :  { %871 = vmatmul.mubr.bf16.vlgmr.msra.gmra.mxu0 %v1087_v34  ;;  %v1421_v34 = vld [vmem:[%s1767_s1 + $0x210] sm:$0xff]  }
  0x24   :  { %911 = vmatmul.mubr.bf16.vlgmr.msra.gmra.mxu1 %v1089_v36  ;;  %1240 = vmatpush3.bf16.msra.mxu0 %v1365_v40  ;;  %v1423_v36 = vld [vmem:[%s1767_s1 + $0x248] sm:$0xff]   ;;  %v1427_v40 = vld [vmem:[%s1767_s1 + $0x240] sm:$0xff]  }
  0x25   :  { %1262 = vmatpush3.bf16.msra.mxu1 %v1366_v41  ;;  %1241 = vmatprep.subr.bf16.mxu0 %v1367_v42  ;;  %v1428_v41 = vld [vmem:[%s1767_s1 + $0x2c0] sm:$0xff]  }
  0x26   :  { %1263 = vmatprep.subr.bf16.mxu1 %v1368_v43  ;;  %950 = vmatprep.mubr.bf16.mxu0 %v1092_v8  ;;  %v1429_v42 = vld [vmem:[%s1767_s1 + $0x200] sm:$0xff]  }
  0x27   :  { %990 = vmatprep.mubr.bf16.mxu1 %v1094_v11  ;;  %v1430_v43 = vld [vmem:[%s1767_s1 + $0x280] sm:$0xff]  }
  0x28   :  { %1242 = vmatpush3.bf16.msra.mxu0 %v1369_v44  ;;  %v19_v44 = vld [vmem:[%s1768_s0 + $0x20] sm:$0xff] }
  0x29   :  { %1264 = vmatpush3.bf16.msra.mxu1 %v1370_v45  ;;  %1243 = vmatprep.subr.bf16.mxu0 %v1371_v46  ;;  %v20_v45 = vld [vmem:[%s1768_s0 + $0x28] sm:$0xff]  ;;  %v1095_v46 = vcombine.low %v19_v44, %v19_v44 }
  0x2a   :  { %1265 = vmatprep.subr.bf16.mxu1 %v1372_v47  ;;  %v1096_v47 = vcombine.high %v19_v44, %v19_v44 }
  0x2c   :  { %1244 = vmatpush3.bf16.msra.mxu0 %v1373_v48  ;;  %v1097_v48 = vcombine.low %v20_v45, %v20_v45 }
  0x2d   :  { %1266 = vmatpush3.bf16.msra.mxu1 %v1374_v49  ;;  %1245 = vmatprep.subr.bf16.mxu0 %v1375_v50  ;;  %v1098_v49 = vcombine.high %v20_v45, %v20_v45 }
  0x2e   :  { %1267 = vmatprep.subr.bf16.mxu1 %v1376_v51 }
  0x30   :  { %1246 = vmatpush3.bf16.msra.mxu0 %v1377_v52 }
  0x31   :  { %1268 = vmatpush3.bf16.msra.mxu1 %v1378_v53  ;;  %1247 = vmatprep.subr.bf16.mxu0 %v1379_v54 }
  0x32   :  { %1269 = vmatprep.subr.bf16.mxu1 %v1380_v55 }
  0x34   :  { %1248 = vmatpush3.bf16.msra.mxu0 %v1381_v56 }
  0x35   :  { %1270 = vmatpush3.bf16.msra.mxu1 %v1382_v57  ;;  %1249 = vmatprep.subr.bf16.mxu0 %v1383_v58 }
  0x36   :  { %1271 = vmatprep.subr.bf16.mxu1 %v1384_v59 }
  0x38   :  { %1250 = vmatpush3.bf16.msra.mxu0 %v1385_v60 }
  0x39   :  { %1272 = vmatpush3.bf16.msra.mxu1 %v1386_v61  ;;  %1251 = vmatprep.subr.bf16.mxu0 %v1387_v62 }
  0x3a   :  { %1273 = vmatprep.subr.bf16.mxu1 %v1388_v63 }
  0x3c   :  { %1252 = vmatpush3.bf16.msra.mxu0 %v1389_v0 }
  0x3d   :  { %1274 = vmatpush3.bf16.msra.mxu1 %v1390_v1  ;;  %1253 = vmatprep.subr.bf16.mxu0 %v1391_v2 }
  0x3e   :  { %1275 = vmatprep.subr.bf16.mxu1 %v1392_v3  ;;  %v1086_v3 = vld [vmem:[%s1769_s2] ss:$0 sm:$0xff] }
  0x40   :  { %1254 = vmatpush3.bf16.msra.mxu0 %v1393_v4 }
  0x41   :  { %1276 = vmatpush3.bf16.msra.mxu1 %v1394_v5  ;;  %1283 = vmatprep.subr.bf16.mxu0 %v1399_v12 }
  0x42   :  { %1305 = vmatprep.subr.bf16.mxu1 %v1400_v13 }
  0x43   :  { %951 = vmatmul.mubr.bf16.vlgmr.msra.gmra.mxu0 %v1091_v7 }
  0x44   :  { %991 = vmatmul.mubr.bf16.vlgmr.msra.gmra.mxu1 %v1093_v10  ;;  %1284 = vmatpush3.bf16.msra.mxu0 %v1401_v14 }
  0x45   :  { %1306 = vmatpush3.bf16.msra.mxu1 %v1402_v15  ;;  %1285 = vmatprep.subr.bf16.mxu0 %v1403_v16 }
  0x46   :  { %1307 = vmatprep.subr.bf16.mxu1 %v1404_v17  ;;  %1030 = vmatprep.mubr.bf16.mxu0 %v1096_v47 }
  0x47   :  { %1070 = vmatprep.mubr.bf16.mxu1 %v1098_v49 }
  0x48   :  { %1286 = vmatpush3.bf16.msra.mxu0 %v1405_v18 }
  0x49   :  { %1308 = vmatpush3.bf16.msra.mxu1 %v1406_v19  ;;  %1287 = vmatprep.subr.bf16.mxu0 %v1407_v20 }
  0x4a   :  { %1309 = vmatprep.subr.bf16.mxu1 %v1408_v21 }
  0x4c   :  { %1288 = vmatpush3.bf16.msra.mxu0 %v1409_v22 }
  0x4d   :  { %1310 = vmatpush3.bf16.msra.mxu1 %v1410_v23  ;;  %1289 = vmatprep.subr.bf16.mxu0 %v1411_v24 }
  0x4e   :  { %1311 = vmatprep.subr.bf16.mxu1 %v1412_v25 }
  0x50   :  { %1290 = vmatpush3.bf16.msra.mxu0 %v1413_v26 }
  0x51   :  { %1312 = vmatpush3.bf16.msra.mxu1 %v1414_v27  ;;  %1291 = vmatprep.subr.bf16.mxu0 %v1415_v28 }
  0x52   :  { %1313 = vmatprep.subr.bf16.mxu1 %v1416_v29 }
  0x54   :  { %1292 = vmatpush3.bf16.msra.mxu0 %v1417_v30 }
  0x55   :  { %1314 = vmatpush3.bf16.msra.mxu1 %v1418_v31  ;;  %1293 = vmatprep.subr.bf16.mxu0 %v1419_v32 }
  0x56   :  { %1315 = vmatprep.subr.bf16.mxu1 %v1420_v33 }
  0x58   :  { %1294 = vmatpush3.bf16.msra.mxu0 %v1421_v34 }
  0x59   :  { %1316 = vmatpush3.bf16.msra.mxu1 %v1422_v35  ;;  %1295 = vmatprep.subr.bf16.mxu0 %v1423_v36 }
  0x5a   :  { %1317 = vmatprep.subr.bf16.mxu1 %v1424_v37 }
  0x5c   :  { %1296 = vmatpush3.bf16.msra.mxu0 %v1425_v38 }
  0x5d   :  { %1318 = vmatpush3.bf16.msra.mxu1 %v1426_v39  ;;  %1297 = vmatprep.subr.bf16.mxu0 %v1427_v40 }
  0x5e   :  { %1319 = vmatprep.subr.bf16.mxu1 %v1428_v41 }
  0x60   :  { %1298 = vmatpush3.bf16.msra.mxu0 %v1429_v42 }
  0x61   :  { %1320 = vmatpush3.bf16.msra.mxu1 %v1430_v43 }
  0x63   :  { %1031 = vmatmul.mubr.bf16.vlgmr.msra.gmra.mxu0 %v1095_v46 }
  0x64   :  { %1071 = vmatmul.mubr.bf16.vlgmr.msra.gmra.mxu1 %v1097_v48 }
  0xe3   :  { %v1211_v50 = vpop.f32.mrf.mxu0 }
  0xe4   :  { %v1233_v51 = vpop.f32.mrf.mxu1 }
  0xe5   :  { %v1212_v52 = vpop.f32.mrf.mxu0 }
  0xe6   :  { %v1234_v53 = vpop.f32.mrf.mxu1  ;;  %v1213_v2 = vadd.f32 %v1212_v52, %v1211_v50 }
  0xe7   :  { %v1214_v54 = vpop.f32.mrf.mxu0  ;;  %v1235_v5 = vadd.f32 %v1234_v53, %v1233_v51 }
  0xe8   :  { %v1236_v55 = vpop.f32.mrf.mxu1  ;;  %v873_v4 = vadd.f32 %v1213_v2, %v1086_v3 }
  0xe9   :  { %v1215_v56 = vpop.f32.mrf.mxu0 }
  0xea   :  { %v1237_v57 = vpop.f32.mrf.mxu1  ;;  %v913_v7 = vadd.f32 %v1235_v5, %v873_v4 }
 0x103   :  { %v1255_v58 = vpop.f32.mrf.mxu0 }
 0x104   :  { %v1277_v59 = vpop.f32.mrf.mxu1 }
 0x105   :  { %v1256_v60 = vpop.f32.mrf.mxu0 }
 0x106   :  { %v1278_v61 = vpop.f32.mrf.mxu1  ;;  %v1257_v6 = vadd.f32 %v1256_v60, %v1255_v58 }
 0x107   :  { %v1258_v62 = vpop.f32.mrf.mxu0  ;;  %v1279_v9 = vadd.f32 %v1278_v61, %v1277_v59 }
 0x108   :  { %v1280_v63 = vpop.f32.mrf.mxu1  ;;  %v953_v8 = vadd.f32 %v1257_v6, %v913_v7 }
 0x109   :  { %v1259_v0 = vpop.f32.mrf.mxu0 }
 0x10a   :  { %v1281_v1 = vpop.f32.mrf.mxu1  ;;  %v993_v13 = vadd.f32 %v1279_v9, %v953_v8 }
 0x123   :  { %v1299_v10 = vpop.f32.mrf.mxu0 }
 0x124   :  { %v1321_v11 = vpop.f32.mrf.mxu1 }
 0x125   :  { %v1300_v12 = vpop.f32.mrf.mxu0 }
 0x126   :  { %v1301_v14 = vadd.f32 %v1300_v12, %v1299_v10  ;;  %v1322_v15 = vpop.f32.mrf.mxu1 }
 0x127   :  { %v1302_v16 = vpop.f32.mrf.mxu0  ;;  %v1323_v18 = vadd.f32 %v1322_v15, %v1321_v11 }
 0x128   :  { %v1033_v17 = vadd.f32 %v1301_v14, %v993_v13  ;;  %v1324_v19 = vpop.f32.mrf.mxu1 }
 0x129   :  { %v1303_v20 = vpop.f32.mrf.mxu0 }
 0x12a   :  { %v1073_v21 = vadd.f32 %v1323_v18, %v1033_v17  ;;  %v1325_v22 = vpop.f32.mrf.mxu1 }
 0x12c   :  { %v1078_v23 = vmax.f32 %v1073_v21, 0.0 }
 0x12e   :  { %v1079_v24 = vpack.c.bf16 %v1078_v23, %v1078_v23 }
 0x130   :  { %1081 = vst.msk [vmem:[%s1770_s3] sm:$0xf] %vm1080_vm0, %v1079_v24 }

</bundles_post_ra>
